<compile_context>
chip_gen: v7x
topology: tpu7x:2x2x1
jax: 0.10.0
libtpu: 0.0.40
codegen_flags: <defaults>
</compile_context>

<pallas_src>
import functools

import jax
import jax.numpy as jnp
from jax.experimental import pallas as pl
from jax.experimental.pallas import tpu as pltpu


# ----------------------------------------------------------------------------
# Generator config (small but structurally faithful) 
# ----------------------------------------------------------------------------
IN_CHANNELS = 8
OUT_CHANNELS = 1
CHANNELS = 32
KERNEL_SIZE = 7
UPSAMPLE_SCALES = (4, 2)
UPSAMPLE_KERNEL_SIZES = (8, 4)            # == 2 * scale, as asserted in __init__
RESBLOCK_KERNEL_SIZES = (3, 5)
RESBLOCK_DILATIONS = ((1, 3), (1, 3))
LRELU_SLOPE = 0.1                         # nonlinear_activation_params
OUT_LRELU_SLOPE = 0.01                    # nn.LeakyReLU() default in output_conv
NUM_UPSAMPLES = len(UPSAMPLE_SCALES)
NUM_BLOCKS = len(RESBLOCK_KERNEL_SIZES)


def _leaky(x, slope):
    return jnp.where(x >= 0, x, slope * x)


# ----------------------------------------------------------------------------
# In-kernel building blocks (operate on (C, T) values held in VMEM/vregs)
# ----------------------------------------------------------------------------
def _conv1d_same(x, w_ref, b_ref, K, dil):
    """'same'-padded dilated Conv1d via im2col + one MXU matmul.
    x: (C_in, T) f32 value.  w_ref: (C_out, K*C_in) bf16.  b_ref: (C_out, 1) f32."""
    C_in, T = x.shape
    pad = (K - 1) // 2 * dil
    z = jnp.zeros((C_in, pad), jnp.float32)
    xp = jnp.concatenate([z, x, z], axis=-1)                      # (C_in, T + 2*pad)
    # Sublane-stacked shifted views -> single matmul with contraction K*C_in.
    slab = jnp.concatenate(
        [xp[:, k * dil: k * dil + T] for k in range(K)], axis=0
    ).astype(jnp.bfloat16)                                        # (K*C_in, T)
    y = jnp.dot(w_ref[...], slab, preferred_element_type=jnp.float32)
    return y + b_ref[...]                                         # (C_out, T) f32


def _conv_transpose1d(x, w_ref, b_ref, s):
    """Polyphase ConvTranspose1d with kernel=2s, padding=s//2+s%2, output_padding=s%2
    (the HiFiGAN upsample config); output length = s*T.
    x: (C_in, T) f32 (pre-activation already applied by the caller).
    w_ref: (s, C_out, 2*C_in) bf16, packed by _phase_pack_tconv_weight."""
    C_in, T = x.shape
    _, C_out, _ = w_ref.shape
    T_out = s * T
    p = s // 2 + s % 2

    z1 = jnp.zeros((C_in, 1), jnp.float32)
    xp = jnp.concatenate([z1, x, z1], axis=-1)                    # (C_in, T + 2)
    # shifted views x[:, t - q] for q in {-1, 0, 1} (zero outside [0, T))
    xq = {q: xp[:, 1 - q: 1 - q + T] for q in (-1, 0, 1)}

    # Exact 0/1 interleave matrices S_r[t, n] = (n == s*t + r): scatter each phase
    # onto its output lanes with one MXU matmul (kept f32 -> exact permutation).
    t_row = jax.lax.broadcasted_iota(jnp.int32, (T, T_out), 0)
    n_col = jax.lax.broadcasted_iota(jnp.int32, (T, T_out), 1)

    acc = jnp.zeros((C_out, T_out), jnp.float32)
    for r in range(s):
        qs = (0, 1) if r + p < s else (-1, 0)     # the 2 taps j = s*q + r + p hitting phase r
        slab = jnp.concatenate([xq[q] for q in qs], axis=0).astype(jnp.bfloat16)  # (2*C_in, T)
        y_r = jnp.dot(w_ref[r], slab, preferred_element_type=jnp.float32)         # (C_out, T)
        sel = (n_col == s * t_row + r).astype(jnp.float32)                         # (T, T_out)
        acc = acc + jnp.dot(y_r, sel, preferred_element_type=jnp.float32)
    return acc + b_ref[...]


def _generator_kernel(c_ref, *refs):
    """One batch element end-to-end; all intermediates stay in VMEM/vregs."""
    o_ref = refs[-1]
    it = iter(refs[:-1])

    def nxt():
        return next(it), next(it)                 # (w_ref, b_ref)

    x = c_ref[0].astype(jnp.float32)              # (IN_CHANNELS, T0)

    # input_conv
    w, b = nxt()
    x = _conv1d_same(x, w, b, KERNEL_SIZE, 1)

    for i in range(NUM_UPSAMPLES):
        # nn.Sequential(LeakyReLU(0.1), ConvTranspose1d(...))
        w, b = nxt()
        x = _conv_transpose1d(_leaky(x, LRELU_SLOPE), w, b, UPSAMPLE_SCALES[i])
        # mean over residual blocks, fused (no extra HBM passes)
        cs = None
        for j in range(NUM_BLOCKS):
            K = RESBLOCK_KERNEL_SIZES[j]
            xb = x
            for d in RESBLOCK_DILATIONS[j]:
                w, b = nxt()
                # xb = xb + Conv1d(LeakyReLU(xb, 0.1), dilation=d)
                xb = xb + _conv1d_same(_leaky(xb, LRELU_SLOPE), w, b, K, d)
            cs = xb if cs is None else cs + xb
        x = cs * (1.0 / NUM_BLOCKS)

    # output_conv: nn.Sequential(LeakyReLU(), Conv1d, Tanh)
    w, b = nxt()
    x = _conv1d_same(_leaky(x, OUT_LRELU_SLOPE), w, b, KERNEL_SIZE, 1)
    o_ref[0] = jnp.tanh(x).astype(o_ref.dtype)


# ----------------------------------------------------------------------------
# Wrapper: weight packing + single pallas_call
# ----------------------------------------------------------------------------
def _flatten_conv_weight(w):
    """PyTorch Conv1d weight (C_out, C_in, K) -> (C_out, K*C_in) bf16,
    ordered tap-major / channel-minor to match the im2col slab."""
    C_out, C_in, K = w.shape
    return jnp.transpose(w, (0, 2, 1)).reshape(C_out, K * C_in).astype(jnp.bfloat16)


def _phase_pack_tconv_weight(w, s):
    """PyTorch ConvTranspose1d weight (C_in, C_out, K=2s) -> (s, C_out, 2*C_in) bf16.
    Output phase r (n = s*t + r) receives exactly the two taps j = s*q + r + p,
    q in {(0,1) if r+p<s else (-1,0)}, with p = s//2 + s%2."""
    C_in, C_out, K = w.shape
    assert K == 2 * s
    p = s // 2 + s % 2
    phases = []
    for r in range(s):
        qs = (0, 1) if r + p < s else (-1, 0)
        mats = [jnp.transpose(w[:, :, s * q + r + p], (1, 0)) for q in qs]  # (C_out, C_in)
        phases.append(jnp.concatenate(mats, axis=1)[None])                   # (1, C_out, 2*C_in)
    return jnp.concatenate(phases, axis=0).astype(jnp.bfloat16)


def hifigan_generator_forward(c, params):
    """HiFiGANGenerator.forward with use_sine_embs=False / use_qp_resblocks=False
    (so x and d are unused).  Returns (out,) with out: (B, OUT_CHANNELS, T*prod(scales))."""
    B, _, T0 = c.shape
    T_out = T0
    for s in UPSAMPLE_SCALES:
        T_out *= s

    flat = []

    def add(w2d, b1d):
        flat.append(w2d)
        flat.append(jnp.asarray(b1d, jnp.float32).reshape(-1, 1))

    add(_flatten_conv_weight(params["input_conv"]["w"]), params["input_conv"]["b"])
    for i in range(NUM_UPSAMPLES):
        up = params["upsamples"][i]
        add(_phase_pack_tconv_weight(up["w"], UPSAMPLE_SCALES[i]), up["b"])
        for j in range(NUM_BLOCKS):
            blk = params["blocks"][i * NUM_BLOCKS + j]
            for wd, bd in zip(blk["ws"], blk["bs"]):
                add(_flatten_conv_weight(wd), bd)
    add(_flatten_conv_weight(params["output_conv"]["w"]), params["output_conv"]["b"])

    in_specs = [pl.BlockSpec((1, c.shape[1], T0), lambda i: (i, 0, 0))]
    for a in flat:
        # full-array, constant-index blocks -> weights stay VMEM-resident
        in_specs.append(pl.BlockSpec(a.shape, lambda i, nd=a.ndim: (0,) * nd))

    out = pl.pallas_call(
        _generator_kernel,
        out_shape=jax.ShapeDtypeStruct((B, OUT_CHANNELS, T_out), jnp.float32),
        grid=(B,),
        in_specs=in_specs,
        out_specs=pl.BlockSpec((1, OUT_CHANNELS, T_out), lambda i: (i, 0, 0)),
        compiler_params=pltpu.CompilerParams(
            dimension_semantics=("parallel",),
            vmem_limit_bytes=32 * 1024 * 1024,
        ),
    )(c, *flat)
    return (out,)


# ----------------------------------------------------------------------------
# Deterministic params + pure-JAX f32 reference (for correctness check)
# ----------------------------------------------------------------------------
def init_params(key):
    def nrm(key, shape):
        return 0.01 * jax.random.normal(key, shape, dtype=jnp.float32)

    keys = iter(jax.random.split(key, 64))
    params = {}
    params["input_conv"] = {
        "w": nrm(next(keys), (CHANNELS, IN_CHANNELS, KERNEL_SIZE)),
        "b": nrm(next(keys), (CHANNELS,)),
    }
    params["upsamples"] = []
    params["blocks"] = []
    for i in range(NUM_UPSAMPLES):
        c_in = CHANNELS // (2 ** i)
        c_out = CHANNELS // (2 ** (i + 1))
        params["upsamples"].append({
            "w": nrm(next(keys), (c_in, c_out, UPSAMPLE_KERNEL_SIZES[i])),
            "b": nrm(next(keys), (c_out,)),
        })
        for j in range(NUM_BLOCKS):
            k = RESBLOCK_KERNEL_SIZES[j]
            ws, bs = [], []
            for _ in RESBLOCK_DILATIONS[j]:
                ws.append(nrm(next(keys), (c_out, c_out, k)))
                bs.append(nrm(next(keys), (c_out,)))
            params["blocks"].append({"ws": ws, "bs": bs})
    c_final = CHANNELS // (2 ** NUM_UPSAMPLES)
    params["output_conv"] = {
        "w": nrm(next(keys), (OUT_CHANNELS, c_final, KERNEL_SIZE)),
        "b": nrm(next(keys), (OUT_CHANNELS,)),
    }
    return params


def _ref_conv1d(x, w, b, dilation=1, padding=0):
    y = jax.lax.conv_general_dilated(
        x, w, window_strides=(1,), padding=[(padding, padding)],
        rhs_dilation=(dilation,), dimension_numbers=("NCH", "OIH", "NCH"))
    return y + b[None, :, None]


def _ref_conv_transpose1d(x, w, b, stride):
    C_in, C_out, K = w.shape
    s = stride
    p = s // 2 + s % 2
    op = s % 2
    w_conv = jnp.transpose(w, (1, 0, 2))[:, :, ::-1]
    y = jax.lax.conv_general_dilated(
        x, w_conv, window_strides=(1,), padding=[(K - 1 - p, K - 1 - p + op)],
        lhs_dilation=(s,), dimension_numbers=("NCH", "OIH", "NCH"))
    return y + b[None, :, None]


def _reference_forward(c, params):
    pad0 = (KERNEL_SIZE - 1) // 2
    x = _ref_conv1d(c, params["input_conv"]["w"], params["input_conv"]["b"], padding=pad0)
    for i in range(NUM_UPSAMPLES):
        up = params["upsamples"][i]
        x = _ref_conv_transpose1d(_leaky(x, LRELU_SLOPE), up["w"], up["b"], UPSAMPLE_SCALES[i])
        cs = None
        for j in range(NUM_BLOCKS):
            blk = params["blocks"][i * NUM_BLOCKS + j]
            k = RESBLOCK_KERNEL_SIZES[j]
            xb = x
            for wd, bd, d in zip(blk["ws"], blk["bs"], RESBLOCK_DILATIONS[j]):
                pad = (k - 1) // 2 * d
                xb = xb + _ref_conv1d(_leaky(xb, LRELU_SLOPE), wd, bd, dilation=d, padding=pad)
            cs = xb if cs is None else cs + xb
        x = cs / NUM_BLOCKS
    oc = params["output_conv"]
    x = jnp.tanh(_ref_conv1d(_leaky(x, OUT_LRELU_SLOPE), oc["w"], oc["b"], padding=pad0))
    return x


if __name__ == "__main__":
    key = jax.random.PRNGKey(0)
    k_param, k_c = jax.random.split(key)
    params = init_params(k_param)

    B, T = 2, 16
    c = jax.random.normal(k_c, (B, IN_CHANNELS, T), dtype=jnp.float32)
    # x (sine signal) and d (dilation factors) are unused with the default
    # use_sine_embs=False / use_qp_resblocks=False configuration.

    fwd = jax.jit(functools.partial(hifigan_generator_forward, params=params))
    (out,) = fwd(c)
    out = jax.block_until_ready(out)

    expected_T = T
    for s in UPSAMPLE_SCALES:
        expected_T *= s
    assert out.shape == (B, OUT_CHANNELS, expected_T), out.shape
    assert bool(jnp.all(jnp.isfinite(out)))
    assert bool(jnp.all(jnp.abs(out) <= 1.0))          # tanh output range

    # Pure-JAX f32 reference; the kernel feeds the MXU bf16 operands, so tolerance is loose.
    ref = _reference_forward(c, params)
    max_err = float(jnp.max(jnp.abs(out - ref)))
    assert max_err < 2e-3, max_err

    print("KERNEL_OK")
</pallas_src>

<mosaic_0001>
module attributes {stable_mosaic.version = 11 : i64} {
  func.func @_generator_kernel(%arg0: i32, %arg1: memref<1x8x16xf32, #tpu.memory_space<vmem>>, %arg2: memref<32x56xbf16, #tpu.memory_space<vmem>>, %arg3: memref<32x1xf32, #tpu.memory_space<vmem>>, %arg4: memref<4x16x64xbf16, #tpu.memory_space<vmem>>, %arg5: memref<16x1xf32, #tpu.memory_space<vmem>>, %arg6: memref<16x48xbf16, #tpu.memory_space<vmem>>, %arg7: memref<16x1xf32, #tpu.memory_space<vmem>>, %arg8: memref<16x48xbf16, #tpu.memory_space<vmem>>, %arg9: memref<16x1xf32, #tpu.memory_space<vmem>>, %arg10: memref<16x80xbf16, #tpu.memory_space<vmem>>, %arg11: memref<16x1xf32, #tpu.memory_space<vmem>>, %arg12: memref<16x80xbf16, #tpu.memory_space<vmem>>, %arg13: memref<16x1xf32, #tpu.memory_space<vmem>>, %arg14: memref<2x8x32xbf16, #tpu.memory_space<vmem>>, %arg15: memref<8x1xf32, #tpu.memory_space<vmem>>, %arg16: memref<8x24xbf16, #tpu.memory_space<vmem>>, %arg17: memref<8x1xf32, #tpu.memory_space<vmem>>, %arg18: memref<8x24xbf16, #tpu.memory_space<vmem>>, %arg19: memref<8x1xf32, #tpu.memory_space<vmem>>, %arg20: memref<8x40xbf16, #tpu.memory_space<vmem>>, %arg21: memref<8x1xf32, #tpu.memory_space<vmem>>, %arg22: memref<8x40xbf16, #tpu.memory_space<vmem>>, %arg23: memref<8x1xf32, #tpu.memory_space<vmem>>, %arg24: memref<1x56xbf16, #tpu.memory_space<vmem>>, %arg25: memref<1x1xf32, #tpu.memory_space<vmem>>, %arg26: memref<1x1x128xf32, #tpu.memory_space<vmem>>) attributes {dimension_semantics = [#tpu.dimension_semantics<parallel>], iteration_bounds = array<i64: 2>, scalar_prefetch = 0 : i64, scratch_operands = 0 : i64, tpu.core_type = #tpu.core_type<tc>, window_params = [{transform_indices = @transform_0, window_bounds = array<i64: 1, 8, 16>}, {pipeline_mode = #tpu.pipeline_mode<synchronous>, transform_indices = @transform_1, window_bounds = array<i64: 32, 56>}, {pipeline_mode = #tpu.pipeline_mode<synchronous>, transform_indices = @transform_2, window_bounds = array<i64: 32, 1>}, {pipeline_mode = #tpu.pipeline_mode<synchronous>, transform_indices = @transform_3, window_bounds = array<i64: 4, 16, 64>}, {pipeline_mode = #tpu.pipeline_mode<synchronous>, transform_indices = @transform_4, window_bounds = array<i64: 16, 1>}, {pipeline_mode = #tpu.pipeline_mode<synchronous>, transform_indices = @transform_5, window_bounds = array<i64: 16, 48>}, {pipeline_mode = #tpu.pipeline_mode<synchronous>, transform_indices = @transform_6, window_bounds = array<i64: 16, 1>}, {pipeline_mode = #tpu.pipeline_mode<synchronous>, transform_indices = @transform_7, window_bounds = array<i64: 16, 48>}, {pipeline_mode = #tpu.pipeline_mode<synchronous>, transform_indices = @transform_8, window_bounds = array<i64: 16, 1>}, {pipeline_mode = #tpu.pipeline_mode<synchronous>, transform_indices = @transform_9, window_bounds = array<i64: 16, 80>}, {pipeline_mode = #tpu.pipeline_mode<synchronous>, transform_indices = @transform_10, window_bounds = array<i64: 16, 1>}, {pipeline_mode = #tpu.pipeline_mode<synchronous>, transform_indices = @transform_11, window_bounds = array<i64: 16, 80>}, {pipeline_mode = #tpu.pipeline_mode<synchronous>, transform_indices = @transform_12, window_bounds = array<i64: 16, 1>}, {pipeline_mode = #tpu.pipeline_mode<synchronous>, transform_indices = @transform_13, window_bounds = array<i64: 2, 8, 32>}, {pipeline_mode = #tpu.pipeline_mode<synchronous>, transform_indices = @transform_14, window_bounds = array<i64: 8, 1>}, {pipeline_mode = #tpu.pipeline_mode<synchronous>, transform_indices = @transform_15, window_bounds = array<i64: 8, 24>}, {pipeline_mode = #tpu.pipeline_mode<synchronous>, transform_indices = @transform_16, window_bounds = array<i64: 8, 1>}, {pipeline_mode = #tpu.pipeline_mode<synchronous>, transform_indices = @transform_17, window_bounds = array<i64: 8, 24>}, {pipeline_mode = #tpu.pipeline_mode<synchronous>, transform_indices = @transform_18, window_bounds = array<i64: 8, 1>}, {pipeline_mode = #tpu.pipeline_mode<synchronous>, transform_indices = @transform_19, window_bounds = array<i64: 8, 40>}, {pipeline_mode = #tpu.pipeline_mode<synchronous>, transform_indices = @transform_20, window_bounds = array<i64: 8, 1>}, {pipeline_mode = #tpu.pipeline_mode<synchronous>, transform_indices = @transform_21, window_bounds = array<i64: 8, 40>}, {pipeline_mode = #tpu.pipeline_mode<synchronous>, transform_indices = @transform_22, window_bounds = array<i64: 8, 1>}, {pipeline_mode = #tpu.pipeline_mode<synchronous>, transform_indices = @transform_23, window_bounds = array<i64: 1, 56>}, {pipeline_mode = #tpu.pipeline_mode<synchronous>, transform_indices = @transform_24, window_bounds = array<i64: 1, 1>}, {transform_indices = @transform_25, window_bounds = array<i64: 1, 1, 128>}]} {
    %c0 = arith.constant 0 : index
    %c0_0 = arith.constant 0 : index
    %c0_1 = arith.constant 0 : index
    %0 = vector.load %arg1[%c0, %c0_0, %c0_1] : memref<1x8x16xf32, #tpu.memory_space<vmem>>, vector<1x8x16xf32>
    %1 = vector.shape_cast %0 : vector<1x8x16xf32> to vector<8x16xf32>
    %cst = arith.constant 0.000000e+00 : f32
    %2 = vector.broadcast %cst : f32 to vector<8x3xf32>
    %3 = tpu.concatenate %2, %1, %2 in 1 : vector<8x3xf32>, vector<8x16xf32>, vector<8x3xf32> -> vector<8x22xf32>
    %4 = vector.extract_strided_slice %3 {offsets = [0, 0], sizes = [8, 16], strides = [1, 1]} : vector<8x22xf32> to vector<8x16xf32>
    %5 = vector.extract_strided_slice %3 {offsets = [0, 1], sizes = [8, 16], strides = [1, 1]} : vector<8x22xf32> to vector<8x16xf32>
    %6 = vector.extract_strided_slice %3 {offsets = [0, 2], sizes = [8, 16], strides = [1, 1]} : vector<8x22xf32> to vector<8x16xf32>
    %7 = vector.extract_strided_slice %3 {offsets = [0, 3], sizes = [8, 16], strides = [1, 1]} : vector<8x22xf32> to vector<8x16xf32>
    %8 = vector.extract_strided_slice %3 {offsets = [0, 4], sizes = [8, 16], strides = [1, 1]} : vector<8x22xf32> to vector<8x16xf32>
    %9 = vector.extract_strided_slice %3 {offsets = [0, 5], sizes = [8, 16], strides = [1, 1]} : vector<8x22xf32> to vector<8x16xf32>
    %10 = vector.extract_strided_slice %3 {offsets = [0, 6], sizes = [8, 16], strides = [1, 1]} : vector<8x22xf32> to vector<8x16xf32>
    %11 = tpu.concatenate %4, %5, %6, %7, %8, %9, %10 in 0 : vector<8x16xf32>, vector<8x16xf32>, vector<8x16xf32>, vector<8x16xf32>, vector<8x16xf32>, vector<8x16xf32>, vector<8x16xf32> -> vector<56x16xf32>
    %12 = arith.truncf %11 : vector<56x16xf32> to vector<56x16xbf16>
    %c0_2 = arith.constant 0 : index
    %c0_3 = arith.constant 0 : index
    %13 = vector.load %arg2[%c0_2, %c0_3] : memref<32x56xbf16, #tpu.memory_space<vmem>>, vector<32x56xbf16>
    %cst_4 = arith.constant dense<0.000000e+00> : vector<32x16xf32>
    %14 = tpu.matmul %13, %12, %cst_4 {dimension_numbers = #tpu.dot_dimension_numbers<[1], [0], [0], [1], [0, 0, 1, 1], [], []>} : vector<32x56xbf16>, vector<56x16xbf16>, vector<32x16xf32> -> vector<32x16xf32>
    %c0_5 = arith.constant 0 : index
    %c0_6 = arith.constant 0 : index
    %15 = vector.load %arg3[%c0_5, %c0_6] : memref<32x1xf32, #tpu.memory_space<vmem>>, vector<32x1xf32>
    %16 = vector.broadcast %15 : vector<32x1xf32> to vector<32x16xf32>
    %17 = arith.addf %14, %16 : vector<32x16xf32>
    %cst_7 = arith.constant 0.000000e+00 : f32
    %18 = vector.broadcast %cst_7 : f32 to vector<32x16xf32>
    %19 = arith.cmpf oge, %17, %18 : vector<32x16xf32>
    %cst_8 = arith.constant 1.000000e-01 : f32
    %20 = vector.broadcast %cst_8 : f32 to vector<32x16xf32>
    %21 = arith.mulf %20, %17 : vector<32x16xf32>
    %22 = arith.select %19, %17, %21 : vector<32x16xi1>, vector<32x16xf32>
    %cst_9 = arith.constant 0.000000e+00 : f32
    %23 = vector.broadcast %cst_9 : f32 to vector<32x1xf32>
    %24 = tpu.concatenate %23, %22, %23 in 1 : vector<32x1xf32>, vector<32x16xf32>, vector<32x1xf32> -> vector<32x18xf32>
    %25 = vector.extract_strided_slice %24 {offsets = [0, 2], sizes = [32, 16], strides = [1, 1]} : vector<32x18xf32> to vector<32x16xf32>
    %26 = vector.extract_strided_slice %24 {offsets = [0, 1], sizes = [32, 16], strides = [1, 1]} : vector<32x18xf32> to vector<32x16xf32>
    %27 = vector.extract_strided_slice %24 {offsets = [0, 0], sizes = [32, 16], strides = [1, 1]} : vector<32x18xf32> to vector<32x16xf32>
    %28 = tpu.iota {dimensions = array<i32: 0>} : vector<16x64xi32>
    %29 = tpu.iota {dimensions = array<i32: 1>} : vector<16x64xi32>
    %cst_10 = arith.constant 0.000000e+00 : f32
    %30 = vector.broadcast %cst_10 : f32 to vector<16x64xf32>
    %31 = tpu.concatenate %26, %27 in 0 : vector<32x16xf32>, vector<32x16xf32> -> vector<64x16xf32>
    %32 = arith.truncf %31 : vector<64x16xf32> to vector<64x16xbf16>
    %c0_11 = arith.constant 0 : index
    %c0_12 = arith.constant 0 : index
    %c0_13 = arith.constant 0 : index
    %33 = vector.load %arg4[%c0_11, %c0_12, %c0_13] : memref<4x16x64xbf16, #tpu.memory_space<vmem>>, vector<1x16x64xbf16>
    %34 = vector.shape_cast %33 : vector<1x16x64xbf16> to vector<16x64xbf16>
    %cst_14 = arith.constant dense<0.000000e+00> : vector<16x16xf32>
    %35 = tpu.matmul %34, %32, %cst_14 {dimension_numbers = #tpu.dot_dimension_numbers<[1], [0], [0], [1], [0, 0, 1, 1], [], []>} : vector<16x64xbf16>, vector<64x16xbf16>, vector<16x16xf32> -> vector<16x16xf32>
    %c4_i32 = arith.constant 4 : i32
    %36 = vector.broadcast %c4_i32 : i32 to vector<16x64xi32>
    %37 = arith.muli %36, %28 : vector<16x64xi32>
    %c0_i32 = arith.constant 0 : i32
    %38 = vector.broadcast %c0_i32 : i32 to vector<16x64xi32>
    %39 = arith.addi %37, %38 : vector<16x64xi32>
    %40 = arith.cmpi eq, %29, %39 : vector<16x64xi32>
    %41 = arith.extui %40 : vector<16x64xi1> to vector<16x64xi32>
    %42 = arith.sitofp %41 : vector<16x64xi32> to vector<16x64xf32>
    %cst_15 = arith.constant dense<0.000000e+00> : vector<16x64xf32>
    %43 = tpu.matmul %35, %42, %cst_15 {dimension_numbers = #tpu.dot_dimension_numbers<[1], [0], [0], [1], [0, 0, 1, 1], [], []>} : vector<16x16xf32>, vector<16x64xf32>, vector<16x64xf32> -> vector<16x64xf32>
    %44 = arith.addf %30, %43 : vector<16x64xf32>
    %45 = tpu.concatenate %26, %27 in 0 : vector<32x16xf32>, vector<32x16xf32> -> vector<64x16xf32>
    %46 = arith.truncf %45 : vector<64x16xf32> to vector<64x16xbf16>
    %c1 = arith.constant 1 : index
    %c0_16 = arith.constant 0 : index
    %c0_17 = arith.constant 0 : index
    %47 = vector.load %arg4[%c1, %c0_16, %c0_17] : memref<4x16x64xbf16, #tpu.memory_space<vmem>>, vector<1x16x64xbf16>
    %48 = vector.shape_cast %47 : vector<1x16x64xbf16> to vector<16x64xbf16>
    %cst_18 = arith.constant dense<0.000000e+00> : vector<16x16xf32>
    %49 = tpu.matmul %48, %46, %cst_18 {dimension_numbers = #tpu.dot_dimension_numbers<[1], [0], [0], [1], [0, 0, 1, 1], [], []>} : vector<16x64xbf16>, vector<64x16xbf16>, vector<16x16xf32> -> vector<16x16xf32>
    %c4_i32_19 = arith.constant 4 : i32
    %50 = vector.broadcast %c4_i32_19 : i32 to vector<16x64xi32>
    %51 = arith.muli %50, %28 : vector<16x64xi32>
    %c1_i32 = arith.constant 1 : i32
    %52 = vector.broadcast %c1_i32 : i32 to vector<16x64xi32>
    %53 = arith.addi %51, %52 : vector<16x64xi32>
    %54 = arith.cmpi eq, %29, %53 : vector<16x64xi32>
    %55 = arith.extui %54 : vector<16x64xi1> to vector<16x64xi32>
    %56 = arith.sitofp %55 : vector<16x64xi32> to vector<16x64xf32>
    %cst_20 = arith.constant dense<0.000000e+00> : vector<16x64xf32>
    %57 = tpu.matmul %49, %56, %cst_20 {dimension_numbers = #tpu.dot_dimension_numbers<[1], [0], [0], [1], [0, 0, 1, 1], [], []>} : vector<16x16xf32>, vector<16x64xf32>, vector<16x64xf32> -> vector<16x64xf32>
    %58 = arith.addf %44, %57 : vector<16x64xf32>
    %59 = tpu.concatenate %25, %26 in 0 : vector<32x16xf32>, vector<32x16xf32> -> vector<64x16xf32>
    %60 = arith.truncf %59 : vector<64x16xf32> to vector<64x16xbf16>
    %c2 = arith.constant 2 : index
    %c0_21 = arith.constant 0 : index
    %c0_22 = arith.constant 0 : index
    %61 = vector.load %arg4[%c2, %c0_21, %c0_22] : memref<4x16x64xbf16, #tpu.memory_space<vmem>>, vector<1x16x64xbf16>
    %62 = vector.shape_cast %61 : vector<1x16x64xbf16> to vector<16x64xbf16>
    %cst_23 = arith.constant dense<0.000000e+00> : vector<16x16xf32>
    %63 = tpu.matmul %62, %60, %cst_23 {dimension_numbers = #tpu.dot_dimension_numbers<[1], [0], [0], [1], [0, 0, 1, 1], [], []>} : vector<16x64xbf16>, vector<64x16xbf16>, vector<16x16xf32> -> vector<16x16xf32>
    %c4_i32_24 = arith.constant 4 : i32
    %64 = vector.broadcast %c4_i32_24 : i32 to vector<16x64xi32>
    %65 = arith.muli %64, %28 : vector<16x64xi32>
    %c2_i32 = arith.constant 2 : i32
    %66 = vector.broadcast %c2_i32 : i32 to vector<16x64xi32>
    %67 = arith.addi %65, %66 : vector<16x64xi32>
    %68 = arith.cmpi eq, %29, %67 : vector<16x64xi32>
    %69 = arith.extui %68 : vector<16x64xi1> to vector<16x64xi32>
    %70 = arith.sitofp %69 : vector<16x64xi32> to vector<16x64xf32>
    %cst_25 = arith.constant dense<0.000000e+00> : vector<16x64xf32>
    %71 = tpu.matmul %63, %70, %cst_25 {dimension_numbers = #tpu.dot_dimension_numbers<[1], [0], [0], [1], [0, 0, 1, 1], [], []>} : vector<16x16xf32>, vector<16x64xf32>, vector<16x64xf32> -> vector<16x64xf32>
    %72 = arith.addf %58, %71 : vector<16x64xf32>
    %73 = tpu.concatenate %25, %26 in 0 : vector<32x16xf32>, vector<32x16xf32> -> vector<64x16xf32>
    %74 = arith.truncf %73 : vector<64x16xf32> to vector<64x16xbf16>
    %c3 = arith.constant 3 : index
    %c0_26 = arith.constant 0 : index
    %c0_27 = arith.constant 0 : index
    %75 = vector.load %arg4[%c3, %c0_26, %c0_27] : memref<4x16x64xbf16, #tpu.memory_space<vmem>>, vector<1x16x64xbf16>
    %76 = vector.shape_cast %75 : vector<1x16x64xbf16> to vector<16x64xbf16>
    %cst_28 = arith.constant dense<0.000000e+00> : vector<16x16xf32>
    %77 = tpu.matmul %76, %74, %cst_28 {dimension_numbers = #tpu.dot_dimension_numbers<[1], [0], [0], [1], [0, 0, 1, 1], [], []>} : vector<16x64xbf16>, vector<64x16xbf16>, vector<16x16xf32> -> vector<16x16xf32>
    %c4_i32_29 = arith.constant 4 : i32
    %78 = vector.broadcast %c4_i32_29 : i32 to vector<16x64xi32>
    %79 = arith.muli %78, %28 : vector<16x64xi32>
    %c3_i32 = arith.constant 3 : i32
    %80 = vector.broadcast %c3_i32 : i32 to vector<16x64xi32>
    %81 = arith.addi %79, %80 : vector<16x64xi32>
    %82 = arith.cmpi eq, %29, %81 : vector<16x64xi32>
    %83 = arith.extui %82 : vector<16x64xi1> to vector<16x64xi32>
    %84 = arith.sitofp %83 : vector<16x64xi32> to vector<16x64xf32>
    %cst_30 = arith.constant dense<0.000000e+00> : vector<16x64xf32>
    %85 = tpu.matmul %77, %84, %cst_30 {dimension_numbers = #tpu.dot_dimension_numbers<[1], [0], [0], [1], [0, 0, 1, 1], [], []>} : vector<16x16xf32>, vector<16x64xf32>, vector<16x64xf32> -> vector<16x64xf32>
    %86 = arith.addf %72, %85 : vector<16x64xf32>
    %c0_31 = arith.constant 0 : index
    %c0_32 = arith.constant 0 : index
    %87 = vector.load %arg5[%c0_31, %c0_32] : memref<16x1xf32, #tpu.memory_space<vmem>>, vector<16x1xf32>
    %88 = vector.broadcast %87 : vector<16x1xf32> to vector<16x64xf32>
    %89 = arith.addf %86, %88 : vector<16x64xf32>
    %cst_33 = arith.constant 0.000000e+00 : f32
    %90 = vector.broadcast %cst_33 : f32 to vector<16x64xf32>
    %91 = arith.cmpf oge, %89, %90 : vector<16x64xf32>
    %cst_34 = arith.constant 1.000000e-01 : f32
    %92 = vector.broadcast %cst_34 : f32 to vector<16x64xf32>
    %93 = arith.mulf %92, %89 : vector<16x64xf32>
    %94 = arith.select %91, %89, %93 : vector<16x64xi1>, vector<16x64xf32>
    %cst_35 = arith.constant 0.000000e+00 : f32
    %95 = vector.broadcast %cst_35 : f32 to vector<16x1xf32>
    %96 = tpu.concatenate %95, %94, %95 in 1 : vector<16x1xf32>, vector<16x64xf32>, vector<16x1xf32> -> vector<16x66xf32>
    %97 = vector.extract_strided_slice %96 {offsets = [0, 0], sizes = [16, 64], strides = [1, 1]} : vector<16x66xf32> to vector<16x64xf32>
    %98 = vector.extract_strided_slice %96 {offsets = [0, 1], sizes = [16, 64], strides = [1, 1]} : vector<16x66xf32> to vector<16x64xf32>
    %99 = vector.extract_strided_slice %96 {offsets = [0, 2], sizes = [16, 64], strides = [1, 1]} : vector<16x66xf32> to vector<16x64xf32>
    %100 = tpu.concatenate %97, %98, %99 in 0 : vector<16x64xf32>, vector<16x64xf32>, vector<16x64xf32> -> vector<48x64xf32>
    %101 = arith.truncf %100 : vector<48x64xf32> to vector<48x64xbf16>
    %c0_36 = arith.constant 0 : index
    %c0_37 = arith.constant 0 : index
    %102 = vector.load %arg6[%c0_36, %c0_37] : memref<16x48xbf16, #tpu.memory_space<vmem>>, vector<16x48xbf16>
    %cst_38 = arith.constant dense<0.000000e+00> : vector<16x64xf32>
    %103 = tpu.matmul %102, %101, %cst_38 {dimension_numbers = #tpu.dot_dimension_numbers<[1], [0], [0], [1], [0, 0, 1, 1], [], []>} : vector<16x48xbf16>, vector<48x64xbf16>, vector<16x64xf32> -> vector<16x64xf32>
    %c0_39 = arith.constant 0 : index
    %c0_40 = arith.constant 0 : index
    %104 = vector.load %arg7[%c0_39, %c0_40] : memref<16x1xf32, #tpu.memory_space<vmem>>, vector<16x1xf32>
    %105 = vector.broadcast %104 : vector<16x1xf32> to vector<16x64xf32>
    %106 = arith.addf %103, %105 : vector<16x64xf32>
    %107 = arith.addf %89, %106 : vector<16x64xf32>
    %cst_41 = arith.constant 0.000000e+00 : f32
    %108 = vector.broadcast %cst_41 : f32 to vector<16x64xf32>
    %109 = arith.cmpf oge, %107, %108 : vector<16x64xf32>
    %cst_42 = arith.constant 1.000000e-01 : f32
    %110 = vector.broadcast %cst_42 : f32 to vector<16x64xf32>
    %111 = arith.mulf %110, %107 : vector<16x64xf32>
    %112 = arith.select %109, %107, %111 : vector<16x64xi1>, vector<16x64xf32>
    %cst_43 = arith.constant 0.000000e+00 : f32
    %113 = vector.broadcast %cst_43 : f32 to vector<16x3xf32>
    %114 = tpu.concatenate %113, %112, %113 in 1 : vector<16x3xf32>, vector<16x64xf32>, vector<16x3xf32> -> vector<16x70xf32>
    %115 = vector.extract_strided_slice %114 {offsets = [0, 0], sizes = [16, 64], strides = [1, 1]} : vector<16x70xf32> to vector<16x64xf32>
    %116 = vector.extract_strided_slice %114 {offsets = [0, 3], sizes = [16, 64], strides = [1, 1]} : vector<16x70xf32> to vector<16x64xf32>
    %117 = vector.extract_strided_slice %114 {offsets = [0, 6], sizes = [16, 64], strides = [1, 1]} : vector<16x70xf32> to vector<16x64xf32>
    %118 = tpu.concatenate %115, %116, %117 in 0 : vector<16x64xf32>, vector<16x64xf32>, vector<16x64xf32> -> vector<48x64xf32>
    %119 = arith.truncf %118 : vector<48x64xf32> to vector<48x64xbf16>
    %c0_44 = arith.constant 0 : index
    %c0_45 = arith.constant 0 : index
    %120 = vector.load %arg8[%c0_44, %c0_45] : memref<16x48xbf16, #tpu.memory_space<vmem>>, vector<16x48xbf16>
    %cst_46 = arith.constant dense<0.000000e+00> : vector<16x64xf32>
    %121 = tpu.matmul %120, %119, %cst_46 {dimension_numbers = #tpu.dot_dimension_numbers<[1], [0], [0], [1], [0, 0, 1, 1], [], []>} : vector<16x48xbf16>, vector<48x64xbf16>, vector<16x64xf32> -> vector<16x64xf32>
    %c0_47 = arith.constant 0 : index
    %c0_48 = arith.constant 0 : index
    %122 = vector.load %arg9[%c0_47, %c0_48] : memref<16x1xf32, #tpu.memory_space<vmem>>, vector<16x1xf32>
    %123 = vector.broadcast %122 : vector<16x1xf32> to vector<16x64xf32>
    %124 = arith.addf %121, %123 : vector<16x64xf32>
    %125 = arith.addf %107, %124 : vector<16x64xf32>
    %cst_49 = arith.constant 0.000000e+00 : f32
    %126 = vector.broadcast %cst_49 : f32 to vector<16x64xf32>
    %127 = arith.cmpf oge, %89, %126 : vector<16x64xf32>
    %cst_50 = arith.constant 1.000000e-01 : f32
    %128 = vector.broadcast %cst_50 : f32 to vector<16x64xf32>
    %129 = arith.mulf %128, %89 : vector<16x64xf32>
    %130 = arith.select %127, %89, %129 : vector<16x64xi1>, vector<16x64xf32>
    %cst_51 = arith.constant 0.000000e+00 : f32
    %131 = vector.broadcast %cst_51 : f32 to vector<16x2xf32>
    %132 = tpu.concatenate %131, %130, %131 in 1 : vector<16x2xf32>, vector<16x64xf32>, vector<16x2xf32> -> vector<16x68xf32>
    %133 = vector.extract_strided_slice %132 {offsets = [0, 0], sizes = [16, 64], strides = [1, 1]} : vector<16x68xf32> to vector<16x64xf32>
    %134 = vector.extract_strided_slice %132 {offsets = [0, 1], sizes = [16, 64], strides = [1, 1]} : vector<16x68xf32> to vector<16x64xf32>
    %135 = vector.extract_strided_slice %132 {offsets = [0, 2], sizes = [16, 64], strides = [1, 1]} : vector<16x68xf32> to vector<16x64xf32>
    %136 = vector.extract_strided_slice %132 {offsets = [0, 3], sizes = [16, 64], strides = [1, 1]} : vector<16x68xf32> to vector<16x64xf32>
    %137 = vector.extract_strided_slice %132 {offsets = [0, 4], sizes = [16, 64], strides = [1, 1]} : vector<16x68xf32> to vector<16x64xf32>
    %138 = tpu.concatenate %133, %134, %135, %136, %137 in 0 : vector<16x64xf32>, vector<16x64xf32>, vector<16x64xf32>, vector<16x64xf32>, vector<16x64xf32> -> vector<80x64xf32>
    %139 = arith.truncf %138 : vector<80x64xf32> to vector<80x64xbf16>
    %c0_52 = arith.constant 0 : index
    %c0_53 = arith.constant 0 : index
    %140 = vector.load %arg10[%c0_52, %c0_53] : memref<16x80xbf16, #tpu.memory_space<vmem>>, vector<16x80xbf16>
    %cst_54 = arith.constant dense<0.000000e+00> : vector<16x64xf32>
    %141 = tpu.matmul %140, %139, %cst_54 {dimension_numbers = #tpu.dot_dimension_numbers<[1], [0], [0], [1], [0, 0, 1, 1], [], []>} : vector<16x80xbf16>, vector<80x64xbf16>, vector<16x64xf32> -> vector<16x64xf32>
    %c0_55 = arith.constant 0 : index
    %c0_56 = arith.constant 0 : index
    %142 = vector.load %arg11[%c0_55, %c0_56] : memref<16x1xf32, #tpu.memory_space<vmem>>, vector<16x1xf32>
    %143 = vector.broadcast %142 : vector<16x1xf32> to vector<16x64xf32>
    %144 = arith.addf %141, %143 : vector<16x64xf32>
    %145 = arith.addf %89, %144 : vector<16x64xf32>
    %cst_57 = arith.constant 0.000000e+00 : f32
    %146 = vector.broadcast %cst_57 : f32 to vector<16x64xf32>
    %147 = arith.cmpf oge, %145, %146 : vector<16x64xf32>
    %cst_58 = arith.constant 1.000000e-01 : f32
    %148 = vector.broadcast %cst_58 : f32 to vector<16x64xf32>
    %149 = arith.mulf %148, %145 : vector<16x64xf32>
    %150 = arith.select %147, %145, %149 : vector<16x64xi1>, vector<16x64xf32>
    %cst_59 = arith.constant 0.000000e+00 : f32
    %151 = vector.broadcast %cst_59 : f32 to vector<16x6xf32>
    %152 = tpu.concatenate %151, %150, %151 in 1 : vector<16x6xf32>, vector<16x64xf32>, vector<16x6xf32> -> vector<16x76xf32>
    %153 = vector.extract_strided_slice %152 {offsets = [0, 0], sizes = [16, 64], strides = [1, 1]} : vector<16x76xf32> to vector<16x64xf32>
    %154 = vector.extract_strided_slice %152 {offsets = [0, 3], sizes = [16, 64], strides = [1, 1]} : vector<16x76xf32> to vector<16x64xf32>
    %155 = vector.extract_strided_slice %152 {offsets = [0, 6], sizes = [16, 64], strides = [1, 1]} : vector<16x76xf32> to vector<16x64xf32>
    %156 = vector.extract_strided_slice %152 {offsets = [0, 9], sizes = [16, 64], strides = [1, 1]} : vector<16x76xf32> to vector<16x64xf32>
    %157 = vector.extract_strided_slice %152 {offsets = [0, 12], sizes = [16, 64], strides = [1, 1]} : vector<16x76xf32> to vector<16x64xf32>
    %158 = tpu.concatenate %153, %154, %155, %156, %157 in 0 : vector<16x64xf32>, vector<16x64xf32>, vector<16x64xf32>, vector<16x64xf32>, vector<16x64xf32> -> vector<80x64xf32>
    %159 = arith.truncf %158 : vector<80x64xf32> to vector<80x64xbf16>
    %c0_60 = arith.constant 0 : index
    %c0_61 = arith.constant 0 : index
    %160 = vector.load %arg12[%c0_60, %c0_61] : memref<16x80xbf16, #tpu.memory_space<vmem>>, vector<16x80xbf16>
    %cst_62 = arith.constant dense<0.000000e+00> : vector<16x64xf32>
    %161 = tpu.matmul %160, %159, %cst_62 {dimension_numbers = #tpu.dot_dimension_numbers<[1], [0], [0], [1], [0, 0, 1, 1], [], []>} : vector<16x80xbf16>, vector<80x64xbf16>, vector<16x64xf32> -> vector<16x64xf32>
    %c0_63 = arith.constant 0 : index
    %c0_64 = arith.constant 0 : index
    %162 = vector.load %arg13[%c0_63, %c0_64] : memref<16x1xf32, #tpu.memory_space<vmem>>, vector<16x1xf32>
    %163 = vector.broadcast %162 : vector<16x1xf32> to vector<16x64xf32>
    %164 = arith.addf %161, %163 : vector<16x64xf32>
    %165 = arith.addf %145, %164 : vector<16x64xf32>
    %166 = arith.addf %125, %165 : vector<16x64xf32>
    %cst_65 = arith.constant 5.000000e-01 : f32
    %167 = vector.broadcast %cst_65 : f32 to vector<16x64xf32>
    %168 = arith.mulf %166, %167 : vector<16x64xf32>
    %cst_66 = arith.constant 0.000000e+00 : f32
    %169 = vector.broadcast %cst_66 : f32 to vector<16x64xf32>
    %170 = arith.cmpf oge, %168, %169 : vector<16x64xf32>
    %cst_67 = arith.constant 1.000000e-01 : f32
    %171 = vector.broadcast %cst_67 : f32 to vector<16x64xf32>
    %172 = arith.mulf %171, %168 : vector<16x64xf32>
    %173 = arith.select %170, %168, %172 : vector<16x64xi1>, vector<16x64xf32>
    %cst_68 = arith.constant 0.000000e+00 : f32
    %174 = vector.broadcast %cst_68 : f32 to vector<16x1xf32>
    %175 = tpu.concatenate %174, %173, %174 in 1 : vector<16x1xf32>, vector<16x64xf32>, vector<16x1xf32> -> vector<16x66xf32>
    %176 = vector.extract_strided_slice %175 {offsets = [0, 2], sizes = [16, 64], strides = [1, 1]} : vector<16x66xf32> to vector<16x64xf32>
    %177 = vector.extract_strided_slice %175 {offsets = [0, 1], sizes = [16, 64], strides = [1, 1]} : vector<16x66xf32> to vector<16x64xf32>
    %178 = vector.extract_strided_slice %175 {offsets = [0, 0], sizes = [16, 64], strides = [1, 1]} : vector<16x66xf32> to vector<16x64xf32>
    %179 = tpu.iota {dimensions = array<i32: 0>} : vector<64x128xi32>
    %180 = tpu.iota {dimensions = array<i32: 1>} : vector<64x128xi32>
    %cst_69 = arith.constant 0.000000e+00 : f32
    %181 = vector.broadcast %cst_69 : f32 to vector<8x128xf32>
    %182 = tpu.concatenate %177, %178 in 0 : vector<16x64xf32>, vector<16x64xf32> -> vector<32x64xf32>
    %183 = arith.truncf %182 : vector<32x64xf32> to vector<32x64xbf16>
    %c0_70 = arith.constant 0 : index
    %c0_71 = arith.constant 0 : index
    %c0_72 = arith.constant 0 : index
    %184 = vector.load %arg14[%c0_70, %c0_71, %c0_72] : memref<2x8x32xbf16, #tpu.memory_space<vmem>>, vector<1x8x32xbf16>
    %185 = vector.shape_cast %184 : vector<1x8x32xbf16> to vector<8x32xbf16>
    %cst_73 = arith.constant dense<0.000000e+00> : vector<8x64xf32>
    %186 = tpu.matmul %185, %183, %cst_73 {dimension_numbers = #tpu.dot_dimension_numbers<[1], [0], [0], [1], [0, 0, 1, 1], [], []>} : vector<8x32xbf16>, vector<32x64xbf16>, vector<8x64xf32> -> vector<8x64xf32>
    %c2_i32_74 = arith.constant 2 : i32
    %187 = vector.broadcast %c2_i32_74 : i32 to vector<64x128xi32>
    %188 = arith.muli %187, %179 : vector<64x128xi32>
    %c0_i32_75 = arith.constant 0 : i32
    %189 = vector.broadcast %c0_i32_75 : i32 to vector<64x128xi32>
    %190 = arith.addi %188, %189 : vector<64x128xi32>
    %191 = arith.cmpi eq, %180, %190 : vector<64x128xi32>
    %192 = arith.extui %191 : vector<64x128xi1> to vector<64x128xi32>
    %193 = arith.sitofp %192 : vector<64x128xi32> to vector<64x128xf32>
    %cst_76 = arith.constant dense<0.000000e+00> : vector<8x128xf32>
    %194 = tpu.matmul %186, %193, %cst_76 {dimension_numbers = #tpu.dot_dimension_numbers<[1], [0], [0], [1], [0, 0, 1, 1], [], []>} : vector<8x64xf32>, vector<64x128xf32>, vector<8x128xf32> -> vector<8x128xf32>
    %195 = arith.addf %181, %194 : vector<8x128xf32>
    %196 = tpu.concatenate %176, %177 in 0 : vector<16x64xf32>, vector<16x64xf32> -> vector<32x64xf32>
    %197 = arith.truncf %196 : vector<32x64xf32> to vector<32x64xbf16>
    %c1_77 = arith.constant 1 : index
    %c0_78 = arith.constant 0 : index
    %c0_79 = arith.constant 0 : index
    %198 = vector.load %arg14[%c1_77, %c0_78, %c0_79] : memref<2x8x32xbf16, #tpu.memory_space<vmem>>, vector<1x8x32xbf16>
    %199 = vector.shape_cast %198 : vector<1x8x32xbf16> to vector<8x32xbf16>
    %cst_80 = arith.constant dense<0.000000e+00> : vector<8x64xf32>
    %200 = tpu.matmul %199, %197, %cst_80 {dimension_numbers = #tpu.dot_dimension_numbers<[1], [0], [0], [1], [0, 0, 1, 1], [], []>} : vector<8x32xbf16>, vector<32x64xbf16>, vector<8x64xf32> -> vector<8x64xf32>
    %c2_i32_81 = arith.constant 2 : i32
    %201 = vector.broadcast %c2_i32_81 : i32 to vector<64x128xi32>
    %202 = arith.muli %201, %179 : vector<64x128xi32>
    %c1_i32_82 = arith.constant 1 : i32
    %203 = vector.broadcast %c1_i32_82 : i32 to vector<64x128xi32>
    %204 = arith.addi %202, %203 : vector<64x128xi32>
    %205 = arith.cmpi eq, %180, %204 : vector<64x128xi32>
    %206 = arith.extui %205 : vector<64x128xi1> to vector<64x128xi32>
    %207 = arith.sitofp %206 : vector<64x128xi32> to vector<64x128xf32>
    %cst_83 = arith.constant dense<0.000000e+00> : vector<8x128xf32>
    %208 = tpu.matmul %200, %207, %cst_83 {dimension_numbers = #tpu.dot_dimension_numbers<[1], [0], [0], [1], [0, 0, 1, 1], [], []>} : vector<8x64xf32>, vector<64x128xf32>, vector<8x128xf32> -> vector<8x128xf32>
    %209 = arith.addf %195, %208 : vector<8x128xf32>
    %c0_84 = arith.constant 0 : index
    %c0_85 = arith.constant 0 : index
    %210 = vector.load %arg15[%c0_84, %c0_85] : memref<8x1xf32, #tpu.memory_space<vmem>>, vector<8x1xf32>
    %211 = vector.broadcast %210 : vector<8x1xf32> to vector<8x128xf32>
    %212 = arith.addf %209, %211 : vector<8x128xf32>
    %cst_86 = arith.constant 0.000000e+00 : f32
    %213 = vector.broadcast %cst_86 : f32 to vector<8x128xf32>
    %214 = arith.cmpf oge, %212, %213 : vector<8x128xf32>
    %cst_87 = arith.constant 1.000000e-01 : f32
    %215 = vector.broadcast %cst_87 : f32 to vector<8x128xf32>
    %216 = arith.mulf %215, %212 : vector<8x128xf32>
    %217 = arith.select %214, %212, %216 : vector<8x128xi1>, vector<8x128xf32>
    %cst_88 = arith.constant 0.000000e+00 : f32
    %218 = vector.broadcast %cst_88 : f32 to vector<8x1xf32>
    %219 = tpu.concatenate %218, %217, %218 in 1 : vector<8x1xf32>, vector<8x128xf32>, vector<8x1xf32> -> vector<8x130xf32>
    %220 = vector.extract_strided_slice %219 {offsets = [0, 0], sizes = [8, 128], strides = [1, 1]} : vector<8x130xf32> to vector<8x128xf32>
    %221 = vector.extract_strided_slice %219 {offsets = [0, 1], sizes = [8, 128], strides = [1, 1]} : vector<8x130xf32> to vector<8x128xf32>
    %222 = vector.extract_strided_slice %219 {offsets = [0, 2], sizes = [8, 128], strides = [1, 1]} : vector<8x130xf32> to vector<8x128xf32>
    %223 = tpu.concatenate %220, %221, %222 in 0 : vector<8x128xf32>, vector<8x128xf32>, vector<8x128xf32> -> vector<24x128xf32>
    %224 = arith.truncf %223 : vector<24x128xf32> to vector<24x128xbf16>
    %c0_89 = arith.constant 0 : index
    %c0_90 = arith.constant 0 : index
    %225 = vector.load %arg16[%c0_89, %c0_90] : memref<8x24xbf16, #tpu.memory_space<vmem>>, vector<8x24xbf16>
    %cst_91 = arith.constant dense<0.000000e+00> : vector<8x128xf32>
    %226 = tpu.matmul %225, %224, %cst_91 {dimension_numbers = #tpu.dot_dimension_numbers<[1], [0], [0], [1], [0, 0, 1, 1], [], []>} : vector<8x24xbf16>, vector<24x128xbf16>, vector<8x128xf32> -> vector<8x128xf32>
    %c0_92 = arith.constant 0 : index
    %c0_93 = arith.constant 0 : index
    %227 = vector.load %arg17[%c0_92, %c0_93] : memref<8x1xf32, #tpu.memory_space<vmem>>, vector<8x1xf32>
    %228 = vector.broadcast %227 : vector<8x1xf32> to vector<8x128xf32>
    %229 = arith.addf %226, %228 : vector<8x128xf32>
    %230 = arith.addf %212, %229 : vector<8x128xf32>
    %cst_94 = arith.constant 0.000000e+00 : f32
    %231 = vector.broadcast %cst_94 : f32 to vector<8x128xf32>
    %232 = arith.cmpf oge, %230, %231 : vector<8x128xf32>
    %cst_95 = arith.constant 1.000000e-01 : f32
    %233 = vector.broadcast %cst_95 : f32 to vector<8x128xf32>
    %234 = arith.mulf %233, %230 : vector<8x128xf32>
    %235 = arith.select %232, %230, %234 : vector<8x128xi1>, vector<8x128xf32>
    %cst_96 = arith.constant 0.000000e+00 : f32
    %236 = vector.broadcast %cst_96 : f32 to vector<8x3xf32>
    %237 = tpu.concatenate %236, %235, %236 in 1 : vector<8x3xf32>, vector<8x128xf32>, vector<8x3xf32> -> vector<8x134xf32>
    %238 = vector.extract_strided_slice %237 {offsets = [0, 0], sizes = [8, 128], strides = [1, 1]} : vector<8x134xf32> to vector<8x128xf32>
    %239 = vector.extract_strided_slice %237 {offsets = [0, 3], sizes = [8, 128], strides = [1, 1]} : vector<8x134xf32> to vector<8x128xf32>
    %240 = vector.extract_strided_slice %237 {offsets = [0, 6], sizes = [8, 128], strides = [1, 1]} : vector<8x134xf32> to vector<8x128xf32>
    %241 = tpu.concatenate %238, %239, %240 in 0 : vector<8x128xf32>, vector<8x128xf32>, vector<8x128xf32> -> vector<24x128xf32>
    %242 = arith.truncf %241 : vector<24x128xf32> to vector<24x128xbf16>
    %c0_97 = arith.constant 0 : index
    %c0_98 = arith.constant 0 : index
    %243 = vector.load %arg18[%c0_97, %c0_98] : memref<8x24xbf16, #tpu.memory_space<vmem>>, vector<8x24xbf16>
    %cst_99 = arith.constant dense<0.000000e+00> : vector<8x128xf32>
    %244 = tpu.matmul %243, %242, %cst_99 {dimension_numbers = #tpu.dot_dimension_numbers<[1], [0], [0], [1], [0, 0, 1, 1], [], []>} : vector<8x24xbf16>, vector<24x128xbf16>, vector<8x128xf32> -> vector<8x128xf32>
    %c0_100 = arith.constant 0 : index
    %c0_101 = arith.constant 0 : index
    %245 = vector.load %arg19[%c0_100, %c0_101] : memref<8x1xf32, #tpu.memory_space<vmem>>, vector<8x1xf32>
    %246 = vector.broadcast %245 : vector<8x1xf32> to vector<8x128xf32>
    %247 = arith.addf %244, %246 : vector<8x128xf32>
    %248 = arith.addf %230, %247 : vector<8x128xf32>
    %cst_102 = arith.constant 0.000000e+00 : f32
    %249 = vector.broadcast %cst_102 : f32 to vector<8x128xf32>
    %250 = arith.cmpf oge, %212, %249 : vector<8x128xf32>
    %cst_103 = arith.constant 1.000000e-01 : f32
    %251 = vector.broadcast %cst_103 : f32 to vector<8x128xf32>
    %252 = arith.mulf %251, %212 : vector<8x128xf32>
    %253 = arith.select %250, %212, %252 : vector<8x128xi1>, vector<8x128xf32>
    %cst_104 = arith.constant 0.000000e+00 : f32
    %254 = vector.broadcast %cst_104 : f32 to vector<8x2xf32>
    %255 = tpu.concatenate %254, %253, %254 in 1 : vector<8x2xf32>, vector<8x128xf32>, vector<8x2xf32> -> vector<8x132xf32>
    %256 = vector.extract_strided_slice %255 {offsets = [0, 0], sizes = [8, 128], strides = [1, 1]} : vector<8x132xf32> to vector<8x128xf32>
    %257 = vector.extract_strided_slice %255 {offsets = [0, 1], sizes = [8, 128], strides = [1, 1]} : vector<8x132xf32> to vector<8x128xf32>
    %258 = vector.extract_strided_slice %255 {offsets = [0, 2], sizes = [8, 128], strides = [1, 1]} : vector<8x132xf32> to vector<8x128xf32>
    %259 = vector.extract_strided_slice %255 {offsets = [0, 3], sizes = [8, 128], strides = [1, 1]} : vector<8x132xf32> to vector<8x128xf32>
    %260 = vector.extract_strided_slice %255 {offsets = [0, 4], sizes = [8, 128], strides = [1, 1]} : vector<8x132xf32> to vector<8x128xf32>
    %261 = tpu.concatenate %256, %257, %258, %259, %260 in 0 : vector<8x128xf32>, vector<8x128xf32>, vector<8x128xf32>, vector<8x128xf32>, vector<8x128xf32> -> vector<40x128xf32>
    %262 = arith.truncf %261 : vector<40x128xf32> to vector<40x128xbf16>
    %c0_105 = arith.constant 0 : index
    %c0_106 = arith.constant 0 : index
    %263 = vector.load %arg20[%c0_105, %c0_106] : memref<8x40xbf16, #tpu.memory_space<vmem>>, vector<8x40xbf16>
    %cst_107 = arith.constant dense<0.000000e+00> : vector<8x128xf32>
    %264 = tpu.matmul %263, %262, %cst_107 {dimension_numbers = #tpu.dot_dimension_numbers<[1], [0], [0], [1], [0, 0, 1, 1], [], []>} : vector<8x40xbf16>, vector<40x128xbf16>, vector<8x128xf32> -> vector<8x128xf32>
    %c0_108 = arith.constant 0 : index
    %c0_109 = arith.constant 0 : index
    %265 = vector.load %arg21[%c0_108, %c0_109] : memref<8x1xf32, #tpu.memory_space<vmem>>, vector<8x1xf32>
    %266 = vector.broadcast %265 : vector<8x1xf32> to vector<8x128xf32>
    %267 = arith.addf %264, %266 : vector<8x128xf32>
    %268 = arith.addf %212, %267 : vector<8x128xf32>
    %cst_110 = arith.constant 0.000000e+00 : f32
    %269 = vector.broadcast %cst_110 : f32 to vector<8x128xf32>
    %270 = arith.cmpf oge, %268, %269 : vector<8x128xf32>
    %cst_111 = arith.constant 1.000000e-01 : f32
    %271 = vector.broadcast %cst_111 : f32 to vector<8x128xf32>
    %272 = arith.mulf %271, %268 : vector<8x128xf32>
    %273 = arith.select %270, %268, %272 : vector<8x128xi1>, vector<8x128xf32>
    %cst_112 = arith.constant 0.000000e+00 : f32
    %274 = vector.broadcast %cst_112 : f32 to vector<8x6xf32>
    %275 = tpu.concatenate %274, %273, %274 in 1 : vector<8x6xf32>, vector<8x128xf32>, vector<8x6xf32> -> vector<8x140xf32>
    %276 = vector.extract_strided_slice %275 {offsets = [0, 0], sizes = [8, 128], strides = [1, 1]} : vector<8x140xf32> to vector<8x128xf32>
    %277 = vector.extract_strided_slice %275 {offsets = [0, 3], sizes = [8, 128], strides = [1, 1]} : vector<8x140xf32> to vector<8x128xf32>
    %278 = vector.extract_strided_slice %275 {offsets = [0, 6], sizes = [8, 128], strides = [1, 1]} : vector<8x140xf32> to vector<8x128xf32>
    %279 = vector.extract_strided_slice %275 {offsets = [0, 9], sizes = [8, 128], strides = [1, 1]} : vector<8x140xf32> to vector<8x128xf32>
    %280 = vector.extract_strided_slice %275 {offsets = [0, 12], sizes = [8, 128], strides = [1, 1]} : vector<8x140xf32> to vector<8x128xf32>
    %281 = tpu.concatenate %276, %277, %278, %279, %280 in 0 : vector<8x128xf32>, vector<8x128xf32>, vector<8x128xf32>, vector<8x128xf32>, vector<8x128xf32> -> vector<40x128xf32>
    %282 = arith.truncf %281 : vector<40x128xf32> to vector<40x128xbf16>
    %c0_113 = arith.constant 0 : index
    %c0_114 = arith.constant 0 : index
    %283 = vector.load %arg22[%c0_113, %c0_114] : memref<8x40xbf16, #tpu.memory_space<vmem>>, vector<8x40xbf16>
    %cst_115 = arith.constant dense<0.000000e+00> : vector<8x128xf32>
    %284 = tpu.matmul %283, %282, %cst_115 {dimension_numbers = #tpu.dot_dimension_numbers<[1], [0], [0], [1], [0, 0, 1, 1], [], []>} : vector<8x40xbf16>, vector<40x128xbf16>, vector<8x128xf32> -> vector<8x128xf32>
    %c0_116 = arith.constant 0 : index
    %c0_117 = arith.constant 0 : index
    %285 = vector.load %arg23[%c0_116, %c0_117] : memref<8x1xf32, #tpu.memory_space<vmem>>, vector<8x1xf32>
    %286 = vector.broadcast %285 : vector<8x1xf32> to vector<8x128xf32>
    %287 = arith.addf %284, %286 : vector<8x128xf32>
    %288 = arith.addf %268, %287 : vector<8x128xf32>
    %289 = arith.addf %248, %288 : vector<8x128xf32>
    %cst_118 = arith.constant 5.000000e-01 : f32
    %290 = vector.broadcast %cst_118 : f32 to vector<8x128xf32>
    %291 = arith.mulf %289, %290 : vector<8x128xf32>
    %cst_119 = arith.constant 0.000000e+00 : f32
    %292 = vector.broadcast %cst_119 : f32 to vector<8x128xf32>
    %293 = arith.cmpf oge, %291, %292 : vector<8x128xf32>
    %cst_120 = arith.constant 0.00999999977 : f32
    %294 = vector.broadcast %cst_120 : f32 to vector<8x128xf32>
    %295 = arith.mulf %294, %291 : vector<8x128xf32>
    %296 = arith.select %293, %291, %295 : vector<8x128xi1>, vector<8x128xf32>
    %cst_121 = arith.constant 0.000000e+00 : f32
    %297 = vector.broadcast %cst_121 : f32 to vector<8x3xf32>
    %298 = tpu.concatenate %297, %296, %297 in 1 : vector<8x3xf32>, vector<8x128xf32>, vector<8x3xf32> -> vector<8x134xf32>
    %299 = vector.extract_strided_slice %298 {offsets = [0, 0], sizes = [8, 128], strides = [1, 1]} : vector<8x134xf32> to vector<8x128xf32>
    %300 = vector.extract_strided_slice %298 {offsets = [0, 1], sizes = [8, 128], strides = [1, 1]} : vector<8x134xf32> to vector<8x128xf32>
    %301 = vector.extract_strided_slice %298 {offsets = [0, 2], sizes = [8, 128], strides = [1, 1]} : vector<8x134xf32> to vector<8x128xf32>
    %302 = vector.extract_strided_slice %298 {offsets = [0, 3], sizes = [8, 128], strides = [1, 1]} : vector<8x134xf32> to vector<8x128xf32>
    %303 = vector.extract_strided_slice %298 {offsets = [0, 4], sizes = [8, 128], strides = [1, 1]} : vector<8x134xf32> to vector<8x128xf32>
    %304 = vector.extract_strided_slice %298 {offsets = [0, 5], sizes = [8, 128], strides = [1, 1]} : vector<8x134xf32> to vector<8x128xf32>
    %305 = vector.extract_strided_slice %298 {offsets = [0, 6], sizes = [8, 128], strides = [1, 1]} : vector<8x134xf32> to vector<8x128xf32>
    %306 = tpu.concatenate %299, %300, %301, %302, %303, %304, %305 in 0 : vector<8x128xf32>, vector<8x128xf32>, vector<8x128xf32>, vector<8x128xf32>, vector<8x128xf32>, vector<8x128xf32>, vector<8x128xf32> -> vector<56x128xf32>
    %307 = arith.truncf %306 : vector<56x128xf32> to vector<56x128xbf16>
    %c0_122 = arith.constant 0 : index
    %c0_123 = arith.constant 0 : index
    %308 = vector.load %arg24[%c0_122, %c0_123] : memref<1x56xbf16, #tpu.memory_space<vmem>>, vector<1x56xbf16>
    %cst_124 = arith.constant dense<0.000000e+00> : vector<1x128xf32>
    %309 = tpu.matmul %308, %307, %cst_124 {dimension_numbers = #tpu.dot_dimension_numbers<[1], [0], [0], [1], [0, 0, 1, 1], [], []>} : vector<1x56xbf16>, vector<56x128xbf16>, vector<1x128xf32> -> vector<1x128xf32>
    %c0_125 = arith.constant 0 : index
    %c0_126 = arith.constant 0 : index
    %310 = vector.load %arg25[%c0_125, %c0_126] : memref<1x1xf32, #tpu.memory_space<vmem>>, vector<1x1xf32>
    %311 = vector.broadcast %310 : vector<1x1xf32> to vector<1x128xf32>
    %312 = arith.addf %309, %311 : vector<1x128xf32>
    %313 = math.tanh %312 : vector<1x128xf32>
    %c0_127 = arith.constant 0 : index
    %c0_128 = arith.constant 0 : index
    %c0_129 = arith.constant 0 : index
    %314 = vector.load %arg26[%c0_127, %c0_128, %c0_129] : memref<1x1x128xf32, #tpu.memory_space<vmem>>, vector<1x1x128xf32>
    %315 = vector.shape_cast %314 : vector<1x1x128xf32> to vector<1x128xf32>
    %316 = vector.shape_cast %313 : vector<1x128xf32> to vector<1x1x128xf32>
    tpu.vector_store %arg26[%c0_127, %c0_128, %c0_129], %316 {strides = array<i32>} : memref<1x1x128xf32, #tpu.memory_space<vmem>>, vector<1x1x128xf32>,
    return
  }
  func.func @transform_0(%arg0: i32) -> (i32, i32, i32) {
    %c0_i32 = arith.constant 0 : i32
    %c0_i32_0 = arith.constant 0 : i32
    %c0_i32_1 = arith.constant 0 : i32
    return %arg0, %c0_i32, %c0_i32_0 : i32, i32, i32
  }
  func.func @transform_1(%arg0: i32) -> (i32, i32) {
    %c0_i32 = arith.constant 0 : i32
    %c0_i32_0 = arith.constant 0 : i32
    %c0_i32_1 = arith.constant 0 : i32
    return %c0_i32, %c0_i32_0 : i32, i32
  }
  func.func @transform_2(%arg0: i32) -> (i32, i32) {
    %c0_i32 = arith.constant 0 : i32
    %c0_i32_0 = arith.constant 0 : i32
    %c0_i32_1 = arith.constant 0 : i32
    return %c0_i32, %c0_i32_0 : i32, i32
  }
  func.func @transform_3(%arg0: i32) -> (i32, i32, i32) {
    %c0_i32 = arith.constant 0 : i32
    %c0_i32_0 = arith.constant 0 : i32
    %c0_i32_1 = arith.constant 0 : i32
    %c0_i32_2 = arith.constant 0 : i32
    return %c0_i32, %c0_i32_0, %c0_i32_1 : i32, i32, i32
  }
  func.func @transform_4(%arg0: i32) -> (i32, i32) {
    %c0_i32 = arith.constant 0 : i32
    %c0_i32_0 = arith.constant 0 : i32
    %c0_i32_1 = arith.constant 0 : i32
    return %c0_i32, %c0_i32_0 : i32, i32
  }
  func.func @transform_5(%arg0: i32) -> (i32, i32) {
    %c0_i32 = arith.constant 0 : i32
    %c0_i32_0 = arith.constant 0 : i32
    %c0_i32_1 = arith.constant 0 : i32
    return %c0_i32, %c0_i32_0 : i32, i32
  }
  func.func @transform_6(%arg0: i32) -> (i32, i32) {
    %c0_i32 = arith.constant 0 : i32
    %c0_i32_0 = arith.constant 0 : i32
    %c0_i32_1 = arith.constant 0 : i32
    return %c0_i32, %c0_i32_0 : i32, i32
  }
  func.func @transform_7(%arg0: i32) -> (i32, i32) {
    %c0_i32 = arith.constant 0 : i32
    %c0_i32_0 = arith.constant 0 : i32
    %c0_i32_1 = arith.constant 0 : i32
    return %c0_i32, %c0_i32_0 : i32, i32
  }
  func.func @transform_8(%arg0: i32) -> (i32, i32) {
    %c0_i32 = arith.constant 0 : i32
    %c0_i32_0 = arith.constant 0 : i32
    %c0_i32_1 = arith.constant 0 : i32
    return %c0_i32, %c0_i32_0 : i32, i32
  }
  func.func @transform_9(%arg0: i32) -> (i32, i32) {
    %c0_i32 = arith.constant 0 : i32
    %c0_i32_0 = arith.constant 0 : i32
    %c0_i32_1 = arith.constant 0 : i32
    return %c0_i32, %c0_i32_0 : i32, i32
  }
  func.func @transform_10(%arg0: i32) -> (i32, i32) {
    %c0_i32 = arith.constant 0 : i32
    %c0_i32_0 = arith.constant 0 : i32
    %c0_i32_1 = arith.constant 0 : i32
    return %c0_i32, %c0_i32_0 : i32, i32
  }
  func.func @transform_11(%arg0: i32) -> (i32, i32) {
    %c0_i32 = arith.constant 0 : i32
    %c0_i32_0 = arith.constant 0 : i32
    %c0_i32_1 = arith.constant 0 : i32
    return %c0_i32, %c0_i32_0 : i32, i32
  }
  func.func @transform_12(%arg0: i32) -> (i32, i32) {
    %c0_i32 = arith.constant 0 : i32
    %c0_i32_0 = arith.constant 0 : i32
    %c0_i32_1 = arith.constant 0 : i32
    return %c0_i32, %c0_i32_0 : i32, i32
  }
  func.func @transform_13(%arg0: i32) -> (i32, i32, i32) {
    %c0_i32 = arith.constant 0 : i32
    %c0_i32_0 = arith.constant 0 : i32
    %c0_i32_1 = arith.constant 0 : i32
    %c0_i32_2 = arith.constant 0 : i32
    return %c0_i32, %c0_i32_0, %c0_i32_1 : i32, i32, i32
  }
  func.func @transform_14(%arg0: i32) -> (i32, i32) {
    %c0_i32 = arith.constant 0 : i32
    %c0_i32_0 = arith.constant 0 : i32
    %c0_i32_1 = arith.constant 0 : i32
    return %c0_i32, %c0_i32_0 : i32, i32
  }
  func.func @transform_15(%arg0: i32) -> (i32, i32) {
    %c0_i32 = arith.constant 0 : i32
    %c0_i32_0 = arith.constant 0 : i32
    %c0_i32_1 = arith.constant 0 : i32
    return %c0_i32, %c0_i32_0 : i32, i32
  }
  func.func @transform_16(%arg0: i32) -> (i32, i32) {
    %c0_i32 = arith.constant 0 : i32
    %c0_i32_0 = arith.constant 0 : i32
    %c0_i32_1 = arith.constant 0 : i32
    return %c0_i32, %c0_i32_0 : i32, i32
  }
  func.func @transform_17(%arg0: i32) -> (i32, i32) {
    %c0_i32 = arith.constant 0 : i32
    %c0_i32_0 = arith.constant 0 : i32
    %c0_i32_1 = arith.constant 0 : i32
    return %c0_i32, %c0_i32_0 : i32, i32
  }
  func.func @transform_18(%arg0: i32) -> (i32, i32) {
    %c0_i32 = arith.constant 0 : i32
    %c0_i32_0 = arith.constant 0 : i32
    %c0_i32_1 = arith.constant 0 : i32
    return %c0_i32, %c0_i32_0 : i32, i32
  }
  func.func @transform_19(%arg0: i32) -> (i32, i32) {
    %c0_i32 = arith.constant 0 : i32
    %c0_i32_0 = arith.constant 0 : i32
    %c0_i32_1 = arith.constant 0 : i32
    return %c0_i32, %c0_i32_0 : i32, i32
  }
  func.func @transform_20(%arg0: i32) -> (i32, i32) {
    %c0_i32 = arith.constant 0 : i32
    %c0_i32_0 = arith.constant 0 : i32
    %c0_i32_1 = arith.constant 0 : i32
    return %c0_i32, %c0_i32_0 : i32, i32
  }
  func.func @transform_21(%arg0: i32) -> (i32, i32) {
    %c0_i32 = arith.constant 0 : i32
    %c0_i32_0 = arith.constant 0 : i32
    %c0_i32_1 = arith.constant 0 : i32
    return %c0_i32, %c0_i32_0 : i32, i32
  }
  func.func @transform_22(%arg0: i32) -> (i32, i32) {
    %c0_i32 = arith.constant 0 : i32
    %c0_i32_0 = arith.constant 0 : i32
    %c0_i32_1 = arith.constant 0 : i32
    return %c0_i32, %c0_i32_0 : i32, i32
  }
  func.func @transform_23(%arg0: i32) -> (i32, i32) {
    %c0_i32 = arith.constant 0 : i32
    %c0_i32_0 = arith.constant 0 : i32
    %c0_i32_1 = arith.constant 0 : i32
    return %c0_i32, %c0_i32_0 : i32, i32
  }
  func.func @transform_24(%arg0: i32) -> (i32, i32) {
    %c0_i32 = arith.constant 0 : i32
    %c0_i32_0 = arith.constant 0 : i32
    %c0_i32_1 = arith.constant 0 : i32
    return %c0_i32, %c0_i32_0 : i32, i32
  }
  func.func @transform_25(%arg0: i32) -> (i32, i32, i32) {
    %c0_i32 = arith.constant 0 : i32
    %c0_i32_0 = arith.constant 0 : i32
    %c0_i32_1 = arith.constant 0 : i32
    return %arg0, %c0_i32, %c0_i32_0 : i32, i32, i32
  }
}

</mosaic_0001>

<bundles_post_ra>
// kernel: hifigan_generator_forward.1
= control target key start
LH: loop header
LB: loop body
LE: loop exit
PB: predicated region body
PF: predicated region fallthrough
CT: control target
= control target key end

     0   :  { %s5928_s0 = inlined_call_operand.vmem [shape: f32[2,8,16], index: 0, kind: input, shape index: {}]   ;;  %s5929_s1 = inlined_call_operand.vmem [shape: bf16[32,56], index: 1, kind: input, shape index: {}]   ;;  %s5930_s2 = inlined_call_operand.hbm [shape: f32[32,1], index: 2, kind: input, shape index: {}]   ;;  %s5931_s3 = inlined_call_operand.vmem [shape: bf16[4,16,64], index: 3, kind: input, shape index: {}]   ;;  %s5932_s4 = inlined_call_operand.hbm [shape: f32[16,1], index: 4, kind: input, shape index: {}]   ;;  %s5933_s5 = inlined_call_operand.vmem [shape: bf16[16,48], index: 5, kind: input, shape index: {}]   ;;  %s5934_s6 = inlined_call_operand.hbm [shape: f32[16,1], index: 6, kind: input, shape index: {}]   ;;  %s5935_s7 = inlined_call_operand.vmem [shape: bf16[16,48], index: 7, kind: input, shape index: {}]   ;;  %s5936_s8 = inlined_call_operand.hbm [shape: f32[16,1], index: 8, kind: input, shape index: {}]   ;;  %s5937_s9 = inlined_call_operand.vmem [shape: bf16[16,80], index: 9, kind: input, shape index: {}]   ;;  %s5938_s10 = inlined_call_operand.hbm [shape: f32[16,1], index: 10, kind: input, shape index: {}]   ;;  %s5939_s11 = inlined_call_operand.vmem [shape: bf16[16,80], index: 11, kind: input, shape index: {}]   ;;  %s5940_s12 = inlined_call_operand.hbm [shape: f32[16,1], index: 12, kind: input, shape index: {}]   ;;  %s5941_s13 = inlined_call_operand.hbm [shape: bf16[2,8,32], index: 13, kind: input, shape index: {}]   ;;  %s5942_s14 = inlined_call_operand.hbm [shape: f32[8,1], index: 14, kind: input, shape index: {}]   ;;  %s5943_s15 = inlined_call_operand.hbm [shape: bf16[8,24], index: 15, kind: input, shape index: {}]   ;;  %s5944_s16 = inlined_call_operand.hbm [shape: f32[8,1], index: 16, kind: input, shape index: {}]   ;;  %s5945_s17 = inlined_call_operand.hbm [shape: bf16[8,24], index: 17, kind: input, shape index: {}]   ;;  %s5946_s18 = inlined_call_operand.hbm [shape: f32[8,1], index: 18, kind: input, shape index: {}]   ;;  %s5947_s19 = inlined_call_operand.hbm [shape: bf16[8,40], index: 19, kind: input, shape index: {}]   ;;  %s5948_s20 = inlined_call_operand.hbm [shape: f32[8,1], index: 20, kind: input, shape index: {}]   ;;  %s5949_s21 = inlined_call_operand.hbm [shape: bf16[8,40], index: 21, kind: input, shape index: {}]   ;;  %s5950_s22 = inlined_call_operand.hbm [shape: f32[8,1], index: 22, kind: input, shape index: {}]   ;;  %s5951_s23 = inlined_call_operand.vmem [shape: bf16[1,56], index: 23, kind: input, shape index: {}]   ;;  %s5952_s24 = inlined_call_operand.<no memory space> [shape: f32[1,1], index: 24, kind: input, shape index: {}]   ;;  %s5953_s25 = inlined_call_operand.hbm [shape: f32[2,1,128], index: 25, kind: output, shape index: {}]  }
   0x1   :  { %5987 = sst [smem:[#allocation49_spill]] %s5928_s0  ;;  %v30_v0 = vstv %s5952_s24 }
   0x2   :  { %5988 = sst [smem:[#allocation50_spill]] %s5929_s1  ;;  %31 = vst [vmem:[#allocation2] sm:$0x1] %v30_v0 }
   0x3   :  { %5989 = sst [smem:[#allocation51_spill]] %s5930_s2 }
   0x4   :  { %5990 = sst [smem:[#allocation52_spill]] %s5931_s3 }
   0x5   :  { %5991 = sst [smem:[#allocation53_spill]] %s5932_s4 }
   0x6   :  { %5992 = sst [smem:[#allocation54_spill]] %s5933_s5 }
   0x7   :  { %5993 = sst [smem:[#allocation55_spill]] %s5934_s6 }
   0x8   :  { %5994 = sst [smem:[#allocation56_spill]] %s5935_s7 }
   0x9   :  { %5995 = sst [smem:[#allocation57_spill]] %s5936_s8 }
   0xa   :  { %5996 = sst [smem:[#allocation58_spill]] %s5937_s9 }
   0xb   :  { %5997 = sst [smem:[#allocation59_spill]] %s5938_s10 }
   0xc   :  { %5998 = sst [smem:[#allocation60_spill]] %s5939_s11 }
   0xd   :  { %5999 = sst [smem:[#allocation61_spill]] %s5940_s12 }
   0xe   :  { %6000 = sst [smem:[#allocation62_spill]] %s5942_s14 }
   0xf   :  { %6001 = sst [smem:[#allocation63_spill]] %s5951_s23 }
  0x10   :  { %6002 = sst [smem:[#allocation64_spill]] %s5953_s25 }
  0x11   :  { %32 = vsyncpa [#allocation4], 0 }
  0x12   :  { %33 = vsyncpa [#allocation7], 0 }
  0x13   :  { %34 = vsyncpa [#allocation10], 0 }
  0x14   :  { %35 = vsyncpa [#allocation13], 0 }
  0x15   :  { %36 = vsyncpa [#allocation16], 0 }
  0x16   :  { %37 = vsyncpa [#allocation19], 0 }
  0x17   :  { %38 = vsyncpa [#allocation22], 0 }
  0x18   :  { %39 = vsyncpa [#allocation25], 0 }
  0x19   :  { %40 = vsyncpa [#allocation28], 0 }
  0x1a   :  { %41 = vsyncpa [#allocation5], 0 }
  0x1b   :  { %43 = vsyncpa [#allocation5 + $0x1], 0  ;;  %s4983_s6 = smov 0   ;;  %s4985_s30 = smov 0  }
  0x1c   :  { %s4987_s7 = smov 0   ;;  %s4989_s3 = smov 0  }
  0x1d LB: > { %6003 = sst [smem:[#allocation40_spill]] %s4797_s6  ;;  %s5004_s24 = sadd.s32 4294967295, %s4809_s3   ;;  %s4809_s3 = sphi %s4989_s3, %s6092_s3   ;;  %s4805_s7 = sphi %s4987_s7, %s6095_s7   ;;  %s4801_s30 = sphi %s4985_s30, %s6094_s30   ;;  %s4797_s6 = sphi %s4983_s6, %s6093_s6  }
  0x1e   : > { %6004 = sst [smem:[#allocation41_spill]] %s4801_s30  ;;  %s3251_s26 = sadd.s32 4294967294, %s4809_s3  }
  0x1f   : > { %6005 = sst [smem:[#allocation42_spill]] %s4805_s7  ;;  %s5008_s1 = sadd.s32 1, %s4809_s3  }
  0x20   : > { %6006 = sst [smem:[#allocation43_spill]] %s4809_s3  ;;  %s586_s8 = sadd.s32 1, %s4805_s7 }
  0x21   : > { %6007 = sst [smem:[#allocation44_spill]] %s5004_s24  ;;  %s583_s27 = ssub.s32 %s4809_s3, %s5008_s1 }
  0x22   : > { %6008 = sst [smem:[#allocation45_spill]] %s5008_s1  ;;  %p596_p0 = scmp.ne.s32.totalorder %s4805_s7, %s4801_s30 }
  0x23   : > { %p584_p1 = scmp.eq.s32.totalorder %s583_s27, 0  ;;  %p597_p2 = scmp.eq.s32.totalorder %s5004_s24, 1 }
  0x24   : > { %p602_p3 = scmp.ne.s32.totalorder %s4801_s30, %s4797_s6  ;;  %p603_p4 = scmp.eq.s32.totalorder %s3251_s26, 1 }
  0x25   : > { %s5019_s4 = scalar_select %p584_p1, %s4805_s7, %s586_s8  }
  0x26   : > { %p5021_p5 = por %p597_p2, %p596_p0  ;;  %p5025_p6 = por %p603_p4, %p602_p3 }
  0x27   : > { %6009 = sst [smem:[#allocation46_spill]] %s5019_s4  ;;  %p3252_p7 = scmp.ge.s32.totalorder %s4809_s3, 1 }
  0x28   : > { %s6010_s28 = scalar_select %p5021_p5, 1, 0 }
  0x29   : > { %s6012_s9 = scalar_select %p5025_p6, 1, 0 }
  0x2a   : > { %6011 = sst [smem:[#allocation47_spill]] %s6010_s28  ;;  %p610_p8 = scmp.lt.s32.totalorder %s4809_s3, 3 }
  0x2b   : > { %6013 = sst [smem:[#allocation48_spill]] %s6012_s9  ;;  %p5967_p9 = scmp.eq.s32.totalorder %s5004_s24, 0 }
  0x2c   : > { %p5032_p10 = pnand %p3252_p7, %p610_p8  ;;  %s4811_s0 = smov [#allocation6]  }
  0x2d   : > { %s641_s29 = sshll.u32 %s4811_s0, 4  ;;  %s4812_s26 = smov [#allocation9]   ;;  %s5038_s29 = int_to_ptr.vmem [resolvable:$true] %s641_s29 }
  0x2e   : > { %s6014_s5 = scalar_select %p5032_p10, 1, 0 }
  0x2f   : > { %p3893_p11 = pneg %p5032_p10  ;;  %s673_s8 = sshll.u32 %s4812_s26, 4  ;;  %s5046_s8 = int_to_ptr.vmem [resolvable:$true] %s673_s8 }
  0x30   : > { %s4813_s27 = smov [#allocation12]   ;;  %s6016_s9 = sld [smem:[#allocation53_spill]] }
  0x31   : > { %p5042_p12 = pnand %p5967_p9, %p3893_p11  ;;  %s5048_s4 = sshll.u32 %s4813_s27, 4  ;;  %s706_s4 = int_to_ptr.vmem [resolvable:$true] %s5048_s4 }
  0x33   : > { %p5058_p0 = pneg %p5042_p12 }
  0x36   : > { %s4263_s6 = scalar_lea.hbm %s6016_s9, 256 }
  0x37   : > { %p4264_p13 = scmp.ne.s32.totalorder %s6016_s9, %s4263_s6  ;;  %p4270_p3 = scmp.lt.u32.totalorder %s4263_s6, %s6016_s9 }
  0x39   : > { %p4266_p1 = pnand %p5058_p0, %p4264_p13 }
  0x3b   : > { %p4267_p2 = pneg %p4266_p1 }
  0x3d   : > { %p4272_p4 = pnand %p4270_p3, %p4267_p2 }
  0x3f   : > { %4275 = shalt.err (!%p4272_p4)
}
  0x40   : > { %s4276_s7 = scalar_lea.vmem %s5038_s29, 256  ;;  %p4284_p9 = scmp.lt.s32.totalorder %s5038_s29, %s5038_s29 }
  0x41   : > { %p4277_p7 = scmp.ne.s32.totalorder %s5038_s29, %s4276_s7  ;;  %p4285_p6 = scmp.lt.s32.totalorder %s4276_s7, %s4276_s7 }
  0x43   : > { %p4279_p8 = pnand %p4277_p7, %p5058_p0  ;;  %p4286_p13 = por %p4285_p6, %p4284_p9 }
  0x45   : > { %p4280_p11 = pneg %p4279_p8 }
  0x47   : > { %p4287_p1 = pnand %p4286_p13, %p4280_p11 }
  0x49   : > { %4290 = shalt.err (!%p4287_p1)
}
  0x4a   : > { %s5976_s3 = smov 128   ;;  %s5978_s6 = smov 8  }
  0x4b   : > { %3899 = dma.hbm_to_vmem [thread:$0]  (!%p5042_p12), %s6016_s9, 256, %s5038_s29, [#allocation7], %s5976_s3, %s5976_s3, %s5978_s6  }
  0x4c   : > { %s6018_s28 = sld [smem:[#allocation57_spill]] }
  0x52   : > { %s4291_s7 = scalar_lea.hbm %s6018_s28, 256 }
  0x53   : > { %p4292_p6 = scmp.ne.s32.totalorder %s6018_s28, %s4291_s7  ;;  %p4298_p3 = scmp.lt.u32.totalorder %s4291_s7, %s6018_s28 }
  0x55   : > { %p4294_p9 = pnand %p4292_p6, %p5058_p0 }
  0x57   : > { %p4295_p2 = pneg %p4294_p9 }
  0x59   : > { %p4300_p4 = pnand %p4298_p3, %p4295_p2 }
  0x5b   : > { %4303 = shalt.err (!%p4300_p4)
}
  0x5c   : > { %s4304_s29 = scalar_lea.vmem %s5046_s8, 256  ;;  %p4312_p13 = scmp.lt.s32.totalorder %s5046_s8, %s5046_s8 }
  0x5d   : > { %p4305_p7 = scmp.ne.s32.totalorder %s5046_s8, %s4304_s29  ;;  %p4313_p1 = scmp.lt.s32.totalorder %s4304_s29, %s4304_s29 }
  0x5f   : > { %p4307_p8 = pnand %p4305_p7, %p5058_p0  ;;  %p4314_p6 = por %p4313_p1, %p4312_p13 }
  0x61   : > { %p4308_p11 = pneg %p4307_p8 }
  0x63   : > { %p4315_p9 = pnand %p4314_p6, %p4308_p11 }
  0x65   : > { %4318 = shalt.err (!%p4315_p9)
}
  0x66   : > { %3905 = dma.hbm_to_vmem [thread:$0]  (!%p5042_p12), %s6018_s28, 256, %s5046_s8, [#allocation10], %s5976_s3, %s5976_s3, %s5978_s6  }
  0x67   : > { %s6019_s12 = sld [smem:[#allocation61_spill]] }
  0x6d   : > { %s4319_s1 = scalar_lea.hbm %s6019_s12, 256 }
  0x6e   : > { %p4320_p2 = scmp.ne.s32.totalorder %s6019_s12, %s4319_s1  ;;  %p4326_p7 = scmp.lt.u32.totalorder %s4319_s1, %s6019_s12 }
  0x70   : > { %p4322_p3 = pnand %p4320_p2, %p5058_p0 }
  0x72   : > { %p4323_p4 = pneg %p4322_p3 }
  0x74   : > { %p4328_p8 = pnand %p4326_p7, %p4323_p4 }
  0x76   : > { %4331 = shalt.err (!%p4328_p8)
}
  0x77   : > { %s4332_s29 = scalar_lea.vmem %s706_s4, 256  ;;  %p4340_p6 = scmp.lt.s32.totalorder %s706_s4, %s706_s4 }
  0x78   : > { %p4333_p11 = scmp.ne.s32.totalorder %s706_s4, %s4332_s29  ;;  %p4341_p9 = scmp.lt.s32.totalorder %s4332_s29, %s4332_s29 }
  0x7a   : > { %p4335_p13 = pnand %p4333_p11, %p5058_p0  ;;  %p4342_p5 = por %p4341_p9, %p4340_p6 }
  0x7c   : > { %p4336_p1 = pneg %p4335_p13 }
  0x7e   : > { %p4343_p10 = pnand %p4342_p5, %p4336_p1 }
  0x80   : > { %4346 = shalt.err (!%p4343_p10)
}
  0x81   : > { %3911 = dma.hbm_to_vmem [thread:$0]  (!%p5042_p12), %s6019_s12, 256, %s706_s4, [#allocation13], %s5976_s3, %s5976_s3, %s5978_s6  }
  0x82   : > { %s4816_s23 = smov [#allocation15]   ;;  %s4817_s24 = smov [#allocation18]  }
  0x83   : > { %s732_s30 = sshll.u32 %s4816_s23, 4  ;;  %s754_s1 = sshll.u32 %s4817_s24, 4  ;;  %s733_s30 = int_to_ptr.vmem [resolvable:$true] %s732_s30  ;;  %s755_s1 = int_to_ptr.vmem [resolvable:$true] %s754_s1 }
  0x84   : > { %s6020_s14 = sld [smem:[#allocation62_spill]] }
  0x8a   : > { %s4347_s27 = scalar_lea.hbm %s6020_s14, 128 }
  0x8b   : > { %p4348_p5 = scmp.ne.s32.totalorder %s6020_s14, %s4347_s27  ;;  %p4354_p3 = scmp.lt.u32.totalorder %s4347_s27, %s6020_s14 }
  0x8d   : > { %p4350_p10 = pnand %p4348_p5, %p5058_p0 }
  0x8f   : > { %p4351_p2 = pneg %p4350_p10 }
  0x91   : > { %p4356_p4 = pnand %p4354_p3, %p4351_p2 }
  0x93   : > { %4359 = shalt.err (!%p4356_p4)
}
  0x94   : > { %s4360_s4 = scalar_lea.vmem %s733_s30, 128  ;;  %p4368_p13 = scmp.lt.s32.totalorder %s733_s30, %s733_s30 }
  0x95   : > { %p4361_p7 = scmp.ne.s32.totalorder %s733_s30, %s4360_s4  ;;  %p4369_p1 = scmp.lt.s32.totalorder %s4360_s4, %s4360_s4 }
  0x97   : > { %p4363_p8 = pnand %p4361_p7, %p5058_p0  ;;  %p4370_p6 = por %p4369_p1, %p4368_p13 }
  0x99   : > { %p4364_p11 = pneg %p4363_p8 }
  0x9b   : > { %p4371_p9 = pnand %p4370_p6, %p4364_p11 }
  0x9d   : > { %4374 = shalt.err (!%p4371_p9)
}
  0x9e   : > { %3917 = dma.hbm_to_vmem [thread:$0]  (!%p5042_p12), %s6020_s14, 128, %s733_s30, [#allocation16]  }
  0x9f   : > { %s4375_s0 = scalar_lea.hbm %s5944_s16, 128 }
  0xa0   : > { %p4376_p5 = scmp.ne.s32.totalorder %s5944_s16, %s4375_s0  ;;  %p4382_p3 = scmp.lt.u32.totalorder %s4375_s0, %s5944_s16 }
  0xa2   : > { %p4378_p10 = pnand %p4376_p5, %p5058_p0 }
  0xa4   : > { %p4379_p2 = pneg %p4378_p10 }
  0xa6   : > { %p4384_p4 = pnand %p4382_p3, %p4379_p2 }
  0xa8   : > { %4387 = shalt.err (!%p4384_p4)
}
  0xa9   : > { %s4388_s8 = scalar_lea.vmem %s755_s1, 128  ;;  %p4396_p13 = scmp.lt.s32.totalorder %s755_s1, %s755_s1 }
  0xaa   : > { %p4389_p7 = scmp.ne.s32.totalorder %s755_s1, %s4388_s8  ;;  %p4397_p1 = scmp.lt.s32.totalorder %s4388_s8, %s4388_s8 }
  0xac   : > { %p4391_p8 = pnand %p4389_p7, %p5058_p0  ;;  %p4398_p6 = por %p4397_p1, %p4396_p13 }
  0xae   : > { %p4392_p11 = pneg %p4391_p8 }
  0xb0   : > { %p4399_p9 = pnand %p4398_p6, %p4392_p11 }
  0xb2   : > { %4402 = shalt.err (!%p4399_p9)
}
  0xb3   : > { %3923 = dma.hbm_to_vmem [thread:$0]  (!%p5042_p12), %s5944_s16, 128, %s755_s1, [#allocation19]  }
  0xb4   : > { %s4818_s11 = smov [#allocation21]   ;;  %s4819_s9 = smov [#allocation24]  }
  0xb5   : > { %s776_s23 = sshll.u32 %s4818_s11, 4  ;;  %s798_s24 = sshll.u32 %s4819_s9, 4  ;;  %s777_s23 = int_to_ptr.vmem [resolvable:$true] %s776_s23  ;;  %s799_s24 = int_to_ptr.vmem [resolvable:$true] %s798_s24 }
  0xb6   : > { %s4403_s27 = scalar_lea.hbm %s5946_s18, 128 }
  0xb7   : > { %p4404_p5 = scmp.ne.s32.totalorder %s5946_s18, %s4403_s27  ;;  %p4410_p3 = scmp.lt.u32.totalorder %s4403_s27, %s5946_s18 }
  0xb9   : > { %p4406_p10 = pnand %p4404_p5, %p5058_p0 }
  0xbb   : > { %p4407_p2 = pneg %p4406_p10 }
  0xbd   : > { %p4412_p4 = pnand %p4410_p3, %p4407_p2 }
  0xbf   : > { %4415 = shalt.err (!%p4412_p4)
}
  0xc0   : > { %s4416_s1 = scalar_lea.vmem %s777_s23, 128  ;;  %p4424_p13 = scmp.lt.s32.totalorder %s777_s23, %s777_s23 }
  0xc1   : > { %p4417_p7 = scmp.ne.s32.totalorder %s777_s23, %s4416_s1  ;;  %p4425_p1 = scmp.lt.s32.totalorder %s4416_s1, %s4416_s1 }
  0xc3   : > { %p4419_p8 = pnand %p4417_p7, %p5058_p0  ;;  %p4426_p6 = por %p4425_p1, %p4424_p13 }
  0xc5   : > { %p4420_p11 = pneg %p4419_p8 }
  0xc7   : > { %p4427_p9 = pnand %p4426_p6, %p4420_p11 }
  0xc9   : > { %4430 = shalt.err (!%p4427_p9)
}
  0xca   : > { %3929 = dma.hbm_to_vmem [thread:$0]  (!%p5042_p12), %s5946_s18, 128, %s777_s23, [#allocation22]  }
  0xcb   : > { %s4431_s26 = scalar_lea.hbm %s5948_s20, 128 }
  0xcc   : > { %p4432_p5 = scmp.ne.s32.totalorder %s5948_s20, %s4431_s26  ;;  %p4438_p3 = scmp.lt.u32.totalorder %s4431_s26, %s5948_s20 }
  0xce   : > { %p4434_p10 = pnand %p4432_p5, %p5058_p0 }
  0xd0   : > { %p4435_p2 = pneg %p4434_p10 }
  0xd2   : > { %p4440_p4 = pnand %p4438_p3, %p4435_p2 }
  0xd4   : > { %4443 = shalt.err (!%p4440_p4)
}
  0xd5   : > { %s4444_s30 = scalar_lea.vmem %s799_s24, 128  ;;  %p4452_p13 = scmp.lt.s32.totalorder %s799_s24, %s799_s24 }
  0xd6   : > { %p4445_p7 = scmp.ne.s32.totalorder %s799_s24, %s4444_s30  ;;  %p4453_p1 = scmp.lt.s32.totalorder %s4444_s30, %s4444_s30 }
  0xd8   : > { %p4447_p8 = pnand %p4445_p7, %p5058_p0  ;;  %p4454_p6 = por %p4453_p1, %p4452_p13 }
  0xda   : > { %p4448_p11 = pneg %p4447_p8 }
  0xdc   : > { %p4455_p9 = pnand %p4454_p6, %p4448_p11 }
  0xde   : > { %4458 = shalt.err (!%p4455_p9)
}
  0xdf   : > { %3935 = dma.hbm_to_vmem [thread:$0]  (!%p5042_p12), %s5948_s20, 128, %s799_s24, [#allocation25]  }
  0xe0   : > { %s4820_s4 = smov [#allocation3]   ;;  %s4821_s9 = smov [#allocation8]  }
  0xe1   : > { %s625_s11 = sshll.u32 %s4820_s4, 4  ;;  %s657_s0 = sshll.u32 %s4821_s9, 4  ;;  %s626_s11 = int_to_ptr.vmem [resolvable:$true] %s625_s11  ;;  %s658_s0 = int_to_ptr.vmem [resolvable:$true] %s657_s0 }
  0xe2   : > { %s6021_s7 = sld [smem:[#allocation51_spill]] }
  0xe8   : > { %s6022_s29 = smov %s6021_s7  ;;  %s4459_s8 = scalar_lea.hbm %s6021_s7, 512 }
  0xe9   : > { %p4460_p5 = scmp.ne.s32.totalorder %s6022_s29, %s4459_s8  ;;  %p4466_p3 = scmp.lt.u32.totalorder %s4459_s8, %s6022_s29 }
  0xeb   : > { %p4462_p10 = pnand %p4460_p5, %p5058_p0 }
  0xed   : > { %p4463_p2 = pneg %p4462_p10 }
  0xef   : > { %p4468_p4 = pnand %p4466_p3, %p4463_p2 }
  0xf1   : > { %4471 = shalt.err (!%p4468_p4)
}
  0xf2   : > { %s4472_s24 = scalar_lea.vmem %s626_s11, 512  ;;  %p4480_p13 = scmp.lt.s32.totalorder %s626_s11, %s626_s11 }
  0xf3   : > { %p4473_p7 = scmp.ne.s32.totalorder %s626_s11, %s4472_s24  ;;  %p4481_p1 = scmp.lt.s32.totalorder %s4472_s24, %s4472_s24 }
  0xf5   : > { %p4475_p8 = pnand %p4473_p7, %p5058_p0  ;;  %p4482_p6 = por %p4481_p1, %p4480_p13 }
  0xf7   : > { %p4476_p11 = pneg %p4475_p8 }
  0xf9   : > { %p4483_p9 = pnand %p4482_p6, %p4476_p11 }
  0xfb   : > { %4486 = shalt.err (!%p4483_p9)
}
  0xfc   : > { %s6023_s3 = smov 8   ;;  %s6024_s1 = smov 128  }
  0xfd   : > { %3896 = dma.hbm_to_vmem [thread:$0]  (!%p5042_p12), %s6022_s29, 512, %s626_s11, [#allocation4], %s6024_s1, %s6024_s1, %s6023_s3  }
  0xfe   : > { %s6025_s27 = sld [smem:[#allocation55_spill]] }
 0x104   : > { %s4487_s7 = scalar_lea.hbm %s6025_s27, 256 }
 0x105   : > { %p4488_p5 = scmp.ne.s32.totalorder %s6025_s27, %s4487_s7  ;;  %p4494_p3 = scmp.lt.u32.totalorder %s4487_s7, %s6025_s27 }
 0x107   : > { %p4490_p10 = pnand %p4488_p5, %p5058_p0 }
 0x109   : > { %p4491_p2 = pneg %p4490_p10 }
 0x10b   : > { %p4496_p4 = pnand %p4494_p3, %p4491_p2 }
 0x10d   : > { %4499 = shalt.err (!%p4496_p4)
}
 0x10e   : > { %s4500_s6 = scalar_lea.vmem %s658_s0, 256  ;;  %p4508_p13 = scmp.lt.s32.totalorder %s658_s0, %s658_s0 }
 0x10f   : > { %p4501_p7 = scmp.ne.s32.totalorder %s658_s0, %s4500_s6  ;;  %p4509_p1 = scmp.lt.s32.totalorder %s4500_s6, %s4500_s6 }
 0x111   : > { %p4503_p8 = pnand %p4501_p7, %p5058_p0  ;;  %p4510_p6 = por %p4509_p1, %p4508_p13 }
 0x113   : > { %p4504_p11 = pneg %p4503_p8 }
 0x115   : > { %p4511_p9 = pnand %p4510_p6, %p4504_p11 }
 0x117   : > { %4514 = shalt.err (!%p4511_p9)
}
 0x118   : > { %3902 = dma.hbm_to_vmem [thread:$0]  (!%p5042_p12), %s6025_s27, 256, %s658_s0, [#allocation7], %s6024_s1, %s6024_s1, %s6023_s3  }
 0x119   : > { %s4822_s9 = smov [#allocation11]   ;;  %s4823_s7 = smov [#allocation14]  }
 0x11a   : > { %s689_s26 = sshll.u32 %s4822_s9, 4  ;;  %s718_s8 = sshll.u32 %s4823_s7, 4  ;;  %s690_s26 = int_to_ptr.vmem [resolvable:$true] %s689_s26  ;;  %s719_s8 = int_to_ptr.vmem [resolvable:$true] %s718_s8 }
 0x11b   : > { %s6026_s10 = sld [smem:[#allocation59_spill]] }
 0x121   : > { %s4515_s24 = scalar_lea.hbm %s6026_s10, 256 }
 0x122   : > { %p4516_p5 = scmp.ne.s32.totalorder %s6026_s10, %s4515_s24  ;;  %p4522_p3 = scmp.lt.u32.totalorder %s4515_s24, %s6026_s10 }
 0x124   : > { %p4518_p10 = pnand %p4516_p5, %p5058_p0 }
 0x126   : > { %p4519_p2 = pneg %p4518_p10 }
 0x128   : > { %p4524_p4 = pnand %p4522_p3, %p4519_p2 }
 0x12a   : > { %4527 = shalt.err (!%p4524_p4)
}
 0x12b   : > { %s4528_s0 = scalar_lea.vmem %s690_s26, 256  ;;  %p4536_p13 = scmp.lt.s32.totalorder %s690_s26, %s690_s26 }
 0x12c   : > { %p4529_p7 = scmp.ne.s32.totalorder %s690_s26, %s4528_s0  ;;  %p4537_p1 = scmp.lt.s32.totalorder %s4528_s0, %s4528_s0 }
 0x12e   : > { %p4531_p8 = pnand %p4529_p7, %p5058_p0  ;;  %p4538_p6 = por %p4537_p1, %p4536_p13 }
 0x130   : > { %p4532_p11 = pneg %p4531_p8 }
 0x132   : > { %p4539_p9 = pnand %p4538_p6, %p4532_p11 }
 0x134   : > { %4542 = shalt.err (!%p4539_p9)
}
 0x135   : > { %3908 = dma.hbm_to_vmem [thread:$0]  (!%p5042_p12), %s6026_s10, 256, %s690_s26, [#allocation10], %s6024_s1, %s6024_s1, %s6023_s3  }
 0x136   : > { %s4543_s7 = scalar_lea.hbm %s5941_s13, 128 }
 0x137   : > { %p4544_p5 = scmp.ne.s32.totalorder %s5941_s13, %s4543_s7  ;;  %p4550_p3 = scmp.lt.u32.totalorder %s4543_s7, %s5941_s13 }
 0x139   : > { %p4546_p10 = pnand %p4544_p5, %p5058_p0 }
 0x13b   : > { %p4547_p2 = pneg %p4546_p10 }
 0x13d   : > { %p4552_p4 = pnand %p4550_p3, %p4547_p2 }
 0x13f   : > { %4555 = shalt.err (!%p4552_p4)
}
 0x140   : > { %s4556_s11 = scalar_lea.vmem %s719_s8, 128  ;;  %p4564_p13 = scmp.lt.s32.totalorder %s719_s8, %s719_s8 }
 0x141   : > { %p4557_p7 = scmp.ne.s32.totalorder %s719_s8, %s4556_s11  ;;  %p4565_p1 = scmp.lt.s32.totalorder %s4556_s11, %s4556_s11 }
 0x143   : > { %p4559_p8 = pnand %p4557_p7, %p5058_p0  ;;  %p4566_p6 = por %p4565_p1, %p4564_p13 }
 0x145   : > { %p4560_p11 = pneg %p4559_p8 }
 0x147   : > { %p4567_p9 = pnand %p4566_p6, %p4560_p11 }
 0x149   : > { %4570 = shalt.err (!%p4567_p9)
}
 0x14a   : > { %s4824_s3 = smov 64   ;;  %s4825_s1 = smov 4  }
 0x14b   : > { %3914 = dma.hbm_to_vmem [thread:$0]  (!%p5042_p12), %s5941_s13, 128, %s719_s8, [#allocation13], %s4824_s3, %s4824_s3, %s4825_s1  }
 0x14c   : > { %s4826_s12 = smov [#allocation17]   ;;  %s4827_s4 = smov [#allocation20]  }
 0x14d   : > { %s743_s14 = sshll.u32 %s4826_s12, 4  ;;  %s765_s9 = sshll.u32 %s4827_s4, 4  ;;  %s744_s14 = int_to_ptr.vmem [resolvable:$true] %s743_s14  ;;  %s766_s9 = int_to_ptr.vmem [resolvable:$true] %s765_s9 }
 0x14e   : > { %s4571_s23 = scalar_lea.hbm %s5943_s15, 64 }
 0x14f   : > { %p4572_p5 = scmp.ne.s32.totalorder %s5943_s15, %s4571_s23  ;;  %p4578_p3 = scmp.lt.u32.totalorder %s4571_s23, %s5943_s15 }
 0x151   : > { %p4574_p10 = pnand %p4572_p5, %p5058_p0 }
 0x153   : > { %p4575_p2 = pneg %p4574_p10 }
 0x155   : > { %p4580_p4 = pnand %p4578_p3, %p4575_p2 }
 0x157   : > { %4583 = shalt.err (!%p4580_p4)
}
 0x158   : > { %s4584_s8 = scalar_lea.vmem %s744_s14, 64  ;;  %p4592_p13 = scmp.lt.s32.totalorder %s744_s14, %s744_s14 }
 0x159   : > { %p4585_p7 = scmp.ne.s32.totalorder %s744_s14, %s4584_s8  ;;  %p4593_p1 = scmp.lt.s32.totalorder %s4584_s8, %s4584_s8 }
 0x15b   : > { %p4587_p8 = pnand %p4585_p7, %p5058_p0  ;;  %p4594_p6 = por %p4593_p1, %p4592_p13 }
 0x15d   : > { %p4588_p11 = pneg %p4587_p8 }
 0x15f   : > { %p4595_p9 = pnand %p4594_p6, %p4588_p11 }
 0x161   : > { %4598 = shalt.err (!%p4595_p9)
}
 0x162   : > { %3920 = dma.hbm_to_vmem [thread:$0]  (!%p5042_p12), %s5943_s15, 64, %s744_s14, [#allocation16]  }
 0x163   : > { %s4599_s0 = scalar_lea.hbm %s5945_s17, 64 }
 0x164   : > { %p4600_p5 = scmp.ne.s32.totalorder %s5945_s17, %s4599_s0  ;;  %p4606_p3 = scmp.lt.u32.totalorder %s4599_s0, %s5945_s17 }
 0x166   : > { %p4602_p10 = pnand %p4600_p5, %p5058_p0 }
 0x168   : > { %p4603_p2 = pneg %p4602_p10 }
 0x16a   : > { %p4608_p4 = pnand %p4606_p3, %p4603_p2 }
 0x16c   : > { %4611 = shalt.err (!%p4608_p4)
}
 0x16d   : > { %s4612_s23 = scalar_lea.vmem %s766_s9, 64  ;;  %p4620_p13 = scmp.lt.s32.totalorder %s766_s9, %s766_s9 }
 0x16e   : > { %p4613_p7 = scmp.ne.s32.totalorder %s766_s9, %s4612_s23  ;;  %p4621_p1 = scmp.lt.s32.totalorder %s4612_s23, %s4612_s23 }
 0x170   : > { %p4615_p8 = pnand %p4613_p7, %p5058_p0  ;;  %p4622_p6 = por %p4621_p1, %p4620_p13 }
 0x172   : > { %p4616_p11 = pneg %p4615_p8 }
 0x174   : > { %p4623_p9 = pnand %p4622_p6, %p4616_p11 }
 0x176   : > { %4626 = shalt.err (!%p4623_p9)
}
 0x177   : > { %3926 = dma.hbm_to_vmem [thread:$0]  (!%p5042_p12), %s5945_s17, 64, %s766_s9, [#allocation19]  }
 0x178   : > { %s4828_s6 = smov [#allocation23]   ;;  %s4829_s8 = smov [#allocation26]  }
 0x179   : > { %s787_s11 = sshll.u32 %s4828_s6, 4  ;;  %s809_s3 = sshll.u32 %s4829_s8, 4  ;;  %s788_s11 = int_to_ptr.vmem [resolvable:$true] %s787_s11  ;;  %s810_s3 = int_to_ptr.vmem [resolvable:$true] %s809_s3 }
 0x17a   : > { %s4627_s26 = scalar_lea.hbm %s5947_s19, 64 }
 0x17b   : > { %p4628_p5 = scmp.ne.s32.totalorder %s5947_s19, %s4627_s26  ;;  %p4634_p3 = scmp.lt.u32.totalorder %s4627_s26, %s5947_s19 }
 0x17d   : > { %p4630_p10 = pnand %p4628_p5, %p5058_p0 }
 0x17f   : > { %p4631_p2 = pneg %p4630_p10 }
 0x181   : > { %p4636_p4 = pnand %p4634_p3, %p4631_p2 }
 0x183   : > { %4639 = shalt.err (!%p4636_p4)
}
 0x184   : > { %s4640_s9 = scalar_lea.vmem %s788_s11, 64  ;;  %p4648_p13 = scmp.lt.s32.totalorder %s788_s11, %s788_s11 }
 0x185   : > { %p4641_p7 = scmp.ne.s32.totalorder %s788_s11, %s4640_s9  ;;  %p4649_p1 = scmp.lt.s32.totalorder %s4640_s9, %s4640_s9 }
 0x187   : > { %p4643_p8 = pnand %p4641_p7, %p5058_p0  ;;  %p4650_p6 = por %p4649_p1, %p4648_p13 }
 0x189   : > { %p4644_p11 = pneg %p4643_p8 }
 0x18b   : > { %p4651_p9 = pnand %p4650_p6, %p4644_p11 }
 0x18d   : > { %4654 = shalt.err (!%p4651_p9)
}
 0x18e   : > { %3932 = dma.hbm_to_vmem [thread:$0]  (!%p5042_p12), %s5947_s19, 64, %s788_s11, [#allocation22]  }
 0x18f   : > { %s4655_s6 = scalar_lea.hbm %s5949_s21, 64 }
 0x190   : > { %p4656_p5 = scmp.ne.s32.totalorder %s5949_s21, %s4655_s6  ;;  %p4662_p3 = scmp.lt.u32.totalorder %s4655_s6, %s5949_s21 }
 0x192   : > { %p4658_p10 = pnand %p4656_p5, %p5058_p0 }
 0x194   : > { %p4659_p2 = pneg %p4658_p10 }
 0x196   : > { %p4664_p4 = pnand %p4662_p3, %p4659_p2 }
 0x198   : > { %4667 = shalt.err (!%p4664_p4)
}
 0x199   : > { %s4668_s0 = scalar_lea.vmem %s810_s3, 64  ;;  %p4676_p13 = scmp.lt.s32.totalorder %s810_s3, %s810_s3 }
 0x19a   : > { %p4669_p7 = scmp.ne.s32.totalorder %s810_s3, %s4668_s0  ;;  %p4677_p1 = scmp.lt.s32.totalorder %s4668_s0, %s4668_s0 }
 0x19c   : > { %p4671_p8 = pnand %p4669_p7, %p5058_p0  ;;  %p4678_p6 = por %p4677_p1, %p4676_p13 }
 0x19e   : > { %p4672_p11 = pneg %p4671_p8 }
 0x1a0   : > { %p4679_p9 = pnand %p4678_p6, %p4672_p11 }
 0x1a2   : > { %4682 = shalt.err (!%p4679_p9)
}
 0x1a3   : > { %3938 = dma.hbm_to_vmem [thread:$0]  (!%p5042_p12), %s5949_s21, 64, %s810_s3, [#allocation25]  }
 0x1a4   : > { %s4830_s4 = smov [#allocation27]   ;;  %s4683_s23 = scalar_lea.hbm %s5950_s22, 128 }
 0x1a5   : > { %s820_s7 = sshll.u32 %s4830_s4, 4  ;;  %p4684_p5 = scmp.ne.s32.totalorder %s5950_s22, %s4683_s23  ;;  %s821_s7 = int_to_ptr.vmem [resolvable:$true] %s820_s7 }
 0x1a6   : > { %p4690_p3 = scmp.lt.u32.totalorder %s4683_s23, %s5950_s22 }
 0x1a7   : > { %p4686_p10 = pnand %p4684_p5, %p5058_p0 }
 0x1a9   : > { %p4687_p2 = pneg %p4686_p10 }
 0x1ab   : > { %p4692_p4 = pnand %p4690_p3, %p4687_p2 }
 0x1ad   : > { %4695 = shalt.err (!%p4692_p4)
}
 0x1ae   : > { %s4696_s3 = scalar_lea.vmem %s821_s7, 128  ;;  %p4704_p13 = scmp.lt.s32.totalorder %s821_s7, %s821_s7 }
 0x1af   : > { %p4697_p7 = scmp.ne.s32.totalorder %s821_s7, %s4696_s3  ;;  %p4705_p1 = scmp.lt.s32.totalorder %s4696_s3, %s4696_s3 }
 0x1b1   : > { %p4699_p8 = pnand %p4697_p7, %p5058_p0  ;;  %p4706_p6 = por %p4705_p1, %p4704_p13 }
 0x1b3   : > { %p4700_p11 = pneg %p4699_p8 }
 0x1b5   : > { %p4707_p9 = pnand %p4706_p6, %p4700_p11 }
 0x1b7   : > { %4710 = shalt.err (!%p4707_p9)
}
 0x1b8   : > { %3941 = dma.hbm_to_vmem [thread:$0]  (!%p5042_p12), %s5950_s22, 128, %s821_s7, [#allocation28]  }
 0x1b9   : > { %p6027_p5 = scmp.ne.s32.totalorder %s6014_s5, 0 }
 0x1ba   : > { %s6028_s26 = sld [smem:[#allocation44_spill]] (!%p6027_p5) }
 0x1bb   : > { %846 = sbr.rel (%p6027_p5) target bundleno = 5199 (0x144f), region = 120 }
 0x1c0   : > { %p6029_p10 = scmp.eq.s32.totalorder (!%p6027_p5), %s6028_s26, 0 }
 0x1c2   : > { %4756 = dma.done.wait (%p6029_p10), [#allocation4], 512   ;;  %p6030_p0 = pmov %p6029_p10 }
 0x1c4   : > { %4758 = vsyncadd (%p6030_p0), [#allocation4], 4294966784  ;;  %p6031_p2 = pmov %p6030_p0 }
 0x1c5   : > { %p6032_p3 = pmov %p6030_p0 }
 0x1c6   : > { %4760 = dma.done.wait (%p6031_p2), [#allocation7], 512  }
 0x1c7   : > { %4762 = vsyncadd (%p6032_p3), [#allocation7], 4294966784  ;;  %p6033_p4 = pmov %p6030_p0 }
 0x1c8   : > { %p6034_p12 = pmov %p6030_p0 }
 0x1c9   : > { %4764 = dma.done.wait (%p6033_p4), [#allocation10], 512  }
 0x1ca   : > { %4766 = vsyncadd (%p6034_p12), [#allocation10], 4294966784  ;;  %p6035_p7 = pmov %p6030_p0 }
 0x1cb   : > { %p6036_p8 = pmov %p6030_p0 }
 0x1cc   : > { %4768 = dma.done.wait (%p6035_p7), [#allocation13], 384  }
 0x1cd   : > { %4770 = vsyncadd (%p6036_p8), [#allocation13], 4294966912  ;;  %p6037_p11 = pmov %p6030_p0 }
 0x1ce   : > { %p6038_p13 = pmov %p6030_p0 }
 0x1cf   : > { %4772 = dma.done.wait (%p6037_p11), [#allocation16], 192  }
 0x1d0   : > { %4774 = vsyncadd (%p6038_p13), [#allocation16], 4294967104  ;;  %p6039_p1 = pmov %p6030_p0 }
 0x1d1   : > { %p6040_p6 = pmov %p6030_p0 }
 0x1d2   : > { %4776 = dma.done.wait (%p6039_p1), [#allocation19], 192  }
 0x1d3   : > { %4778 = vsyncadd (%p6040_p6), [#allocation19], 4294967104  ;;  %p6041_p9 = pmov %p6030_p0 }
 0x1d4   : > { %p6042_p5 = pmov %p6030_p0 }
 0x1d5   : > { %4780 = dma.done.wait (%p6041_p9), [#allocation22], 192  }
 0x1d6   : > { %4782 = vsyncadd (%p6042_p5), [#allocation22], 4294967104  ;;  %p6043_p10 = pmov %p6030_p0 }
 0x1d8   : > { %4784 = dma.done.wait (%p6043_p10), [#allocation25], 192  }
 0x1d9   : > { %4786 = vsyncadd (%p6030_p0), [#allocation25], 4294967104  ;;  %p6044_p2 = pmov %p6030_p0 }
 0x1da   : > { %p6045_p3 = pmov %p6030_p0 }
 0x1db   : > { %4788 = dma.done.wait (%p6044_p2), [#allocation28], 128  }
 0x1dc   : > { %4790 = vsyncadd (%p6045_p3), [#allocation28], 4294967168  ;;  %p972_p4 = scmp.lt.s32.totalorder %s6028_s26, 1  ;;  %s6046_s11 = sld [smem:[#allocation49_spill]]  ;;  %vm5982_vm0 = vcmask 23552   ;;  %vm984_vm1 = vcmask 154624  }
 0x1dd   : > { %s4831_s4 = smov 3   ;;  %s4832_s7 = smov 126   ;;  %vm5980_vm2 = vcmask 457728   ;;  %v4836_v6 = vmov 0   ;;  %v1013_v7 = vld [vmem:[#allocation3] sm:$0xff]  ;;  %v1014_v8 = vld [vmem:[#allocation3 + $0x8] sm:$0xff] }
 0x1de   : > { %s973_s25 = scalar_select %p972_p4, %s6028_s26, 1  ;;  %4049 = vset.pattern.permute.xlu1 %v4836_v6  ;;  %4050 = vset.pattern.permute.xlu0 %v4836_v6  ;;  %v1015_v9 = vld [vmem:[#allocation3 + $0x10] sm:$0xff]  ;;  %v1016_v10 = vld [vmem:[#allocation3 + $0x18] sm:$0xff]  ;;  %vm5984_vm3 = vmmov 1   ;;  %vm5983_vm5 = vcmask 1043456   ;;  %v4841_v45 = vmov 0.0  }
 0x1df   : > { %s4833_s9 = smov 127   ;;  %s6047_s14 = sld [smem:[#allocation50_spill]]  ;;  %vm3290_vm4 = vmpackc.low %vm5984_vm3, %vm984_vm1  ;;  %3534 = vmatprep.subr.bf16.mxu1 %v4841_v45  ;;  %vm1135_vm10 = vcmask 7168   ;;  %vm1140_vm11 = vcmask 138240   ;;  %vm4842_vm12 = vmmov 0  }
 0x1e0   : > { %s3287_s5 = sshll.u32 %s973_s25, 3  ;;  %s4834_s24 = smov 125   ;;  %3542 = vmatprep.mubr.msk.bf16.mxu1 %vm4842_vm12, %v4841_v45 }
 0x1e1   : > { %s4835_s6 = smov 124   ;;  %s4837_s8 = smov 123  }
 0x1e2   : > { %s975_s12 = scalar_lea.vmem %s6046_s11, %s3287_s5  ;;  %s4838_s3 = smov 122  }
 0x1e3   : > { %v977_v1 = vld [vmem:[%s975_s12] sm:$0xff]  ;;  %s4840_s25 = smov 1   ;;  %s6048_s0 = sld [smem:[#allocation52_spill]] }
 0x1e4   : > { %979 = vrot.lane.b32.xlu0 %v977_v1, %s4831_s4  ;;  %s4844_s5 = smov 2   ;;  %s6051_s12 = sld [smem:[#allocation54_spill]] }
 0x1e5   : > { %v4251_v5 = vld [vmem:[%s6047_s14] sm:$0xff]   ;;  %v4252_v22 = vld [vmem:[%s6047_s14 + $0x8] sm:$0xff]   ;;  %s6052_s1 = sld [smem:[#allocation58_spill]]  ;;  %s4845_s10 = smov 6  }
 0x1e6   : > { %3530 = vmatprep.mubr.msk.bf16.mxu0 %vm5980_vm2, %v4251_v5  ;;  %s4846_s2 = smov 116   ;;  %s4847_s11 = smov 119  }
 0x1e7   : > { %s6053_s23 = sld [smem:[#allocation56_spill]]  ;;  %s6054_s30 = sld [smem:[#allocation60_spill]] }
 0x256   : > { %v980_v2 = vpop.permute.xlu0 %979 }
 0x257   : > { %v983_v3 = vsel %vm5982_vm0, 0.0, %v980_v2 }
 0x258   : > { %v985_v4 = vsel %vm984_vm1, %v983_v3, 0.0  ;;  %vm1193_vm1 = vcmask 523264  }
 0x259   : > { %990 = vrot.lane.b32.xlu1 %v985_v4, %s4832_s7  ;;  %987 = vrot.lane.b32.xlu0 %v985_v4, %s4833_s9 }
 0x25d   : > { %993 = vrot.lane.b32.xlu1 %v985_v4, %s4834_s24  ;;  %996 = vrot.lane.b32.xlu0 %v985_v4, %s4835_s6 }
 0x261   : > { %999 = vrot.lane.b32.xlu1 %v985_v4, %s4837_s8  ;;  %1002 = vrot.lane.b32.xlu0 %v985_v4, %s4838_s3 }
 0x265   : > { %1019 = vperm.xlu1 %4049, %v1013_v7   ;;  %1024 = vperm.xlu0 %4050, %v1014_v8  }
 0x269   : > { %1029 = vperm.xlu1 %4049, %v1015_v9  }
 0x26d   : > { %1034 = vperm.xlu1 %4049, %v1016_v10   ;;  %v1768_v10 = vld [vmem:[#allocation6 + $0x8] sm:$0xff] }
 0x2cb   : > { %v991_v11 = vpop.permute.xlu1 %990  ;;  %v988_v12 = vpop.permute.xlu0 %987 }
 0x2cc   : > { %v3291_v13 = vpack.c.bf16 %v988_v12, %v983_v3  ;;  %v1145_v12 = vlaneseq }
 0x2ce   : > { %3522 = vmatprep.subr.msk.bf16.mxu0 %vm3290_vm4, %v3291_v13 }
 0x2cf   : > { %v994_v14 = vpop.permute.xlu1 %993  ;;  %3523 = vmatpush3.bf16.msk.msra.mxu0 %vm3290_vm4, %v3291_v13  ;;  %v997_v15 = vpop.permute.xlu0 %996  ;;  %v5463_v13 = vshrl.u32 %v1145_v12, 7 }
 0x2d0   : > { %v1006_v16 = vpack.c.bf16 %v994_v14, %v991_v11  ;;  %v1767_v11 = vld [vmem:[#allocation6] sm:$0xff] }
 0x2d1   : > { %v5466_v14 = vadd.s32 8, %v5463_v13 }
 0x2d2   : > { %3524 = vmatprep.subr.bf16.mxu0 %v1006_v16 }
 0x2d3   : > { %v1000_v17 = vpop.permute.xlu1 %999  ;;  %3525 = vmatpush3.bf16.msra.mxu0 %v1006_v16  ;;  %v1003_v18 = vpop.permute.xlu0 %1002  ;;  %v5472_v16 = vmul.u32 4, %v5466_v14 }
 0x2d4   : > { %v1007_v19 = vpack.c.bf16 %v1000_v17, %v997_v15  ;;  %v1008_v20 = vpack.c.bf16 %v1003_v18, %v1003_v18  ;;  %v5469_v15 = vmul.u32 4, %v5463_v13  ;;  %v5474_v17 = vand.u32 127, %v1145_v12 }
 0x2d6   : > { %3526 = vmatprep.subr.bf16.mxu0 %v1007_v19  ;;  %v1056_v21 = vsel %vm5983_vm5, %v1008_v20, 0  ;;  %v1298_v18 = vadd.s32 1, %v5469_v15  ;;  %vm1240_vm4 = vcmp.eq.s32.totalorder %v5474_v17, %v5469_v15 }
 0x2d7   : > { %3527 = vmatpush3.bf16.msra.mxu0 %v1007_v19  ;;  %v1299_v19 = vadd.s32 1, %v5472_v16 }
 0x2d8   : > { %3826 = vmatprep.subr.msk.bf16.mxu0 %vm5983_vm5, %v1008_v20  ;;  %vm1300_vm13 = vcmp.eq.s32.totalorder %v5474_v17, %v1298_v18 }
 0x2d9   : > { %vm1301_vm14 = vcmp.eq.s32.totalorder %v5474_v17, %v1299_v19 }
 0x2da   : > { %vm3760_vm15 = vmpackc.low %vm1301_vm14, %vm1300_vm13 }
 0x2db   : > { %3529 = vmatpush3.bf16.msra.mxu0 %v1056_v21 }
 0x2dc   : > { %3546 = vmatprep.subr.bf16.mxu0 %v4841_v45 }
 0x2de   : > { %3531 = vmatmul.mubr.msk.bf16.vlgmr.msra.gmra.mrb[0].mxu0 %vm5980_vm2, %v4252_v22  ;;  %v4253_v22 = vld [vmem:[%s6048_s0 + $0x8] sm:$0xff]  }
 0x2df   : > { %3554 = vmatprep.mubr.msk.bf16.mxu0 %vm4842_vm12, %v4841_v45 }
 0x2e4   : > { %v1020_v23 = vpop.permute.xlu1 %1019  ;;  %v1025_v28 = vpop.permute.xlu0 %1024 }
 0x2e8   : > { %v1030_v24 = vpop.permute.xlu1 %1029 }
 0x2ec   : > { %v1035_v29 = vpop.permute.xlu1 %1034 }
 0x3b1   : > { %v3532_v25 = vpop.f32.mrb[0].mxu0 }
 0x3b2   : > { %v1101_v26 = vadd.f32 %v3532_v25, %v1030_v24  ;;  %v1092_v27 = vpop.f32.mrb[1].mxu0  ;;  %v4843_v24 = vmov 1.0|1.0  }
 0x3b3   : > { %v1093_v30 = vadd.f32 %v1092_v27, %v1020_v23  ;;  %v3533_v31 = vpop.f32.mrb[2].mxu0  ;;  %v4254_v23 = vld [vmem:[%s6048_s0] sm:$0xff]  }
 0x3b4   : > { %v1113_v32 = vmul.f32 0.1, %v1101_v26  ;;  %v1104_v33 = vadd.f32 %v3533_v31, %v1035_v29  ;;  %v1095_v34 = vpop.f32.mrb[3].mxu0  ;;  %vm1109_vm6 = vcmp.ge.f32.partialorder %v1101_v26, 0.0 }
 0x3b5   : > { %v1111_v35 = vmul.f32 0.1, %v1093_v30  ;;  %v1096_v36 = vadd.f32 %v1095_v34, %v1025_v28  ;;  %vm1107_vm7 = vcmp.ge.f32.partialorder %v1093_v30, 0.0 }
 0x3b6   : > { %vm1110_vm8 = vcmp.ge.f32.partialorder %v1104_v33, 0.0  ;;  %v1114_v37 = vmul.f32 0.1, %v1104_v33  ;;  %v1117_v39 = vsel %vm1109_vm6, %v1101_v26, %v1113_v32  ;;  %vm1241_vm6 = vcmp.eq.s32.totalorder %v5474_v17, %v5472_v16 }
 0x3b7   : > { %vm1108_vm9 = vcmp.ge.f32.partialorder %v1096_v36, 0.0  ;;  %v1112_v38 = vmul.f32 0.1, %v1096_v36  ;;  %v1115_v42 = vsel %vm1107_vm7, %v1093_v30, %v1111_v35  ;;  %vm5503_vm7 = vmpackc.low %vm1241_vm6, %vm1240_vm4  ;;  %v4256_v30 = vld [vmem:[%s6048_s0 + $0x18] sm:$0xff]  }
 0x3b8   : > { %v1118_v40 = vsel %vm1110_vm8, %v1104_v33, %v1114_v37  ;;  %vm1306_vm8 = vcmask 130048  }
 0x3b9   : > { %v4056_v41 = vpack.i.bf16 %v1118_v40, %v1117_v39  ;;  %v1116_v43 = vsel %vm1108_vm9, %v1096_v36, %v1112_v38  ;;  %v1533_v39 = vadd.s32 2, %v5469_v15  ;;  %v1534_v40 = vadd.s32 2, %v5472_v16 }
 0x3ba   : > { %v4051_v44 = vpack.i.bf16 %v1116_v43, %v1115_v42  ;;  %v1676_v42 = vadd.s32 3, %v5469_v15  ;;  %v1677_v43 = vadd.s32 3, %v5472_v16 }
 0x3bb   : > { %4057 = vrot.lane.b32.xlu1 %v4056_v41, %s4840_s25  ;;  %vm1535_vm9 = vcmp.eq.s32.totalorder %v5474_v17, %v1533_v39  ;;  %v4255_v41 = vld [vmem:[%s6048_s0 + $0x10] sm:$0xff]  }
 0x3bc   : > { %4052 = vrot.lane.b32.xlu0 %v4051_v44, %s4840_s25  ;;  %vm1678_vm14 = vcmp.eq.s32.totalorder %v5474_v17, %v1676_v42 }
 0x42d   : > { %v4058_v46 = vpop.permute.xlu1 %4057 }
 0x42e   : > { %v4060_v47 = vunpack.i.h.bf16 %v4058_v46  ;;  %v4059_v48 = vunpack.i.l.bf16 %v4058_v46  ;;  %v4053_v49 = vpop.permute.xlu0 %4052 }
 0x42f   : > { %v4055_v50 = vunpack.i.h.bf16 %v4053_v49  ;;  %v4054_v51 = vunpack.i.l.bf16 %v4053_v49 }
 0x430   : > { %v1139_v52 = vsel %vm1135_vm10, 0.0, %v4060_v47  ;;  %v1138_v53 = vsel %vm1135_vm10, 0.0, %v4059_v48 }
 0x431   : > { %v1144_v54 = vsel %vm1140_vm11, %v1139_v52, 0.0  ;;  %v1143_v55 = vsel %vm1140_vm11, %v1138_v53, 0.0  ;;  %v1137_v56 = vsel %vm1135_vm10, 0.0, %v4055_v50  ;;  %v1136_v57 = vsel %vm1135_vm10, 0.0, %v4054_v51 }
 0x432   : > { %v1142_v58 = vsel %vm1140_vm11, %v1137_v56, 0.0  ;;  %v1141_v59 = vsel %vm1140_vm11, %v1136_v57, 0.0  ;;  %v4066_v60 = vpack.i.bf16 %v1144_v54, %v1143_v55  ;;  %v1167_v62 = vpack.c.bf16 %v1144_v54, %v1143_v55 }
 0x433   : > { %v4061_v61 = vpack.i.bf16 %v1142_v58, %v1141_v59  ;;  %v1166_v63 = vpack.c.bf16 %v1142_v58, %v1141_v59  ;;  %vm1536_vm11 = vcmp.eq.s32.totalorder %v5474_v17, %v1534_v40 }
 0x434   : > { %4067 = vrot.lane.b32.xlu1 %v4066_v60, %s4840_s25  ;;  %vm3768_vm13 = vmpackc.low %vm1536_vm11, %vm1535_vm9  ;;  %vm1797_vm9 = vcmask 531456   ;;  %vm1993_vm11 = vcmask 539648  }
 0x435   : > { %4062 = vrot.lane.b32.xlu0 %v4061_v61, %s4840_s25 }
 0x438   : > { %1183 = vrot.lane.b32.xlu1 %v1167_v62, %s4833_s9 }
 0x439   : > { %1181 = vrot.lane.b32.xlu0 %v1166_v63, %s4833_s9 }
 0x4a6   : > { %v4068_v0 = vpop.permute.xlu1 %4067 }
 0x4a7   : > { %v4070_v1 = vunpack.i.h.bf16 %v4068_v0  ;;  %v4069_v2 = vunpack.i.l.bf16 %v4068_v0  ;;  %v4063_v3 = vpop.permute.xlu0 %4062 }
 0x4a8   : > { %v4065_v4 = vunpack.i.h.bf16 %v4063_v3  ;;  %v4064_v5 = vunpack.i.l.bf16 %v4063_v3 }
 0x4a9   : > { %v1169_v6 = vpack.c.bf16 %v4070_v1, %v4069_v2 }
 0x4aa   : > { %v1168_v7 = vpack.c.bf16 %v4065_v4, %v4064_v5  ;;  %v1184_v9 = vpop.permute.xlu1 %1183 }
 0x4ab   : > { %1187 = vrot.lane.b32.xlu1 %v1169_v6, %s4833_s9  ;;  %v1182_v8 = vpop.permute.xlu0 %1181 }
 0x4ac   : > { %1185 = vrot.lane.b32.xlu0 %v1168_v7, %s4833_s9  ;;  %3535 = vmatpush3.bf16.msra.mxu1 %v1182_v8 }
 0x4ad   : > { %3547 = vmatpush3.bf16.msra.mxu0 %v1182_v8  ;;  %3536 = vmatprep.subr.bf16.mxu1 %v4841_v45 }
 0x4ae   : > { %3548 = vmatprep.subr.bf16.mxu0 %v4841_v45 }
 0x4af   : > { %1479 = vrot.lane.b32.xlu1 %v1167_v62, %s4832_s7 }
 0x4b0   : > { %1477 = vrot.lane.b32.xlu0 %v1166_v63, %s4832_s7  ;;  %3537 = vmatpush3.bf16.msra.mxu1 %v1184_v9 }
 0x4b1   : > { %3549 = vmatpush3.bf16.msra.mxu0 %v1184_v9  ;;  %3538 = vmatprep.subr.bf16.mxu1 %v4841_v45 }
 0x4b2   : > { %3550 = vmatprep.subr.bf16.mxu0 %v4841_v45 }
 0x4b3   : > { %1483 = vrot.lane.b32.xlu1 %v1169_v6, %s4832_s7 }
 0x4b4   : > { %1481 = vrot.lane.b32.xlu0 %v1168_v7, %s4832_s7 }
 0x4b7   : > { %1776 = vperm.xlu1 %4049, %v1768_v10  }
 0x4b8   : > { %1771 = vperm.xlu0 %4050, %v1767_v11  }
 0x51d   : > { %v1188_v21 = vpop.permute.xlu1 %1187 }
 0x51e   : > { %v1186_v20 = vpop.permute.xlu0 %1185 }
 0x51f   : > { %3539 = vmatpush3.bf16.msra.mxu1 %v1186_v20  ;;  %3551 = vmatpush3.bf16.msra.mxu0 %v1186_v20 }
 0x520   : > { %3540 = vmatprep.subr.bf16.mxu1 %v4841_v45  ;;  %3552 = vmatprep.subr.bf16.mxu0 %v4841_v45 }
 0x521   : > { %v1480_v26 = vpop.permute.xlu1 %1479 }
 0x522   : > { %v1478_v25 = vpop.permute.xlu0 %1477 }
 0x523   : > { %3541 = vmatpush3.bf16.msra.mxu1 %v1188_v21  ;;  %3553 = vmatpush3.bf16.msra.mxu0 %v1188_v21  ;;  %v1820_v21 = vld [vmem:[#allocation8 + $0x8] sm:$0xff] }
 0x524   : > { %3591 = vmatprep.subr.bf16.mxu0 %v4841_v45  ;;  %3761 = vmatprep.subr.msk.bf16.mxu1 %vm3760_vm15, %v4843_v24 }
 0x525   : > { %v1484_v28 = vpop.permute.xlu1 %1483 }
 0x526   : > { %3555 = vmatmul.mubr.msk.bf16.vlgmr.msra.gmra.mrb[4].mxu0 %vm1193_vm1, %v4253_v22  ;;  %3543 = vmatmul.mubr.msk.bf16.vlgmr.msra.gmra.mrb[0].mxu1 %vm1193_vm1, %v4254_v23  ;;  %v1482_v27 = vpop.permute.xlu0 %1481  ;;  %v1819_v22 = vld [vmem:[#allocation8] sm:$0xff]  ;;  %v2030_v23 = vld [vmem:[#allocation11 + $0x8] sm:$0xff] }
 0x527   : > { %3592 = vmatpush3.bf16.msra.mxu0 %v1478_v25  ;;  %3763 = vmatpush3.bf16.msk.msra.mxu1 %vm3760_vm15, %v4843_v24  ;;  %vm1679_vm15 = vcmp.eq.s32.totalorder %v5474_v17, %v1677_v43 }
 0x528   : > { %3593 = vmatprep.subr.bf16.mxu0 %v4841_v45  ;;  %3599 = vmatprep.mubr.msk.bf16.mxu0 %vm4842_vm12, %v4841_v45  ;;  %vm3772_vm4 = vmpackc.low %vm1679_vm15, %vm1678_vm14  ;;  %vm1836_vm14 = vcmask 392192  }
 0x529   : > { %3765 = vmatprep.subr.msk.bf16.mxu1 %vm5503_vm7, %v4843_v24  ;;  %vm3344_vm15 = vmpackc.low %vm1993_vm11, %vm1993_vm11 }
 0x52b   : > { %3594 = vmatpush3.bf16.msra.mxu0 %v1480_v26 }
 0x52c   : > { %3595 = vmatprep.subr.bf16.mxu0 %v4841_v45 }
 0x52f   : > { %3596 = vmatpush3.bf16.msra.mxu0 %v1482_v27 }
 0x530   : > { %3597 = vmatprep.subr.bf16.mxu0 %v4841_v45 }
 0x533   : > { %3598 = vmatpush3.bf16.msra.mxu0 %v1484_v28 }
 0x534   : > { %3610 = vmatprep.subr.bf16.mxu0 %v4841_v45 }
 0x536   : > { %3600 = vmatmul.mubr.msk.bf16.vlgmr.msra.gmra.mrb[8].mxu0 %vm1193_vm1, %v4256_v30  ;;  %v1777_v53 = vpop.permute.xlu1 %1776 }
 0x537   : > { %3616 = vmatprep.mubr.msk.bf16.mxu0 %vm4842_vm12, %v4841_v45  ;;  %v1772_v55 = vpop.permute.xlu0 %1771 }
 0x5f9   : > { %v1291_v31 = vpop.f32.mrb[4].mxu0  ;;  %v1231_v32 = vpop.f32.mrb[0].mxu1 }
 0x5fa   : > { %v3556_v33 = vpop.f32.mrb[5].mxu0  ;;  %3562 = vmatprep.mubr.msk.f32.mxu1 %vm1306_vm8, %v1291_v31  ;;  %v3544_v34 = vpop.f32.mrb[1].mxu1 }
 0x5fb   : > { %v1294_v35 = vpop.f32.mrb[6].mxu0  ;;  %v1234_v36 = vpop.f32.mrb[2].mxu1 }
 0x5fc   : > { %v3557_v37 = vpop.f32.mrb[7].mxu0  ;;  %3563 = vmatmul.mubr.msk.f32.vlgmr.msra.gmra.mrb[4].mxu1 %vm1306_vm8, %v1294_v35  ;;  %v3545_v38 = vpop.f32.mrb[3].mxu1  ;;  %v4257_v35 = vld [vmem:[%s6051_s12] sm:$0xff]  }
 0x5fd   : > { %3767 = vmatpush3.bf16.msk.msra.mxu1 %vm5503_vm7, %v4843_v24  ;;  %3569 = vmatprep.mubr.msk.f32.mxu1 %vm1306_vm8, %v1231_v32 }
 0x5fe   : > { %3572 = vmatprep.subr.bf16.mxu1 %v4841_v45 }
 0x604   : > { %3570 = vmatmul.mubr.msk.f32.vlgmr.msra.gmra.mrb[4].mxu1 %vm1306_vm8, %v1234_v36 }
 0x605   : > { %3573 = vmatpush3.bf16.msra.mxu1 %v1478_v25  ;;  %3580 = vmatprep.mubr.msk.bf16.mxu1 %vm4842_vm12, %v4841_v45  ;;  %v2029_v25 = vld [vmem:[#allocation11] sm:$0xff] }
 0x606   : > { %3574 = vmatprep.subr.bf16.mxu1 %v4841_v45 }
 0x609   : > { %3575 = vmatpush3.bf16.msra.mxu1 %v1480_v26  ;;  %v1669_v44 = vpop.f32.mrb[8].mxu0 }
 0x60a   : > { %3576 = vmatprep.subr.bf16.mxu1 %v4841_v45  ;;  %v3601_v46 = vpop.f32.mrb[9].mxu0 }
 0x60b   : > { %v1672_v47 = vpop.f32.mrb[10].mxu0 }
 0x60c   : > { %v3602_v48 = vpop.f32.mrb[11].mxu0 }
 0x60d   : > { %3577 = vmatpush3.bf16.msra.mxu1 %v1482_v27 }
 0x60e   : > { %3578 = vmatprep.subr.bf16.mxu1 %v4841_v45 }
 0x611   : > { %3579 = vmatpush3.bf16.msra.mxu1 %v1484_v28 }
 0x612   : > { %3769 = vmatprep.subr.msk.bf16.mxu1 %vm3768_vm13, %v4843_v24 }
 0x614   : > { %3581 = vmatmul.mubr.msk.bf16.vlgmr.msra.gmra.mrb[8].mxu1 %vm1193_vm1, %v4255_v41 }
 0x615   : > { %3771 = vmatpush3.bf16.msk.msra.mxu1 %vm3768_vm13, %v4843_v24  ;;  %vm3334_vm13 = vmpackc.low %vm1797_vm9, %vm1797_vm9 }
 0x616   : > { %3773 = vmatprep.subr.msk.bf16.mxu1 %vm3772_vm4, %v4843_v24 }
 0x6e7   : > { %v1526_v49 = vpop.f32.mrb[8].mxu1 }
 0x6e8   : > { %v3582_v50 = vpop.f32.mrb[9].mxu1  ;;  %3588 = vmatprep.mubr.msk.f32.mxu1 %vm1306_vm8, %v1526_v49 }
 0x6e9   : > { %v1529_v51 = vpop.f32.mrb[10].mxu1 }
 0x6ea   : > { %v3583_v52 = vpop.f32.mrb[11].mxu1  ;;  %3589 = vmatmul.mubr.msk.f32.vlgmr.msra.gmra.mrb[4].mxu1 %vm1306_vm8, %v1529_v51 }
 0x6eb   : > { %3775 = vmatpush3.bf16.msk.msra.mxu1 %vm3772_vm4, %v4843_v24  ;;  %3607 = vmatprep.mubr.msk.f32.mxu1 %vm1306_vm8, %v1669_v44  ;;  %v4258_v52 = vld [vmem:[%s6052_s1] sm:$0xff]   ;;  %vm2046_vm4 = vcmask 654336  }
 0x6ec   : > { %3620 = vmatprep.subr.bf16.mxu1 %v4841_v45 }
 0x6f2   : > { %3608 = vmatmul.mubr.msk.f32.vlgmr.msra.gmra.mrb[4].mxu1 %vm1306_vm8, %v1672_v47  ;;  %vm5986_vm8 = vcmask 15360  }
 0x6f3   : > { %3626 = vmatprep.mubr.msk.bf16.mxu1 %vm4842_vm12, %v4841_v45 }
 0x7c5   : > { %v3609_v54 = vpop.f32.mrb[4].mxu1 }
 0x7c6   : > { %v5552_v56 = vadd.f32 %v3609_v54, %v1777_v53  ;;  %v1756_v57 = vpop.f32.mrb[5].mxu1 }
 0x7c7   : > { %v5554_v58 = vadd.f32 %v1772_v55, %v1756_v57 }
 0x7c8   : > { %vm1782_vm6 = vcmp.ge.f32.partialorder %v5552_v56, 0.0  ;;  %v1784_v59 = vmul.f32 0.1, %v5552_v56 }
 0x7c9   : > { %vm1781_vm7 = vcmp.ge.f32.partialorder %v5554_v58, 0.0  ;;  %v1783_v60 = vmul.f32 0.1, %v5554_v58 }
 0x7ca   : > { %v1786_v61 = vsel %vm1782_vm6, %v5552_v56, %v1784_v59 }
 0x7cb   : > { %v1785_v62 = vsel %vm1781_vm7, %v5554_v58, %v1783_v60 }
 0x7cc   : > { %v4076_v63 = vpack.i.bf16 %v1786_v61, %v1785_v62 }
 0x7ce   : > { %4077 = vrot.lane.b32.xlu1 %v4076_v63, %s4844_s5  ;;  %4072 = vrot.lane.b32.xlu0 %v4076_v63, %s4840_s25 }
 0x840   : > { %v4078_v0 = vpop.permute.xlu1 %4077  ;;  %v4073_v1 = vpop.permute.xlu0 %4072 }
 0x841   : > { %v4080_v2 = vunpack.i.h.bf16 %v4078_v0  ;;  %v4079_v3 = vunpack.i.l.bf16 %v4078_v0  ;;  %v4075_v4 = vunpack.i.h.bf16 %v4073_v1  ;;  %v4074_v5 = vunpack.i.l.bf16 %v4073_v1 }
 0x843   : > { %v1992_v6 = vsel %vm5986_vm8, 0.0, %v4080_v2  ;;  %v1991_v7 = vsel %vm5986_vm8, 0.0, %v4079_v3  ;;  %v1796_v8 = vsel %vm1135_vm10, 0.0, %v4075_v4  ;;  %v1795_v9 = vsel %vm1135_vm10, 0.0, %v4074_v5 }
 0x844   : > { %v3345_v10 = vpack.c.bf16 %v1992_v6, %v1991_v7  ;;  %v1799_v11 = vsel %vm1797_vm9, %v1796_v8, 0.0  ;;  %v1798_v12 = vsel %vm1797_vm9, %v1795_v9, 0.0  ;;  %v3335_v15 = vpack.c.bf16 %v1796_v8, %v1795_v9 }
 0x845   : > { %v4086_v16 = vpack.i.bf16 %v1799_v11, %v1798_v12  ;;  %v1995_v18 = vsel %vm1993_vm11, %v1992_v6, 0.0  ;;  %v1994_v19 = vsel %vm1993_vm11, %v1991_v7, 0.0  ;;  %vm2256_vm8 = vcmask 261120  }
 0x846   : > { %3611 = vmatpush3.bf16.msk.msra.mxu0 %vm3334_vm13, %v3335_v15  ;;  %v4096_v20 = vpack.i.bf16 %v1995_v18, %v1994_v19 }
 0x847   : > { %4087 = vrot.lane.b32.xlu1 %v4086_v16, %s4832_s7  ;;  %4082 = vrot.lane.b32.xlu0 %v4086_v16, %s4833_s9 }
 0x848   : > { %3612 = vmatprep.subr.bf16.mxu0 %v4841_v45 }
 0x84b   : > { %4097 = vrot.lane.b32.xlu1 %v4096_v20, %s4832_s7  ;;  %4092 = vrot.lane.b32.xlu0 %v4096_v20, %s4833_s9 }
 0x84f   : > { %4107 = vrot.lane.b32.xlu1 %v4096_v20, %s4835_s6  ;;  %4102 = vrot.lane.b32.xlu0 %v4096_v20, %s4834_s24 }
 0x853   : > { %1828 = vperm.xlu1 %4049, %v1820_v21   ;;  %1823 = vperm.xlu0 %4050, %v1819_v22  }
 0x857   : > { %2038 = vperm.xlu1 %4049, %v2030_v23   ;;  %2033 = vperm.xlu0 %4050, %v2029_v25  }
 0x8b9   : > { %v4088_v26 = vpop.permute.xlu1 %4087  ;;  %v4083_v27 = vpop.permute.xlu0 %4082 }
 0x8ba   : > { %v4085_v28 = vunpack.i.h.bf16 %v4083_v27  ;;  %v4084_v29 = vunpack.i.l.bf16 %v4083_v27  ;;  %v4090_v30 = vunpack.i.h.bf16 %v4088_v26  ;;  %v4089_v31 = vunpack.i.l.bf16 %v4088_v26 }
 0x8bc   : > { %v1815_v32 = vpack.c.bf16 %v4085_v28, %v4084_v29  ;;  %v1816_v33 = vpack.c.bf16 %v4090_v30, %v4089_v31 }
 0x8bd   : > { %v4093_v34 = vpop.permute.xlu0 %4092  ;;  %v4098_v38 = vpop.permute.xlu1 %4097 }
 0x8be   : > { %3613 = vmatpush3.bf16.msra.mxu0 %v1815_v32  ;;  %v4095_v36 = vunpack.i.h.bf16 %v4093_v34  ;;  %v4094_v37 = vunpack.i.l.bf16 %v4093_v34  ;;  %v4100_v39 = vunpack.i.h.bf16 %v4098_v38  ;;  %v4099_v40 = vunpack.i.l.bf16 %v4098_v38 }
 0x8bf   : > { %3614 = vmatprep.subr.bf16.mxu0 %v4841_v45 }
 0x8c0   : > { %v2023_v41 = vpack.c.bf16 %v4095_v36, %v4094_v37  ;;  %v2024_v43 = vpack.c.bf16 %v4100_v39, %v4099_v40 }
 0x8c1   : > { %v4103_v42 = vpop.permute.xlu0 %4102  ;;  %v4108_v47 = vpop.permute.xlu1 %4107 }
 0x8c2   : > { %3615 = vmatpush3.bf16.msra.mxu0 %v1816_v33  ;;  %v4105_v44 = vunpack.i.h.bf16 %v4103_v42  ;;  %v4104_v46 = vunpack.i.l.bf16 %v4103_v42  ;;  %v4110_v48 = vunpack.i.h.bf16 %v4108_v47  ;;  %v4109_v49 = vunpack.i.l.bf16 %v4108_v47  ;;  %v1921_v42 = vld [vmem:[#allocation9] sm:$0xff] }
 0x8c3   : > { %3630 = vmatprep.subr.bf16.mxu0 %v4841_v45 }
 0x8c4   : > { %v2025_v50 = vpack.c.bf16 %v4105_v44, %v4104_v46  ;;  %v2026_v51 = vpack.c.bf16 %v4110_v48, %v4109_v49  ;;  %v2146_v44 = vld [vmem:[#allocation12] sm:$0xff] }
 0x8c5   : > { %3617 = vmatmul.mubr.msk.bf16.vlgmr.msra.gmra.mrb[12].mxu0 %vm1836_vm14, %v4257_v35 }
 0x8c6   : > { %3631 = vmatpush3.bf16.msk.msra.mxu0 %vm3344_vm15, %v3345_v10  ;;  %3640 = vmatprep.mubr.msk.bf16.mxu0 %vm4842_vm12, %v4841_v45  ;;  %vm1899_vm15 = vcmask 547840  }
 0x8c7   : > { %3632 = vmatprep.subr.bf16.mxu0 %v4841_v45 }
 0x8ca   : > { %3633 = vmatpush3.bf16.msra.mxu0 %v2023_v41  ;;  %v1922_v41 = vld [vmem:[#allocation9 + $0x8] sm:$0xff] }
 0x8cb   : > { %3634 = vmatprep.subr.bf16.mxu0 %v4841_v45 }
 0x8ce   : > { %3635 = vmatpush3.bf16.msra.mxu0 %v2024_v43  ;;  %v2147_v43 = vld [vmem:[#allocation12 + $0x8] sm:$0xff] }
 0x8cf   : > { %3636 = vmatprep.subr.bf16.mxu0 %v4841_v45 }
 0x8d2   : > { %3637 = vmatpush3.bf16.msra.mxu0 %v2025_v50  ;;  %v1824_v53 = vpop.permute.xlu0 %1823  ;;  %v1829_v59 = vpop.permute.xlu1 %1828 }
 0x8d3   : > { %3638 = vmatprep.subr.bf16.mxu0 %v4841_v45 }
 0x8d6   : > { %3639 = vmatpush3.bf16.msra.mxu0 %v2026_v51  ;;  %v2034_v6 = vpop.permute.xlu0 %2033  ;;  %v2039_v10 = vpop.permute.xlu1 %2038 }
 0x8d7   : > { %3658 = vmatprep.subr.bf16.mxu0 %v4841_v45 }
 0x8d9   : > { %3641 = vmatmul.mubr.msk.bf16.vlgmr.msra.gmra.mrb[16].mxu0 %vm2046_vm4, %v4258_v52 }
 0x8da   : > { %3662 = vmatprep.mubr.msk.bf16.mxu0 %vm4842_vm12, %v4841_v45 }
 0x998   : > { %v1874_v54 = vpop.f32.mrb[12].mxu0 }
 0x999   : > { %v1875_v55 = vadd.f32 %v1874_v54, %v1824_v53  ;;  %v3618_v57 = vpop.f32.mrb[13].mxu0  ;;  %v4259_v54 = vld [vmem:[%s6053_s23] sm:$0xff]  }
 0x99a   : > { %v1877_v60 = vpop.f32.mrb[14].mxu0 }
 0x99b   : > { %v5603_v61 = vadd.f32 %v1875_v55, %v5554_v58  ;;  %v1878_v62 = vadd.f32 %v1877_v60, %v1829_v59  ;;  %v3619_v63 = vpop.f32.mrb[15].mxu0 }
 0x99d   : > { %v5606_v0 = vadd.f32 %v1878_v62, %v5552_v56  ;;  %v1885_v1 = vmul.f32 0.1, %v5603_v61  ;;  %vm1883_vm6 = vcmp.ge.f32.partialorder %v5603_v61, 0.0 }
 0x99f   : > { %vm1884_vm7 = vcmp.ge.f32.partialorder %v5606_v0, 0.0  ;;  %v1886_v2 = vmul.f32 0.1, %v5606_v0  ;;  %v1887_v3 = vsel %vm1883_vm6, %v5603_v61, %v1885_v1  ;;  %vm3339_vm6 = vmpackc.low %vm1899_vm15, %vm1899_vm15 }
 0x9a1   : > { %v1888_v4 = vsel %vm1884_vm7, %v5606_v0, %v1886_v2  ;;  %vm5981_vm7 = vcmask 48128  }
 0x9a2   : > { %v4111_v5 = vpack.i.bf16 %v1888_v4, %v1887_v3 }
 0x9a4   : > { %4112 = vrot.lane.b32.xlu0 %v4111_v5, %s4831_s4 }
 0x9ac   : > { %v2084_v7 = vpop.f32.mrb[16].mxu0 }
 0x9ad   : > { %v2085_v8 = vadd.f32 %v2084_v7, %v2034_v6  ;;  %v3642_v9 = vpop.f32.mrb[17].mxu0 }
 0x9ae   : > { %v2087_v11 = vpop.f32.mrb[18].mxu0 }
 0x9af   : > { %v5616_v12 = vadd.f32 %v2085_v8, %v5554_v58  ;;  %v2088_v15 = vadd.f32 %v2087_v11, %v2039_v10  ;;  %v3643_v16 = vpop.f32.mrb[19].mxu0  ;;  %v4260_v11 = vld [vmem:[%s6054_s30] sm:$0xff]  }
 0x9b1   : > { %v5619_v18 = vadd.f32 %v2088_v15, %v5552_v56  ;;  %v2095_v19 = vmul.f32 0.1, %v5616_v12  ;;  %vm2093_vm11 = vcmp.ge.f32.partialorder %v5616_v12, 0.0 }
 0x9b3   : > { %vm2094_vm13 = vcmp.ge.f32.partialorder %v5619_v18, 0.0  ;;  %v2096_v20 = vmul.f32 0.1, %v5619_v18  ;;  %v2097_v21 = vsel %vm2093_vm11, %v5616_v12, %v2095_v19  ;;  %vm2110_vm11 = vcmask 572416  }
 0x9b5   : > { %v2098_v22 = vsel %vm2094_vm13, %v5619_v18, %v2096_v20  ;;  %vm3349_vm13 = vmpackc.low %vm2110_vm11, %vm2110_vm11 }
 0x9b6   : > { %v4116_v23 = vpack.i.bf16 %v2098_v22, %v2097_v21 }
 0x9b8   : > { %4117 = vrot.lane.b32.xlu1 %v4116_v23, %s4845_s10 }
 0xa16   : > { %v4113_v58 = vpop.permute.xlu0 %4112 }
 0xa17   : > { %v4115_v56 = vunpack.i.h.bf16 %v4113_v58  ;;  %v4114_v25 = vunpack.i.l.bf16 %v4113_v58 }
 0xa19   : > { %v1898_v26 = vsel %vm5982_vm0, 0.0, %v4115_v56  ;;  %v1897_v27 = vsel %vm5982_vm0, 0.0, %v4114_v25 }
 0xa1a   : > { %v1901_v28 = vsel %vm1899_vm15, %v1898_v26, 0.0  ;;  %v1900_v29 = vsel %vm1899_vm15, %v1897_v27, 0.0  ;;  %v3340_v30 = vpack.c.bf16 %v1898_v26, %v1897_v27 }
 0xa1b   : > { %v4121_v31 = vpack.i.bf16 %v1901_v28, %v1900_v29 }
 0xa1c   : > { %3621 = vmatpush3.bf16.msk.msra.mxu1 %vm3339_vm6, %v3340_v30 }
 0xa1d   : > { %4122 = vrot.lane.b32.xlu0 %v4121_v31, %s4834_s24  ;;  %4127 = vrot.lane.b32.xlu1 %v4121_v31, %s4838_s3 }
 0xa1e   : > { %3622 = vmatprep.subr.bf16.mxu1 %v4841_v45 }
 0xa2a   : > { %v4118_v32 = vpop.permute.xlu1 %4117 }
 0xa2b   : > { %v4120_v33 = vunpack.i.h.bf16 %v4118_v32  ;;  %v4119_v34 = vunpack.i.l.bf16 %v4118_v32 }
 0xa2d   : > { %v2109_v35 = vsel %vm5981_vm7, 0.0, %v4120_v33  ;;  %v2108_v36 = vsel %vm5981_vm7, 0.0, %v4119_v34 }
 0xa2e   : > { %v2112_v37 = vsel %vm2110_vm11, %v2109_v35, 0.0  ;;  %v2111_v38 = vsel %vm2110_vm11, %v2108_v36, 0.0  ;;  %v3350_v39 = vpack.c.bf16 %v2109_v35, %v2108_v36 }
 0xa2f   : > { %v4136_v40 = vpack.i.bf16 %v2112_v37, %v2111_v38 }
 0xa31   : > { %4137 = vrot.lane.b32.xlu1 %v4136_v40, %s4838_s3  ;;  %4132 = vrot.lane.b32.xlu0 %v4136_v40, %s4834_s24 }
 0xa35   : > { %4147 = vrot.lane.b32.xlu1 %v4136_v40, %s4846_s2  ;;  %4142 = vrot.lane.b32.xlu0 %v4136_v40, %s4847_s11 }
 0xa39   : > { %1930 = vperm.xlu1 %4049, %v1922_v41   ;;  %1925 = vperm.xlu0 %4050, %v1921_v42  }
 0xa3d   : > { %2155 = vperm.xlu1 %4049, %v2147_v43   ;;  %2150 = vperm.xlu0 %4050, %v2146_v44   ;;  %v2561_v44 = vld [vmem:[#allocation15] sm:$0xff] }
 0xa8f   : > { %v4123_v46 = vpop.permute.xlu0 %4122  ;;  %v4128_v47 = vpop.permute.xlu1 %4127 }
 0xa90   : > { %v4125_v48 = vunpack.i.h.bf16 %v4123_v46  ;;  %v4124_v49 = vunpack.i.l.bf16 %v4123_v46  ;;  %v4130_v51 = vunpack.i.h.bf16 %v4128_v47  ;;  %v4129_v52 = vunpack.i.l.bf16 %v4128_v47 }
 0xa92   : > { %v1917_v50 = vpack.c.bf16 %v4125_v48, %v4124_v49  ;;  %v1918_v53 = vpack.c.bf16 %v4130_v51, %v4129_v52  ;;  %v2300_v51 = vmul.u32 2, %v5463_v13  ;;  %v2301_v52 = vmul.u32 2, %v5466_v14 }
 0xa94   : > { %3623 = vmatpush3.bf16.msra.mxu1 %v1917_v50  ;;  %vm5684_vm15 = vcmp.eq.s32.totalorder %v5474_v17, %v2301_v52 }
 0xa95   : > { %3624 = vmatprep.subr.bf16.mxu1 %v4841_v45 }
 0xa98   : > { %3625 = vmatpush3.bf16.msra.mxu1 %v1918_v53  ;;  %v4848_v53 = vmov 0.0|0.0  }
 0xa99   : > { %3644 = vmatprep.subr.bf16.mxu1 %v4841_v45 }
 0xa9b   : > { %3627 = vmatmul.mubr.msk.bf16.vlgmr.msra.gmra.mrb[12].mxu1 %vm1836_vm14, %v4259_v54 }
 0xa9c   : > { %3645 = vmatpush3.bf16.msk.msra.mxu1 %vm3349_vm13, %v3350_v39  ;;  %3654 = vmatprep.mubr.msk.bf16.mxu1 %vm4842_vm12, %v4841_v45 }
 0xa9d   : > { %3646 = vmatprep.subr.bf16.mxu1 %v4841_v45 }
 0xaa3   : > { %v4138_v55 = vpop.permute.xlu1 %4137  ;;  %v4133_v57 = vpop.permute.xlu0 %4132 }
 0xaa4   : > { %v4135_v59 = vunpack.i.h.bf16 %v4133_v57  ;;  %v4134_v60 = vunpack.i.l.bf16 %v4133_v57  ;;  %v4140_v62 = vunpack.i.h.bf16 %v4138_v55  ;;  %v4139_v63 = vunpack.i.l.bf16 %v4138_v55 }
 0xaa5   : > { %v2231_v57 = vadd.s32 16, %v5463_v13 }
 0xaa6   : > { %v2140_v1 = vpack.c.bf16 %v4135_v59, %v4134_v60  ;;  %v2141_v3 = vpack.c.bf16 %v4140_v62, %v4139_v63  ;;  %v2232_v59 = vadd.s32 24, %v5463_v13 }
 0xaa7   : > { %v4143_v2 = vpop.permute.xlu0 %4142  ;;  %v4148_v6 = vpop.permute.xlu1 %4147  ;;  %v2302_v14 = vmul.u32 2, %v2231_v57 }
 0xaa8   : > { %3647 = vmatpush3.bf16.msra.mxu1 %v2140_v1  ;;  %v4145_v4 = vunpack.i.h.bf16 %v4143_v2  ;;  %v4144_v5 = vunpack.i.l.bf16 %v4143_v2  ;;  %v4150_v7 = vunpack.i.h.bf16 %v4148_v6  ;;  %v4149_v8 = vunpack.i.l.bf16 %v4148_v6  ;;  %v2247_v6 = vld [vmem:[#allocation14] sm:$0xf] }
 0xaa9   : > { %3648 = vmatprep.subr.bf16.mxu1 %v4841_v45  ;;  %v2303_v60 = vmul.u32 2, %v2232_v59  ;;  %vm5696_vm11 = vcmp.eq.s32.totalorder %v5474_v17, %v2302_v14  ;;  %v2383_v1 = vadd.s32 1, %v2300_v51  ;;  %v2384_v2 = vadd.s32 1, %v2301_v52 }
 0xaaa   : > { %v2142_v9 = vpack.c.bf16 %v4145_v4, %v4144_v5  ;;  %v2143_v10 = vpack.c.bf16 %v4150_v7, %v4149_v8  ;;  %v2233_v8 = vadd.s32 32, %v5463_v13 }
 0xaab   : > { %vm5701_vm13 = vcmp.eq.s32.totalorder %v5474_v17, %v2303_v60  ;;  %vm2392_vm2 = vcmp.eq.s32.totalorder %v5474_v17, %v2384_v2  ;;  %v2386_v4 = vadd.s32 1, %v2303_v60 }
 0xaac   : > { %3649 = vmatpush3.bf16.msra.mxu1 %v2141_v3  ;;  %v2385_v3 = vadd.s32 1, %v2302_v14 }
 0xaad   : > { %3650 = vmatprep.subr.bf16.mxu1 %v4841_v45  ;;  %vm2394_vm5 = vcmp.eq.s32.totalorder %v5474_v17, %v2386_v4 }
 0xaae   : > { %vm2393_vm0 = vcmp.eq.s32.totalorder %v5474_v17, %v2385_v3 }
 0xaaf   : > { %vm3780_vm3 = vmpackc.low %vm2394_vm5, %vm2393_vm0 }
 0xab0   : > { %3651 = vmatpush3.bf16.msra.mxu1 %v2142_v9  ;;  %v2234_v9 = vadd.s32 40, %v5463_v13 }
 0xab1   : > { %3652 = vmatprep.subr.bf16.mxu1 %v4841_v45 }
 0xab4   : > { %3653 = vmatpush3.bf16.msra.mxu1 %v2143_v10 }
 0xab5   : > { %3776 = vmatprep.subr.bf16.mxu1 %v4848_v53 }
 0xab7   : > { %3655 = vmatmul.mubr.msk.bf16.vlgmr.msra.gmra.mrb[12].mxu1 %vm2046_vm4, %v4260_v11  ;;  %v2333_v11 = vld [vmem:[#allocation14 + $0x4] sm:$0xf] }
 0xab8   : > { %3690 = vmatprep.mubr.msk.f32.mxu1 %vm4842_vm12, %v4841_v45  ;;  %v1926_v15 = vpop.permute.xlu0 %1925  ;;  %v1931_v16 = vpop.permute.xlu1 %1930 }
 0xab9   : > { %v3800_v19 = vadd.f32 %v1926_v15, %v5603_v61  ;;  %v3804_v20 = vadd.f32 %v1931_v16, %v5606_v0  ;;  %v2304_v15 = vmul.u32 2, %v2233_v8  ;;  %v2305_v16 = vmul.u32 2, %v2234_v9  ;;  %v2595_v9 = vld [vmem:[#allocation17] sm:$0xf] }
 0xabb   : > { %v3801_v21 = vadd.f32 %v3800_v19, %v5616_v12  ;;  %v3805_v23 = vadd.f32 %v3804_v20, %v5619_v18  ;;  %v2235_v19 = vadd.s32 48, %v5463_v13  ;;  %v2236_v20 = vadd.s32 56, %v5463_v13 }
 0xabc   : > { %v2151_v22 = vpop.permute.xlu0 %2150  ;;  %v2156_v58 = vpop.permute.xlu1 %2155  ;;  %vm2312_vm0 = vcmp.eq.s32.totalorder %v5474_v17, %v2304_v15 }
 0xabd   : > { %v3802_v56 = vadd.f32 %v3801_v21, %v2151_v22  ;;  %v3806_v26 = vadd.f32 %v3805_v23, %v2156_v58  ;;  %v2306_v21 = vmul.u32 2, %v2235_v19  ;;  %v2307_v22 = vmul.u32 2, %v2236_v20 }
 0xabe   : > { %v2387_v23 = vadd.s32 1, %v2304_v15  ;;  %v2388_v58 = vadd.s32 1, %v2305_v16 }
 0xabf   : > { %vm2314_vm5 = vcmp.eq.s32.totalorder %v5474_v17, %v2306_v21 }
 0xb8a   : > { %v2200_v25 = vpop.f32.mrb[12].mxu1 }
 0xb8b   : > { %v3803_v27 = vadd.f32 %v3802_v56, %v2200_v25  ;;  %v3656_v28 = vpop.f32.mrb[13].mxu1  ;;  %v2389_v56 = vadd.s32 1, %v2306_v21  ;;  %v2390_v25 = vadd.s32 1, %v2307_v22 }
 0xb8c   : > { %v2203_v29 = vpop.f32.mrb[14].mxu1 }
 0xb8d   : > { %v2211_v30 = vmul.f32 0.5, %v3803_v27  ;;  %v3807_v31 = vadd.f32 %v3806_v26, %v2203_v29  ;;  %v3657_v32 = vpop.f32.mrb[15].mxu1 }
 0xb8f   : > { %v2215_v33 = vmul.f32 0.1, %v2211_v30  ;;  %v2212_v34 = vmul.f32 0.5, %v3807_v31  ;;  %vm2213_vm14 = vcmp.ge.f32.partialorder %v2211_v30, 0.0 }
 0xb91   : > { %vm2214_vm4 = vcmp.ge.f32.partialorder %v2212_v34, 0.0  ;;  %v2216_v61 = vmul.f32 0.1, %v2212_v34  ;;  %v2217_v0 = vsel %vm2213_vm14, %v2211_v30, %v2215_v33  ;;  %vm3792_vm14 = vmpackc.low %vm5701_vm13, %vm5696_vm11  ;;  %vm2397_vm11 = vcmp.eq.s32.totalorder %v5474_v17, %v2389_v56 }
 0xb92   : > { %vm2398_vm13 = vcmp.eq.s32.totalorder %v5474_v17, %v2390_v25 }
 0xb93   : > { %v2218_v12 = vsel %vm2214_vm4, %v2212_v34, %v2216_v61  ;;  %vm2391_vm4 = vcmp.eq.s32.totalorder %v5474_v17, %v2383_v1 }
 0xb94   : > { %v4151_v35 = vpack.i.bf16 %v2218_v12, %v2217_v0  ;;  %vm3777_vm7 = vmpackc.low %vm2392_vm2, %vm2391_vm4  ;;  %vm2313_vm2 = vcmp.eq.s32.totalorder %v5474_v17, %v2305_v16 }
 0xb95   : > { %3778 = vmatpush3.bf16.msk.msra.mxu1 %vm3777_vm7, %v4843_v24 }
 0xb96   : > { %4152 = vrot.lane.b32.xlu0 %v4151_v35, %s4840_s25  ;;  %3779 = vmatprep.subr.bf16.mxu1 %v4848_v53 }
 0xb99   : > { %3781 = vmatpush3.bf16.msk.msra.mxu1 %vm3780_vm3, %v4843_v24  ;;  %vm3795_vm3 = vmpackc.low %vm2313_vm2, %vm2312_vm0  ;;  %vm2583_vm2 = vcmask 1039360  }
 0xb9a   : > { %3782 = vmatprep.subr.bf16.mxu1 %v4848_v53 }
 0xc08   : > { %v4153_v18 = vpop.permute.xlu0 %4152 }
 0xc09   : > { %v4155_v36 = vunpack.i.h.bf16 %v4153_v18  ;;  %v4154_v37 = vunpack.i.l.bf16 %v4153_v18 }
 0xc0b   : > { %v2228_v38 = vsel %vm1135_vm10, 0.0, %v4155_v36  ;;  %v2227_v39 = vsel %vm1135_vm10, 0.0, %v4154_v37 }
 0xc0c   : > { %v2230_v40 = vsel %vm1797_vm9, %v2228_v38, 0.0  ;;  %v2229_v41 = vsel %vm1797_vm9, %v2227_v39, 0.0  ;;  %vm5679_vm9 = vcmp.eq.s32.totalorder %v5474_v17, %v2300_v51 }
 0xc0d   : > { %v4156_v42 = vpack.i.bf16 %v2230_v40, %v2229_v41  ;;  %v2245_v43 = vpack.c.bf16 %v2230_v40, %v2229_v41  ;;  %vm3789_vm6 = vmpackc.low %vm5684_vm15, %vm5679_vm9  ;;  %vm2395_vm9 = vcmp.eq.s32.totalorder %v5474_v17, %v2387_v23  ;;  %vm2396_vm15 = vcmp.eq.s32.totalorder %v5474_v17, %v2388_v58  ;;  %v2766_v58 = vld [vmem:[#allocation23] sm:$0xf] }
 0xc0f   : > { %4157 = vrot.lane.b32.xlu1 %v4156_v42, %s4840_s25  ;;  %2250 = vrot.lane.b32.xlu0 %v2245_v43, %s4833_s9 }
 0xc13   : > { %2334 = vrot.lane.b32.xlu0 %v2245_v43, %s4832_s7 }
 0xc17   : > { %2564 = vperm.xlu0 %4050, %v2561_v44  }
 0xc81   : > { %v4158_v46 = vpop.permute.xlu1 %4157  ;;  %v2251_v47 = vpop.permute.xlu0 %2250 }
 0xc82   : > { %v4160_v48 = vunpack.i.h.bf16 %v4158_v46  ;;  %v4159_v49 = vunpack.i.l.bf16 %v4158_v46  ;;  %3659 = vmatpush3.bf16.msra.mxu0 %v2251_v47  ;;  %v2767_v46 = vld [vmem:[#allocation24] sm:$0xff]  ;;  %v2596_v47 = vld [vmem:[#allocation18] sm:$0xff] }
 0xc83   : > { %3660 = vmatprep.subr.bf16.mxu0 %v4841_v45 }
 0xc84   : > { %v2246_v50 = vpack.c.bf16 %v4160_v48, %v4159_v49 }
 0xc85   : > { %v2335_v7 = vpop.permute.xlu0 %2334 }
 0xc86   : > { %2252 = vrot.lane.b32.xlu1 %v2246_v50, %s4833_s9 }
 0xc8a   : > { %2336 = vrot.lane.b32.xlu1 %v2246_v50, %s4832_s7 }
 0xc96   : > { %v2565_v12 = vpop.permute.xlu0 %2564 }
 0xcf8   : > { %v2253_v5 = vpop.permute.xlu1 %2252 }
 0xcf9   : > { %3661 = vmatpush3.bf16.msra.mxu0 %v2253_v5 }
 0xcfa   : > { %3666 = vmatprep.subr.bf16.mxu0 %v4841_v45 }
 0xcfc   : > { %3663 = vmatmul.mubr.msk.bf16.vlgmr.msra.gmra.mrb[20].mxu0 %vm2256_vm8, %v2247_v6  ;;  %v2337_v10 = vpop.permute.xlu1 %2336 }
 0xcfd   : > { %3667 = vmatpush3.bf16.msra.mxu0 %v2335_v7  ;;  %3670 = vmatprep.mubr.msk.bf16.mxu0 %vm4842_vm12, %v4841_v45 }
 0xcfe   : > { %3668 = vmatprep.subr.bf16.mxu0 %v4841_v45 }
 0xd01   : > { %3669 = vmatpush3.bf16.msra.mxu0 %v2337_v10 }
 0xd02   : > { %3788 = vmatprep.subr.bf16.mxu0 %v4848_v53 }
 0xd04   : > { %3671 = vmatmul.mubr.msk.bf16.vlgmr.msra.gmra.mrb[24].mxu0 %vm2256_vm8, %v2333_v11  ;;  %vm2315_vm8 = vcmp.eq.s32.totalorder %v5474_v17, %v2307_v22 }
 0xd05   : > { %3790 = vmatpush3.bf16.msk.msra.mxu0 %vm3789_vm6, %v4843_v24  ;;  %3709 = vmatprep.mubr.msk.f32.mxu0 %vm4842_vm12, %v4841_v45  ;;  %vm3798_vm7 = vmpackc.low %vm2315_vm8, %vm2314_vm5  ;;  %vm6065_vm8 = vmmov 1  }
 0xd06   : > { %3791 = vmatprep.subr.bf16.mxu0 %v4848_v53  ;;  %vm3783_vm6 = vmpackc.low %vm2396_vm15, %vm2395_vm9  ;;  %vm6067_vm15 = vcmask 1043456  }
 0xd07   : > { %3784 = vmatpush3.bf16.msk.msra.mxu1 %vm3783_vm6, %v4843_v24  ;;  %vm3389_vm5 = vmneg %vm1135_vm10  ;;  %vm2665_vm6 = vcmask 1022976  }
 0xd08   : > { %3785 = vmatprep.subr.bf16.mxu1 %v4848_v53 }
 0xd09   : > { %3793 = vmatpush3.bf16.msk.msra.mxu0 %vm3792_vm14, %v4843_v24  ;;  %vm3786_vm14 = vmpackc.low %vm2398_vm13, %vm2397_vm11  ;;  %vm2602_vm11 = vcmask 195584  }
 0xd0a   : > { %3794 = vmatprep.subr.bf16.mxu0 %v4848_v53 }
 0xd0b   : > { %3787 = vmatpush3.bf16.msk.msra.mxu1 %vm3786_vm14, %v4843_v24  ;;  %vm2760_vm14 = vcmask 1014784  }
 0xd0c   : > { %3712 = vmatprep.subr.bf16.mxu1 %v4841_v45 }
 0xd0d   : > { %3796 = vmatpush3.bf16.msk.msra.mxu0 %vm3795_vm3, %v4843_v24  ;;  %vm2590_vm3 = vcmask 1031168  }
 0xd0e   : > { %3797 = vmatprep.subr.bf16.mxu0 %v4848_v53 }
 0xd11   : > { %3799 = vmatpush3.bf16.msk.msra.mxu0 %vm3798_vm7, %v4843_v24  ;;  %vm3390_vm7 = vmpackc.low %vm6065_vm8, %vm3389_vm5 }
 0xd12   : > { %3720 = vmatprep.subr.bf16.mxu0 %v4841_v45 }
 0xdcf   : > { %v2294_v26 = vpop.f32.mrb[20].mxu0 }
 0xdd0   : > { %v3664_v27 = vpop.f32.mrb[21].mxu0  ;;  %3710 = vmatmul.mubr.msk.f32.vlgmr.msra.gmra.mrb[28].mxu0 %vm1193_vm1, %v2294_v26 }
 0xdd1   : > { %v2297_v28 = vpop.f32.mrb[22].mxu0  ;;  %3724 = vmatprep.mubr.msk.bf16.mxu0 %vm4842_vm12, %v4841_v45 }
 0xdd2   : > { %v3665_v29 = vpop.f32.mrb[23].mxu0 }
 0xdd7   : > { %v2377_v30 = vpop.f32.mrb[24].mxu0 }
 0xdd8   : > { %v3672_v31 = vpop.f32.mrb[25].mxu0  ;;  %3691 = vmatmul.mubr.msk.f32.vlgmr.msra.gmra.mrb[6].mxu1 %vm1193_vm1, %v2377_v30  ;;  %vm6063_vm1 = vcmask 15360  }
 0xdd9   : > { %v2380_v32 = vpop.f32.mrb[26].mxu0  ;;  %3716 = vmatprep.mubr.msk.bf16.mxu1 %vm4842_vm12, %v4841_v45  ;;  %vm6064_vm0 = vmmov %vm6063_vm1 }
 0xdda   : > { %v3673_v17 = vpop.f32.mrb[27].mxu0 }
 0xea3   : > { %v2557_v24 = vpop.f32.mrb[28].mxu0 }
 0xea4   : > { %v3711_v33 = vpop.f32.mrb[29].mxu0 }
 0xeab   : > { %v2484_v34 = vpop.f32.mrb[6].mxu1 }
 0xeac   : > { %v2558_v61 = vadd.f32 %v2557_v24, %v2484_v34  ;;  %v3692_v0 = vpop.f32.mrb[7].mxu1 }
 0xeae   : > { %v5766_v35 = vadd.f32 %v2565_v12, %v2558_v61 }
 0xeb0   : > { %vm2568_vm4 = vcmp.ge.f32.partialorder %v5766_v35, 0.0  ;;  %v2569_v18 = vmul.f32 0.1, %v5766_v35 }
 0xeb2   : > { %v2570_v36 = vsel %vm2568_vm4, %v5766_v35, %v2569_v18  ;;  %vm6068_vm4 = vmmov %vm6067_vm15 }
 0xeb3   : > { %2731 = vrot.lane.b32.xlu0 %v2570_v36, %s4844_s5  ;;  %2572 = vrot.lane.b32.xlu1 %v2570_v36, %s4840_s25 }
 0xf25   : > { %v2732_v37 = vpop.permute.xlu0 %2731  ;;  %v2573_v38 = vpop.permute.xlu1 %2572 }
 0xf26   : > { %v2575_v39 = vsel %vm1135_vm10, 0.0, %v2573_v38  ;;  %v2576_v40 = vsel %vm1135_vm10, %v2573_v38, 0.0  ;;  %v2734_v42 = vsel %vm6063_vm1, 0.0, %v2732_v37  ;;  %v2735_v43 = vsel %vm6064_vm0, %v2732_v37, 0.0  ;;  %vm6066_vm10 = vmmov %vm6064_vm0 }
 0xf27   : > { %v4166_v41 = vpack.i.bf16 %v2576_v40, %v2575_v39  ;;  %v4176_v44 = vpack.i.bf16 %v2735_v43, %v2734_v42  ;;  %vm3399_vm9 = vmneg %vm6066_vm10  ;;  %vm2773_vm1 = vcmask 326656  }
 0xf28   : > { %vm3400_vm13 = vmpackc.low %vm6065_vm8, %vm3399_vm9  ;;  %vm6071_vm9 = vcmask 48128  }
 0xf29   : > { %4167 = vrot.lane.b32.xlu0 %v4166_v41, %s4832_s7  ;;  %4162 = vrot.lane.b32.xlu1 %v4166_v41, %s4833_s9 }
 0xf2d   : > { %4177 = vrot.lane.b32.xlu0 %v4176_v44, %s4832_s7  ;;  %4172 = vrot.lane.b32.xlu1 %v4176_v44, %s4833_s9 }
 0xf31   : > { %4187 = vrot.lane.b32.xlu0 %v4176_v44, %s4835_s6  ;;  %4182 = vrot.lane.b32.xlu1 %v4176_v44, %s4834_s24  ;;  %v2862_v44 = vld [vmem:[#allocation27] sm:$0xff] }
 0xf35   : > { %2770 = vperm.xlu0 %4050, %v2767_v46   ;;  %2599 = vperm.xlu1 %4049, %v2596_v47   ;;  %v2678_v46 = vld [vmem:[#allocation21] sm:$0xff] }
 0xf9b   : > { %v4168_v48 = vpop.permute.xlu0 %4167  ;;  %v4163_v49 = vpop.permute.xlu1 %4162 }
 0xf9c   : > { %v4170_v50 = vunpack.i.h.bf16 %v4168_v48  ;;  %v4169_v51 = vunpack.i.l.bf16 %v4168_v48  ;;  %v4165_v52 = vunpack.i.h.bf16 %v4163_v49  ;;  %v4164_v53 = vunpack.i.l.bf16 %v4163_v49 }
 0xf9e   : > { %v2584_v54 = vsel %vm2583_vm2, %v4164_v53, %v4165_v52  ;;  %v2591_v55 = vsel %vm2590_vm3, %v4169_v51, %v4170_v50 }
 0xf9f   : > { %v3391_v57 = vpack.c.bf16 %v2584_v54, %v2573_v38  ;;  %v4178_v59 = vpop.permute.xlu0 %4177  ;;  %v4173_v14 = vpop.permute.xlu1 %4172  ;;  %v2594_v63 = vpack.c.bf16 %v2591_v55, %v2591_v55 }
 0xfa0   : > { %v4175_v60 = vunpack.i.h.bf16 %v4173_v14  ;;  %v4174_v62 = vunpack.i.l.bf16 %v4173_v14  ;;  %v4180_v10 = vunpack.i.h.bf16 %v4178_v59  ;;  %v4179_v11 = vunpack.i.l.bf16 %v4178_v59 }
 0xfa1   : > { %3713 = vmatpush3.bf16.msk.msra.mxu1 %vm3390_vm7, %v3391_v57  ;;  %v2607_v6 = vsel %vm6067_vm15, %v2594_v63, 0  ;;  %vm6069_vm7 = vcmask 23552   ;;  %vm6072_vm15 = vmmov %vm6071_vm9 }
 0xfa2   : > { %3714 = vmatprep.subr.bf16.mxu1 %v4841_v45  ;;  %v2742_v3 = vsel %vm2583_vm2, %v4174_v62, %v4175_v60  ;;  %v2748_v20 = vsel %vm2590_vm3, %v4179_v11, %v4180_v10  ;;  %vm6070_vm10 = vmmov %vm6069_vm7  ;;  %v2677_v60 = vld [vmem:[#allocation20] sm:$0xf] }
 0xfa3   : > { %v4188_v1 = vpop.permute.xlu0 %4187  ;;  %v4183_v2 = vpop.permute.xlu1 %4182  ;;  %v3401_v15 = vpack.c.bf16 %v2742_v3, %v2732_v37 }
 0xfa4   : > { %v4185_v4 = vunpack.i.h.bf16 %v4183_v2  ;;  %v4184_v5 = vunpack.i.l.bf16 %v4183_v2  ;;  %v4190_v7 = vunpack.i.h.bf16 %v4188_v1  ;;  %v4189_v8 = vunpack.i.l.bf16 %v4188_v1 }
 0xfa5   : > { %3715 = vmatpush3.bf16.msra.mxu1 %v2607_v6 }
 0xfa6   : > { %3728 = vmatprep.subr.bf16.mxu1 %v4841_v45  ;;  %v2754_v16 = vsel %vm2665_vm6, %v4184_v5, %v4185_v4  ;;  %v2761_v19 = vsel %vm2760_vm14, %v4189_v8, %v4190_v7 }
 0xfa7   : > { %v2764_v21 = vpack.c.bf16 %v2754_v16, %v2748_v20  ;;  %v2765_v22 = vpack.c.bf16 %v2761_v19, %v2761_v19 }
 0xfa8   : > { %3717 = vmatmul.mubr.msk.bf16.vlgmr.msra.gmra.mrb[16].mxu1 %vm2602_vm11, %v2595_v9 }
 0xfa9   : > { %3729 = vmatpush3.bf16.msk.msra.mxu1 %vm3400_vm13, %v3401_v15  ;;  %3734 = vmatprep.mubr.msk.bf16.mxu1 %vm4842_vm12, %v4841_v45  ;;  %v2778_v23 = vsel %vm6068_vm4, %v2765_v22, 0  ;;  %vm6073_vm13 = vmmov %vm6069_vm7 }
 0xfaa   : > { %3730 = vmatprep.subr.bf16.mxu1 %v4841_v45  ;;  %vm3394_vm4 = vmneg %vm6073_vm13  ;;  %vm2848_vm13 = vcmask 973824  }
 0xfad   : > { %3731 = vmatpush3.bf16.msra.mxu1 %v2764_v21 }
 0xfae   : > { %3732 = vmatprep.subr.bf16.mxu1 %v4841_v45 }
 0xfb1   : > { %3733 = vmatpush3.bf16.msra.mxu1 %v2778_v23 }
 0xfb2   : > { %3748 = vmatprep.subr.bf16.mxu1 %v4841_v45 }
 0xfb4   : > { %3735 = vmatmul.mubr.msk.bf16.vlgmr.msra.gmra.mrb[20].mxu1 %vm2773_vm1, %v2766_v58  ;;  %v2600_v56 = vpop.permute.xlu1 %2599  ;;  %v2771_v17 = vpop.permute.xlu0 %2770  ;;  %v2861_v58 = vld [vmem:[#allocation26] sm:$0xf] }
 0xfb5   : > { %3756 = vmatprep.mubr.msk.bf16.mxu1 %vm4842_vm12, %v4841_v45 }
0x107b   : > { %v2643_v25 = vpop.f32.mrb[16].mxu1 }
0x107c   : > { %v2644_v26 = vadd.f32 %v2643_v25, %v2600_v56  ;;  %v3718_v27 = vpop.f32.mrb[17].mxu1 }
0x107d   : > { %v2646_v28 = vpop.f32.mrb[18].mxu1 }
0x107e   : > { %v5807_v29 = vadd.f32 %v2644_v26, %v5766_v35  ;;  %v3719_v30 = vpop.f32.mrb[19].mxu1 }
0x1080   : > { %vm2650_vm0 = vcmp.ge.f32.partialorder %v5807_v29, 0.0  ;;  %v2651_v31 = vmul.f32 0.1, %v5807_v29 }
0x1082   : > { %v2652_v32 = vsel %vm2650_vm0, %v5807_v29, %v2651_v31  ;;  %vm2672_vm0 = vcmask 998400  }
0x1083   : > { %2654 = vrot.lane.b32.xlu1 %v2652_v32, %s4831_s4 }
0x1087   : > { %v2814_v24 = vpop.f32.mrb[20].mxu1 }
0x1088   : > { %v2815_v33 = vadd.f32 %v2814_v24, %v2771_v17  ;;  %v3736_v34 = vpop.f32.mrb[21].mxu1 }
0x1089   : > { %v2817_v61 = vpop.f32.mrb[22].mxu1 }
0x108a   : > { %v5814_v0 = vadd.f32 %v2815_v33, %v5766_v35  ;;  %v3737_v12 = vpop.f32.mrb[23].mxu1 }
0x108c   : > { %vm2821_vm5 = vcmp.ge.f32.partialorder %v5814_v0, 0.0  ;;  %v2822_v18 = vmul.f32 0.1, %v5814_v0 }
0x108e   : > { %v2823_v36 = vsel %vm2821_vm5, %v5814_v0, %v2822_v18  ;;  %vm5833_vm5 = vmpackc.low %vm6065_vm8, %vm3394_vm4  ;;  %vm2855_vm4 = vcmask 949248  }
0x108f   : > { %2825 = vrot.lane.b32.xlu0 %v2823_v36, %s4845_s10 }
0x10f5   : > { %v2655_v37 = vpop.permute.xlu1 %2654 }
0x10f6   : > { %v2657_v38 = vsel %vm6069_vm7, 0.0, %v2655_v37  ;;  %v2658_v39 = vsel %vm6070_vm10, %v2655_v37, 0.0  ;;  %vm6076_vm7 = vcmask 1043456   ;;  %vm6077_vm10 = vmmov %vm6071_vm9 }
0x10f7   : > { %v4191_v40 = vpack.i.bf16 %v2658_v39, %v2657_v38 }
0x10f9   : > { %4192 = vrot.lane.b32.xlu1 %v4191_v40, %s4834_s24  ;;  %4197 = vrot.lane.b32.xlu0 %v4191_v40, %s4838_s3 }
0x1101   : > { %v2826_v35 = vpop.permute.xlu0 %2825 }
0x1102   : > { %v2828_v41 = vsel %vm6071_vm9, 0.0, %v2826_v35  ;;  %v2829_v42 = vsel %vm6072_vm15, %v2826_v35, 0.0  ;;  %vm3404_vm9 = vmneg %vm6077_vm10 }
0x1103   : > { %v4206_v43 = vpack.i.bf16 %v2829_v42, %v2828_v41  ;;  %vm3405_vm15 = vmpackc.low %vm6065_vm8, %vm3404_vm9 }
0x1105   : > { %4207 = vrot.lane.b32.xlu0 %v4206_v43, %s4838_s3  ;;  %4202 = vrot.lane.b32.xlu1 %v4206_v43, %s4834_s24 }
0x1109   : > { %4217 = vrot.lane.b32.xlu0 %v4206_v43, %s4846_s2  ;;  %4212 = vrot.lane.b32.xlu1 %v4206_v43, %s4847_s11  ;;  %s6086_s11 = sld [smem:[#allocation64_spill]] }
0x110d   : > { %2865 = vperm.xlu0 %4050, %v2862_v44   ;;  %2681 = vperm.xlu1 %4049, %v2678_v46  }
0x116b   : > { %v4193_v47 = vpop.permute.xlu1 %4192  ;;  %v4198_v48 = vpop.permute.xlu0 %4197 }
0x116c   : > { %v4195_v49 = vunpack.i.h.bf16 %v4193_v47  ;;  %v4194_v50 = vunpack.i.l.bf16 %v4193_v47  ;;  %v4200_v51 = vunpack.i.h.bf16 %v4198_v48  ;;  %v4199_v52 = vunpack.i.l.bf16 %v4198_v48 }
0x116e   : > { %v2666_v53 = vsel %vm2665_vm6, %v4194_v50, %v4195_v49  ;;  %v2673_v55 = vsel %vm2672_vm0, %v4199_v52, %v4200_v51 }
0x116f   : > { %v3396_v57 = vpack.c.bf16 %v2666_v53, %v2655_v37  ;;  %v2676_v59 = vpack.c.bf16 %v2673_v55, %v2673_v55 }
0x1171   : > { %3721 = vmatpush3.bf16.msk.msra.mxu0 %vm5833_vm5, %v3396_v57  ;;  %v2688_v14 = vsel %vm6076_vm7, %v2676_v59, 0 }
0x1172   : > { %3722 = vmatprep.subr.bf16.mxu0 %v4841_v45 }
0x1175   : > { %3723 = vmatpush3.bf16.msra.mxu0 %v2688_v14 }
0x1176   : > { %3738 = vmatprep.subr.bf16.mxu0 %v4841_v45 }
0x1177   : > { %v4203_v62 = vpop.permute.xlu1 %4202  ;;  %v4208_v63 = vpop.permute.xlu0 %4207 }
0x1178   : > { %v4205_v1 = vunpack.i.h.bf16 %v4203_v62  ;;  %v4204_v2 = vunpack.i.l.bf16 %v4203_v62  ;;  %3725 = vmatmul.mubr.msk.bf16.vlgmr.msra.gmra.mrb[32].mxu0 %vm2602_vm11, %v2677_v60  ;;  %v4210_v4 = vunpack.i.h.bf16 %v4208_v63  ;;  %v4209_v5 = vunpack.i.l.bf16 %v4208_v63 }
0x1179   : > { %3744 = vmatprep.mubr.msk.bf16.mxu0 %vm4842_vm12, %v4841_v45  ;;  %vm6078_vm12 = vmmov %vm6076_vm7  ;;  %vm6079_vm11 = vcmask 23552   ;;  %vm2956_vm7 = vcmask 1006592  }
0x117a   : > { %v2836_v3 = vsel %vm2665_vm6, %v4204_v2, %v4205_v1  ;;  %v2842_v16 = vsel %vm2672_vm0, %v4209_v5, %v4210_v4 }
0x117b   : > { %v3406_v6 = vpack.c.bf16 %v2836_v3, %v2826_v35  ;;  %v4213_v7 = vpop.permute.xlu1 %4212  ;;  %v4218_v8 = vpop.permute.xlu0 %4217 }
0x117c   : > { %v4215_v9 = vunpack.i.h.bf16 %v4213_v7  ;;  %v4214_v10 = vunpack.i.l.bf16 %v4213_v7  ;;  %v4220_v11 = vunpack.i.h.bf16 %v4218_v8  ;;  %v4219_v15 = vunpack.i.l.bf16 %v4218_v8 }
0x117d   : > { %3739 = vmatpush3.bf16.msk.msra.mxu0 %vm3405_vm15, %v3406_v6  ;;  %v2978_v6 = vsub.s32 0, %v5463_v13 }
0x117e   : > { %v2849_v19 = vsel %vm2848_vm13, %v4214_v10, %v4215_v9  ;;  %3740 = vmatprep.subr.bf16.mxu0 %v4841_v45  ;;  %v2856_v20 = vsel %vm2855_vm4, %v4219_v15, %v4220_v11 }
0x117f   : > { %v2859_v21 = vpack.c.bf16 %v2849_v19, %v2842_v16  ;;  %v2860_v22 = vpack.c.bf16 %v2856_v20, %v2856_v20 }
0x1181   : > { %3741 = vmatpush3.bf16.msra.mxu0 %v2859_v21  ;;  %v2872_v23 = vsel %vm6078_vm12, %v2860_v22, 0 }
0x1182   : > { %3742 = vmatprep.subr.bf16.mxu0 %v4841_v45 }
0x1185   : > { %3743 = vmatpush3.bf16.msra.mxu0 %v2872_v23 }
0x1188   : > { %3745 = vmatmul.mubr.msk.bf16.vlgmr.msra.gmra.mrb[32].mxu0 %vm2773_vm1, %v2861_v58  ;;  %vm6080_vm1 = vmmov %vm6079_vm11 }
0x118c   : > { %v2682_v56 = vpop.permute.xlu1 %2681  ;;  %v2866_v27 = vpop.permute.xlu0 %2865 }
0x118d   : > { %v3808_v25 = vadd.f32 %v2682_v56, %v5807_v29 }
0x118f   : > { %v3809_v26 = vadd.f32 %v3808_v25, %v5814_v0  ;;  %v2970_v0 = vld [vmem:[#allocation2] sm:$0x1] }
0x1191   : > { %v3810_v28 = vadd.f32 %v3809_v26, %v2866_v27 }
0x125b   : > { %v2908_v30 = vpop.f32.mrb[32].mxu0 }
0x125c   : > { %v3811_v31 = vadd.f32 %v3810_v28, %v2908_v30  ;;  %v3746_v32 = vpop.f32.mrb[33].mxu0 }
0x125d   : > { %v2911_v17 = vpop.f32.mrb[34].mxu0 }
0x125e   : > { %v2916_v24 = vmul.f32 0.5, %v3811_v31  ;;  %v3747_v33 = vpop.f32.mrb[35].mxu0 }
0x1260   : > { %v2918_v34 = vmul.f32 0.01, %v2916_v24  ;;  %vm2917_vm8 = vcmp.ge.f32.partialorder %v2916_v24, 0.0 }
0x1262   : > { %v2919_v61 = vsel %vm2917_vm8, %v2916_v24, %v2918_v34 }
0x1263   : > { %2921 = vrot.lane.b32.xlu1 %v2919_v61, %s4831_s4  ;;  %s6081_s4 = sld [smem:[#allocation41_spill]] }
0x12d5   : > { %v2922_v12 = vpop.permute.xlu1 %2921 }
0x12d6   : > { %v2924_v18 = vsel %vm6079_vm11, 0.0, %v2922_v12  ;;  %v2925_v29 = vsel %vm6080_vm1, %v2922_v12, 0.0 }
0x12d7   : > { %v4226_v36 = vpack.i.bf16 %v2925_v29, %v2924_v18 }
0x12d9   : > { %4227 = vrot.lane.b32.xlu1 %v4226_v36, %s4832_s7  ;;  %4222 = vrot.lane.b32.xlu0 %v4226_v36, %s4833_s9 }
0x12dd   : > { %4237 = vrot.lane.b32.xlu1 %v4226_v36, %s4835_s6  ;;  %4232 = vrot.lane.b32.xlu0 %v4226_v36, %s4834_s24  ;;  %s6083_s24 = sld [smem:[#allocation63_spill]]  ;;  %s6085_s6 = sld [smem:[#allocation47_spill]] }
0x12e1   : > { %4247 = vrot.lane.b32.xlu1 %v4226_v36, %s4838_s3  ;;  %4242 = vrot.lane.b32.xlu0 %v4226_v36, %s4837_s8  ;;  %s970_s8 = sand.u32 1, %s6081_s4   ;;  %s3414_s3 = sshll.u32 %s6028_s26, 4 }
0x12e2   : > { %s971_s25 = scalar_lea.vmem [#allocation29], %s970_s8  ;;  %s5886_s23 = scalar_lea.hbm %s6086_s11, %s3414_s3 }
0x12e3   : > { %v2969_v5 = vld [vmem:[%s6083_s24] sm:$0x1]  ;;  %s3041_s5 = sshll.u32 %s971_s25, 4  ;;  %s3029_s1 = scalar_lea.sflag [#allocation5], %s970_s8  ;;  %s5888_s5 = int_to_ptr.vmem [resolvable:$true] %s3041_s5 }
0x12e4   : > { %s4711_s12 = scalar_lea.vmem %s5888_s5, 16  ;;  %p6087_p7 = scmp.ne.s32.totalorder %s6085_s6, 0 }
0x12e5   : > { %2973 = vperm.xlu0 %4050, %v2970_v0   ;;  %p4712_p12 = scmp.ne.s32.totalorder %s5888_s5, %s4711_s12  ;;  %s4849_s26 = smov [#allocation29]  }
0x12e6   : > { %s4715_s30 = sshll.u32 %s4849_s26, 4  ;;  %s4716_s30 = int_to_ptr.vmem [resolvable:$false] %s4715_s30 }
0x12e7   : > { %p4713_p8 = pnand %p4712_p12, %p6087_p7  ;;  %s4717_s4 = scalar_lea.vmem %s4716_s30, 32 }
0x12e8   : > { %p4718_p13 = scmp.lt.s32.totalorder %s5888_s5, %s4716_s30  ;;  %p4719_p1 = scmp.lt.s32.totalorder %s4717_s4, %s4711_s12 }
0x12e9   : > { %p4714_p11 = pneg %p4713_p8 }
0x12ea   : > { %p4720_p6 = por %p4719_p1, %p4718_p13 }
0x12ec   : > { %p4721_p9 = pnand %p4720_p6, %p4714_p11 }
0x134b   : > { %v4228_v37 = vpop.permute.xlu1 %4227  ;;  %v4223_v38 = vpop.permute.xlu0 %4222 }
0x134c   : > { %v4225_v39 = vunpack.i.h.bf16 %v4223_v38  ;;  %v4224_v40 = vunpack.i.l.bf16 %v4223_v38  ;;  %v4230_v35 = vunpack.i.h.bf16 %v4228_v37  ;;  %v4229_v41 = vunpack.i.l.bf16 %v4228_v37 }
0x134e   : > { %v2932_v42 = vsel %vm2583_vm2, %v4224_v40, %v4225_v39  ;;  %v2938_v49 = vsel %vm2590_vm3, %v4229_v41, %v4230_v35  ;;  %vm6082_vm2 = vmmov %vm6078_vm12  ;;  %vm6084_vm3 = vcmask 457728  }
0x134f   : > { %v3411_v43 = vpack.c.bf16 %v2932_v42, %v2922_v12  ;;  %v4238_v44 = vpop.permute.xlu1 %4237  ;;  %v4233_v46 = vpop.permute.xlu0 %4232 }
0x1350   : > { %v4235_v47 = vunpack.i.h.bf16 %v4233_v46  ;;  %v4234_v48 = vunpack.i.l.bf16 %v4233_v46  ;;  %v4240_v50 = vunpack.i.h.bf16 %v4238_v44  ;;  %v4239_v51 = vunpack.i.l.bf16 %v4238_v44 }
0x1351   : > { %3749 = vmatpush3.bf16.msk.msra.mxu1 %vm5833_vm5, %v3411_v43 }
0x1352   : > { %v2944_v52 = vsel %vm2665_vm6, %v4234_v48, %v4235_v47  ;;  %3750 = vmatprep.subr.bf16.mxu1 %v4841_v45  ;;  %v2950_v54 = vsel %vm2760_vm14, %v4239_v51, %v4240_v50 }
0x1353   : > { %v2966_v53 = vpack.c.bf16 %v2944_v52, %v2938_v49  ;;  %v4248_v55 = vpop.permute.xlu1 %4247  ;;  %v4243_v57 = vpop.permute.xlu0 %4242 }
0x1354   : > { %v4250_v59 = vunpack.i.h.bf16 %v4248_v55  ;;  %v4249_v14 = vunpack.i.l.bf16 %v4248_v55  ;;  %v4245_v60 = vunpack.i.h.bf16 %v4243_v57  ;;  %v4244_v62 = vunpack.i.l.bf16 %v4243_v57 }
0x1355   : > { %3751 = vmatpush3.bf16.msra.mxu1 %v2966_v53 }
0x1356   : > { %v2963_v63 = vsel %vm2672_vm0, %v4249_v14, %v4250_v59  ;;  %v2957_v1 = vsel %vm2956_vm7, %v4244_v62, %v4245_v60  ;;  %3752 = vmatprep.subr.bf16.mxu1 %v4841_v45 }
0x1357   : > { %v2967_v2 = vpack.c.bf16 %v2957_v1, %v2950_v54  ;;  %v2968_v3 = vpack.c.bf16 %v2963_v63, %v2963_v63 }
0x1359   : > { %3753 = vmatpush3.bf16.msra.mxu1 %v2967_v2  ;;  %v2984_v4 = vsel %vm6082_vm2, %v2968_v3, 0 }
0x135a   : > { %3754 = vmatprep.subr.bf16.mxu1 %v4841_v45 }
0x135d   : > { %3755 = vmatpush3.bf16.msra.mxu1 %v2984_v4 }
0x1360   : > { %3757 = vmatmul.mubr.msk.bf16.vlgmr.msra.gmra.mrb[24].mxu1 %vm6084_vm3, %v2969_v5 }
0x1364   : > { %v2974_v7 = vpop.permute.xlu0 %2973 }
0x1365   : > { %v2979_v8 = vrot.slane %v2974_v7, %v2978_v6 }
0x1433   : > { %v3020_v9 = vpop.f32.mrb[24].mxu1 }
0x1434   : > { %v3021_v10 = vadd.f32 %v3020_v9, %v2979_v8  ;;  %v3758_v11 = vpop.f32.mrb[25].mxu1 }
0x1435   : > { %v3023_v15 = vpop.f32.mrb[26].mxu1 }
0x1436   : > { %4261 = vtanh.f32 %v3021_v10  ;;  %v3759_v45 = vpop.f32.mrb[27].mxu1 }
0x1440   : > { %v4262_v13 = vpop.eup %4261 }
0x1441   : > { %3027 = vst [vmem:[%s971_s25] sm:$0x1] %v4262_v13 }
0x1442   : > { %4724 = shalt.err (!%p4721_p9)
}
0x1443   : > { %s4725_s7 = scalar_lea.hbm %s5886_s23, 16  ;;  %s4729_s8 = scalar_lea.hbm %s6086_s11, 32 }
0x1444   : > { %p4726_p5 = scmp.ne.s32.totalorder %s5886_s23, %s4725_s7  ;;  %p4730_p2 = scmp.lt.u32.totalorder %s5886_s23, %s6086_s11 }
0x1445   : > { %p4731_p3 = scmp.lt.u32.totalorder %s4729_s8, %s4725_s7  ;;  %p4733_p12 = scmp.lt.u32.totalorder %s4725_s7, %s5886_s23 }
0x1446   : > { %p4727_p10 = pnand %p4726_p5, %p6087_p7 }
0x1447   : > { %p4732_p4 = por %p4731_p3, %p4730_p2 }
0x1448   : > { %p4728_p0 = pneg %p4727_p10 }
0x1449   : > { %p4734_p8 = por %p4733_p12, %p4732_p4 }
0x144b   : > { %p4735_p11 = pnand %p4734_p8, %p4728_p0 }
0x144d   : > { %4738 = shalt.err (!%p4735_p11)
}
0x144e   : > { %3891 = dma.vmem_to_hbm [thread:$0]  (%p6087_p7), %s5888_s5, 16, %s5886_s23, %s3029_s1  }
0x144f PF: > { %s6088_s10 = sld [smem:[#allocation43_spill]]  ;;  %s6089_s2 = sld [smem:[#allocation40_spill]] }
0x1450   : > { %s6090_s12 = sld [smem:[#allocation48_spill]] }
0x1455   : > { %p3978_p13 = scmp.ge.s32.totalorder %s6088_s10, 2  ;;  %s3053_s26 = sand.u32 1, %s6089_s2  }
0x1456   : > { %p6091_p1 = scmp.ne.s32.totalorder %s6090_s12, 0  ;;  %s3054_s30 = scalar_lea.sflag [#allocation5], %s3053_s26 }
0x1458   : > { %p3943_p6 = pnand %p3978_p13, %p6091_p1 }
0x145a   : > { %4792 = dma.done.wait (!%p3943_p6), %s3054_s30, 16  }
0x145b   : > { %4794 = vsyncadd (!%p3943_p6), %s3054_s30, 4294967280  ;;  %s6092_s3 = sld [smem:[#allocation45_spill]]  ;;  %s6093_s6 = sld [smem:[#allocation41_spill]] }
0x145c   : > { %s6094_s30 = sld [smem:[#allocation42_spill]]  ;;  %s6095_s7 = sld [smem:[#allocation46_spill]] }
0x1461   : > { %p46_p9 = scmp.ge.s32.totalorder %s6092_s3, 4  }
0x1463   :  { %48 = sbr.rel (!%p46_p9) target bundleno = 29 (0x1d), region = 224 }
0x146a   :  { %3058 = vsyncpa [#allocation4], 1 }
0x146b   :  { %3060 = vsyncpa [#allocation4 + $0x1], 1 }
0x146c   :  { %3061 = vsyncpa [#allocation7], 1 }
0x146d   :  { %3062 = vsyncpa [#allocation10], 1 }
0x146e   :  { %3063 = vsyncpa [#allocation13], 1 }
0x146f   :  { %3064 = vsyncpa [#allocation16], 1 }
0x1470   :  { %3065 = vsyncpa [#allocation19], 1 }
0x1471   :  { %3066 = vsyncpa [#allocation22], 1 }
0x1472   :  { %3067 = vsyncpa [#allocation25], 1 }
0x1473   :  { %3068 = vsyncpa [#allocation28], 1 }
0x1474   :  { %3069 = vsyncpa [#allocation5], 1 }
0x1475   :  { %3071 = vsyncpa [#allocation5 + $0x1], 1 }

</bundles_post_ra>
